<compile_context>
chip_gen: v7x
topology: tpu7x:2x2x1
jax: 0.10.0
libtpu: 0.0.40
codegen_flags: <defaults>
</compile_context>

<pallas_src>
import functools

import jax
import jax.numpy as jnp
from jax.experimental import pallas as pl
from jax.experimental.pallas import tpu as pltpu

# ----------------------------- model config (small, synthetic) --------------
BATCH = 2
CHANNELS = 3
IMG = 16
PATCH = 4
SEQ = (IMG // PATCH) * (IMG // PATCH)     # 16 patches
HIDDEN = 32                               # feature_dim
HEADS = 4
HEAD_DIM = HIDDEN // HEADS                # 8
MLP = 64
LAYERS = 2
LN_EPS = 1e-6

GELU_C = 0.7978845608028654               # sqrt(2/pi), gelu_pytorch_tanh


# ----------------------------- fused Pallas kernel ---------------------------
def _vision_tower_kernel(
    patches_ref,                                   # (1, M, C*P*P)   M = imgs*S
    patch_w_ref, posb_ref,                         # (CPP,D) bf16, (M,D) f32
    ln1_g_ref, ln1_b_ref,                          # (L,1,D)
    wq_ref, bq_ref,                                # (L,H,D,Dh) bf16, (L,H,1,Dh)
    wk_ref, bk_ref,                                # (L,H,D,Dh) bf16, (L,H,1,Dh)
    wv_ref, bv_ref,                                # (L,H,D,Dh) bf16, (L,H,1,Dh)
    wo_ref, bo_ref,                                # (L,H,Dh,D) bf16, (L,1,D)
    ln2_g_ref, ln2_b_ref,                          # (L,1,D)
    fc1_w_ref, fc1_b_ref,                          # (L,D,MLP) bf16, (L,1,MLP)
    fc2_w_ref, fc2_b_ref,                          # (L,MLP,D) bf16, (L,1,D)
    post_g_ref, post_b_ref,                        # (1,D)
    out_ref,                                       # (1, imgs, D)
):
    f32 = jnp.float32
    bf16 = jnp.bfloat16

    layers = ln1_g_ref.shape[0]
    heads = wq_ref.shape[1]
    m = patches_ref.shape[1]
    imgs = out_ref.shape[1]
    hidden = out_ref.shape[2]
    seq = m // imgs

    def ln(v, g, b):
        mu = jnp.mean(v, axis=-1, keepdims=True)
        c = v - mu
        var = jnp.mean(c * c, axis=-1, keepdims=True)
        return c * jax.lax.rsqrt(var + LN_EPS) * g + b

    def mm(a, w):                                   # bf16 MXU, f32 accumulate
        return jnp.dot(a.astype(bf16), w, preferred_element_type=f32)

    # patch embedding + (pos_emb + patch_b) -- bias pre-folded on the host
    h = mm(patches_ref[0], patch_w_ref[...]) + posb_ref[...]          # (M, D)

    for l in range(layers):                  # static unroll, weights in VMEM
        # --------------- self-attention block ---------------
        y = ln(h, ln1_g_ref[l], ln1_b_ref[l])
        yb = y.astype(bf16)
        attn = None
        for hd in range(heads):              # per-head weights: no lane slices
            # softmax scale pre-folded into wq/bq on the host
            q = jnp.dot(yb, wq_ref[l, hd], preferred_element_type=f32) + bq_ref[l, hd]
            k = jnp.dot(yb, wk_ref[l, hd], preferred_element_type=f32) + bk_ref[l, hd]
            v = jnp.dot(yb, wv_ref[l, hd], preferred_element_type=f32) + bv_ref[l, hd]
            ho_parts = []
            for b in range(imgs):            # per-image attention: sublane blocks
                sl = slice(b * seq, (b + 1) * seq)
                qb, kb, vb = q[sl], k[sl], v[sl]
                s = jnp.dot(qb.astype(bf16), kb.astype(bf16).T,
                            preferred_element_type=f32)               # (S, S)
                s = s - jnp.max(s, axis=-1, keepdims=True)
                p = jnp.exp(s)
                p = p * pl.reciprocal(jnp.sum(p, axis=-1, keepdims=True),
                                      approx=True)
                ho_parts.append(jnp.dot(p.astype(bf16), vb.astype(bf16),
                                        preferred_element_type=f32))  # (S, Dh)
            ho = ho_parts[0] if imgs == 1 else jnp.concatenate(ho_parts, axis=0)
            # accumulate the output projection per head (no head concat)
            contrib = jnp.dot(ho.astype(bf16), wo_ref[l, hd],
                              preferred_element_type=f32)             # (M, D)
            attn = contrib if attn is None else attn + contrib
        h = h + attn + bo_ref[l]

        # --------------- MLP block ---------------
        y = ln(h, ln2_g_ref[l], ln2_b_ref[l])
        y = mm(y, fc1_w_ref[l]) + fc1_b_ref[l]
        y = 0.5 * y * (1.0 + jnp.tanh(GELU_C * (y + 0.044715 * y * y * y)))
        h = h + mm(y, fc2_w_ref[l]) + fc2_b_ref[l]

    # post layernorm -> last_hidden_state; mean over each image's patches
    h = ln(h, post_g_ref[...], post_b_ref[...])
    pooled = jnp.mean(h.reshape(imgs, seq, hidden), axis=1)           # (imgs, D)
    out_ref[...] = pooled[None].astype(out_ref.dtype)


# ----------------------------- helpers ---------------------------------------
def _images_per_grid_step(batch):
    """v7x has 2 TensorCores/chip -> keep a batch-parallel grid; v5e/v6e are
    single-TC -> fold the whole batch into the matmul M dim (grid=(1,))."""
    try:
        kind = jax.devices()[0].device_kind.lower()
    except Exception:
        kind = ""
    if "v7" in kind and batch >= 2 and batch % 2 == 0:
        return batch // 2
    return batch


def _const_spec(shape):
    """Constant-index weight spec; single-buffered (never re-DMA'd)."""
    ndim = len(shape)
    idx = lambda b, _n=ndim: (0,) * _n
    try:
        return pl.BlockSpec(shape, idx, pipeline_mode=pl.Buffered(1))
    except Exception:
        return pl.BlockSpec(shape, idx)


# ----------------------------- wrapper ---------------------------------------
@jax.jit
def paligemma_forward(x, params):
    """x: (B, C, H, W) NCHW float32 pixel values. Returns (B, HIDDEN)."""
    f32, bf16 = jnp.float32, jnp.bfloat16
    B, C, H, W = x.shape
    nH, nW = H // PATCH, W // PATCH
    S = nH * nW
    CPP = C * PATCH * PATCH

    imgs = _images_per_grid_step(B)          # images folded into M per step
    grid = B // imgs
    M = imgs * S

    # patchify glue (layout only) in plain JAX
    patches = (
        x.reshape(B, C, nH, PATCH, nW, PATCH)
        .transpose(0, 2, 4, 1, 3, 5)
        .reshape(grid, M, CPP)
    )

    # pre-fold patch bias into the position embedding; tile over fused images
    posb = jnp.tile(params["pos_emb"] + params["patch_b"][None], (imgs, 1))

    scale = jnp.float32(HEAD_DIM ** -0.5)
    layers = params["layers"]

    def heads_in(w):                         # (D, D) -> (H, D, Dh)
        return w.reshape(HIDDEN, HEADS, HEAD_DIM).transpose(1, 0, 2)

    def heads_bias(b):                       # (D,)   -> (H, 1, Dh)
        return b.reshape(HEADS, 1, HEAD_DIM)

    def heads_out(w):                        # (D, D) -> (H, Dh, D)
        return w.reshape(HEADS, HEAD_DIM, HIDDEN)

    stack = lambda fn: jnp.stack([fn(lp) for lp in layers], axis=0)

    ln1_g = stack(lambda lp: lp["ln1_g"][None, :])
    ln1_b = stack(lambda lp: lp["ln1_b"][None, :])
    # softmax scale folded into Q weight + bias (f32 math, then bf16 weight)
    wq = stack(lambda lp: (heads_in(lp["wq"].astype(f32)) * scale).astype(bf16))
    bq = stack(lambda lp: heads_bias(lp["bq"]) * scale)
    wk = stack(lambda lp: heads_in(lp["wk"]))
    bk = stack(lambda lp: heads_bias(lp["bk"]))
    wv = stack(lambda lp: heads_in(lp["wv"]))
    bv = stack(lambda lp: heads_bias(lp["bv"]))
    wo = stack(lambda lp: heads_out(lp["wo"]))
    bo = stack(lambda lp: lp["bo"][None, :])
    ln2_g = stack(lambda lp: lp["ln2_g"][None, :])
    ln2_b = stack(lambda lp: lp["ln2_b"][None, :])
    fc1_w = stack(lambda lp: lp["fc1_w"])
    fc1_b = stack(lambda lp: lp["fc1_b"][None, :])
    fc2_w = stack(lambda lp: lp["fc2_w"])
    fc2_b = stack(lambda lp: lp["fc2_b"][None, :])

    inputs = (
        patches,
        params["patch_w"], posb,
        ln1_g, ln1_b,
        wq, bq, wk, bk, wv, bv,
        wo, bo,
        ln2_g, ln2_b,
        fc1_w, fc1_b, fc2_w, fc2_b,
        params["post_ln_g"].reshape(1, HIDDEN),
        params["post_ln_b"].reshape(1, HIDDEN),
    )

    in_specs = [pl.BlockSpec((1, M, CPP), lambda b: (b, 0, 0))]
    in_specs += [_const_spec(a.shape) for a in inputs[1:]]

    out = pl.pallas_call(
        _vision_tower_kernel,
        out_shape=jax.ShapeDtypeStruct((grid, imgs, HIDDEN), jnp.float32),
        grid=(grid,),
        in_specs=in_specs,
        out_specs=pl.BlockSpec((1, imgs, HIDDEN), lambda b: (b, 0, 0)),
        compiler_params=pltpu.CompilerParams(
            dimension_semantics=("parallel",)),
    )(*inputs)
    return out.reshape(B, HIDDEN)


# ----------------------------- parameters ------------------------------------
def init_params(key):
    f32, bf16 = jnp.float32, jnp.bfloat16

    def nrm(k, shape, std=0.02):
        return jax.random.normal(k, shape, f32) * std

    keys = jax.random.split(key, 3 + LAYERS)
    params = {
        # patch conv weight (D, C, P, P) flattened to matmul weight (C*P*P, D)
        "patch_w": nrm(keys[0], (CHANNELS * PATCH * PATCH, HIDDEN)).astype(bf16),
        "patch_b": nrm(keys[1], (HIDDEN,)),
        "pos_emb": nrm(keys[2], (SEQ, HIDDEN)),
        "post_ln_g": jnp.ones((HIDDEN,), f32),
        "post_ln_b": jnp.zeros((HIDDEN,), f32),
        "layers": [],
    }
    for l in range(LAYERS):
        lk = jax.random.split(keys[3 + l], 12)
        params["layers"].append({
            "ln1_g": jnp.ones((HIDDEN,), f32),
            "ln1_b": jnp.zeros((HIDDEN,), f32),
            "wq": nrm(lk[0], (HIDDEN, HIDDEN)).astype(bf16),
            "bq": nrm(lk[1], (HIDDEN,)),
            "wk": nrm(lk[2], (HIDDEN, HIDDEN)).astype(bf16),
            "bk": nrm(lk[3], (HIDDEN,)),
            "wv": nrm(lk[4], (HIDDEN, HIDDEN)).astype(bf16),
            "bv": nrm(lk[5], (HIDDEN,)),
            "wo": nrm(lk[6], (HIDDEN, HIDDEN)).astype(bf16),
            "bo": nrm(lk[7], (HIDDEN,)),
            "ln2_g": jnp.ones((HIDDEN,), f32),
            "ln2_b": jnp.zeros((HIDDEN,), f32),
            "fc1_w": nrm(lk[8], (HIDDEN, MLP)).astype(bf16),
            "fc1_b": nrm(lk[9], (MLP,)),
            "fc2_w": nrm(lk[10], (MLP, HIDDEN)).astype(bf16),
            "fc2_b": nrm(lk[11], (HIDDEN,)),
        })
    return params


# ----------------------------- pure-JAX reference ----------------------------
def reference_forward(x, params):
    """f32 math on the same (bf16-stored) weights; matches HF SigLIP forward."""
    f32 = jnp.float32
    B, C, H, W = x.shape
    nH, nW = H // PATCH, W // PATCH
    S = nH * nW
    patches = (x.reshape(B, C, nH, PATCH, nW, PATCH)
               .transpose(0, 2, 4, 1, 3, 5)
               .reshape(B, S, C * PATCH * PATCH))

    def ln(v, g, b):
        m = v.mean(-1, keepdims=True)
        var = ((v - m) ** 2).mean(-1, keepdims=True)
        return (v - m) * jax.lax.rsqrt(var + LN_EPS) * g + b

    h = (patches @ params["patch_w"].astype(f32)
         + params["patch_b"] + params["pos_emb"][None])
    scale = HEAD_DIM ** -0.5
    for lp in params["layers"]:
        y = ln(h, lp["ln1_g"], lp["ln1_b"])
        q = y @ lp["wq"].astype(f32) + lp["bq"]
        k = y @ lp["wk"].astype(f32) + lp["bk"]
        v = y @ lp["wv"].astype(f32) + lp["bv"]
        q = q.reshape(B, S, HEADS, HEAD_DIM).transpose(0, 2, 1, 3)
        k = k.reshape(B, S, HEADS, HEAD_DIM).transpose(0, 2, 1, 3)
        v = v.reshape(B, S, HEADS, HEAD_DIM).transpose(0, 2, 1, 3)
        s = (q * scale) @ k.transpose(0, 1, 3, 2)
        p = jax.nn.softmax(s, axis=-1)
        o = (p @ v).transpose(0, 2, 1, 3).reshape(B, S, HIDDEN)
        h = h + o @ lp["wo"].astype(f32) + lp["bo"]
        y = ln(h, lp["ln2_g"], lp["ln2_b"])
        y = y @ lp["fc1_w"].astype(f32) + lp["fc1_b"]
        y = 0.5 * y * (1.0 + jnp.tanh(GELU_C * (y + 0.044715 * y ** 3)))
        h = h + y @ lp["fc2_w"].astype(f32) + lp["fc2_b"]
    h = ln(h, params["post_ln_g"], params["post_ln_b"])
    return h.mean(1)


# ----------------------------- main -------------------------------------------
if __name__ == "__main__":
    key = jax.random.PRNGKey(0)
    pkey, xkey = jax.random.split(key)
    params = init_params(pkey)
    x = jax.random.normal(xkey, (BATCH, CHANNELS, IMG, IMG), jnp.float32)

    feats = jax.block_until_ready(paligemma_forward(x, params))
    assert feats.shape == (BATCH, HIDDEN)
    assert bool(jnp.all(jnp.isfinite(feats)))

    ref = jax.block_until_ready(reference_forward(x, params))
    max_err = float(jnp.max(jnp.abs(feats - ref)))
    # bf16 MXU operands + approx-reciprocal softmax -> allow a few e-2 abs err
    assert max_err < 5e-2, f"max abs err vs reference: {max_err}"

    print("KERNEL_OK")
</pallas_src>

<mosaic_0001>
module attributes {stable_mosaic.version = 11 : i64} {
  func.func @_vision_tower_kernel(%arg0: i32, %arg1: memref<1x32x48xf32, #tpu.memory_space<vmem>>, %arg2: memref<48x32xbf16, #tpu.memory_space<vmem>>, %arg3: memref<32x32xf32, #tpu.memory_space<vmem>>, %arg4: memref<2x1x32xf32, #tpu.memory_space<vmem>>, %arg5: memref<2x1x32xf32, #tpu.memory_space<vmem>>, %arg6: memref<2x4x32x8xbf16, #tpu.memory_space<vmem>>, %arg7: memref<2x4x1x8xf32, #tpu.memory_space<vmem>>, %arg8: memref<2x4x32x8xbf16, #tpu.memory_space<vmem>>, %arg9: memref<2x4x1x8xf32, #tpu.memory_space<vmem>>, %arg10: memref<2x4x32x8xbf16, #tpu.memory_space<vmem>>, %arg11: memref<2x4x1x8xf32, #tpu.memory_space<vmem>>, %arg12: memref<2x4x8x32xbf16, #tpu.memory_space<vmem>>, %arg13: memref<2x1x32xf32, #tpu.memory_space<vmem>>, %arg14: memref<2x1x32xf32, #tpu.memory_space<vmem>>, %arg15: memref<2x1x32xf32, #tpu.memory_space<vmem>>, %arg16: memref<2x32x64xbf16, #tpu.memory_space<vmem>>, %arg17: memref<2x1x64xf32, #tpu.memory_space<vmem>>, %arg18: memref<2x64x32xbf16, #tpu.memory_space<vmem>>, %arg19: memref<2x1x32xf32, #tpu.memory_space<vmem>>, %arg20: memref<1x32xf32, #tpu.memory_space<vmem>>, %arg21: memref<1x32xf32, #tpu.memory_space<vmem>>, %arg22: memref<1x2x32xf32, #tpu.memory_space<vmem>>) attributes {dimension_semantics = [#tpu.dimension_semantics<parallel>], iteration_bounds = array<i64: 1>, scalar_prefetch = 0 : i64, scratch_operands = 0 : i64, tpu.core_type = #tpu.core_type<tc>, window_params = [{transform_indices = @transform_0, window_bounds = array<i64: 1, 32, 48>}, {pipeline_mode = #tpu.pipeline_mode<synchronous>, transform_indices = @transform_1, window_bounds = array<i64: 48, 32>}, {pipeline_mode = #tpu.pipeline_mode<synchronous>, transform_indices = @transform_2, window_bounds = array<i64: 32, 32>}, {pipeline_mode = #tpu.pipeline_mode<synchronous>, transform_indices = @transform_3, window_bounds = array<i64: 2, 1, 32>}, {pipeline_mode = #tpu.pipeline_mode<synchronous>, transform_indices = @transform_4, window_bounds = array<i64: 2, 1, 32>}, {pipeline_mode = #tpu.pipeline_mode<synchronous>, transform_indices = @transform_5, window_bounds = array<i64: 2, 4, 32, 8>}, {pipeline_mode = #tpu.pipeline_mode<synchronous>, transform_indices = @transform_6, window_bounds = array<i64: 2, 4, 1, 8>}, {pipeline_mode = #tpu.pipeline_mode<synchronous>, transform_indices = @transform_7, window_bounds = array<i64: 2, 4, 32, 8>}, {pipeline_mode = #tpu.pipeline_mode<synchronous>, transform_indices = @transform_8, window_bounds = array<i64: 2, 4, 1, 8>}, {pipeline_mode = #tpu.pipeline_mode<synchronous>, transform_indices = @transform_9, window_bounds = array<i64: 2, 4, 32, 8>}, {pipeline_mode = #tpu.pipeline_mode<synchronous>, transform_indices = @transform_10, window_bounds = array<i64: 2, 4, 1, 8>}, {pipeline_mode = #tpu.pipeline_mode<synchronous>, transform_indices = @transform_11, window_bounds = array<i64: 2, 4, 8, 32>}, {pipeline_mode = #tpu.pipeline_mode<synchronous>, transform_indices = @transform_12, window_bounds = array<i64: 2, 1, 32>}, {pipeline_mode = #tpu.pipeline_mode<synchronous>, transform_indices = @transform_13, window_bounds = array<i64: 2, 1, 32>}, {pipeline_mode = #tpu.pipeline_mode<synchronous>, transform_indices = @transform_14, window_bounds = array<i64: 2, 1, 32>}, {pipeline_mode = #tpu.pipeline_mode<synchronous>, transform_indices = @transform_15, window_bounds = array<i64: 2, 32, 64>}, {pipeline_mode = #tpu.pipeline_mode<synchronous>, transform_indices = @transform_16, window_bounds = array<i64: 2, 1, 64>}, {pipeline_mode = #tpu.pipeline_mode<synchronous>, transform_indices = @transform_17, window_bounds = array<i64: 2, 64, 32>}, {pipeline_mode = #tpu.pipeline_mode<synchronous>, transform_indices = @transform_18, window_bounds = array<i64: 2, 1, 32>}, {pipeline_mode = #tpu.pipeline_mode<synchronous>, transform_indices = @transform_19, window_bounds = array<i64: 1, 32>}, {pipeline_mode = #tpu.pipeline_mode<synchronous>, transform_indices = @transform_20, window_bounds = array<i64: 1, 32>}, {transform_indices = @transform_21, window_bounds = array<i64: 1, 2, 32>}]} {
    %c0 = arith.constant 0 : index
    %c0_0 = arith.constant 0 : index
    %c0_1 = arith.constant 0 : index
    %0 = vector.load %arg1[%c0, %c0_0, %c0_1] : memref<1x32x48xf32, #tpu.memory_space<vmem>>, vector<1x32x48xf32>
    %1 = vector.shape_cast %0 : vector<1x32x48xf32> to vector<32x48xf32>
    %c0_2 = arith.constant 0 : index
    %c0_3 = arith.constant 0 : index
    %2 = vector.load %arg2[%c0_2, %c0_3] : memref<48x32xbf16, #tpu.memory_space<vmem>>, vector<48x32xbf16>
    %3 = arith.truncf %1 : vector<32x48xf32> to vector<32x48xbf16>
    %cst = arith.constant dense<0.000000e+00> : vector<32x32xf32>
    %4 = tpu.matmul %3, %2, %cst {dimension_numbers = #tpu.dot_dimension_numbers<[1], [0], [0], [1], [0, 0, 1, 1], [], []>} : vector<32x48xbf16>, vector<48x32xbf16>, vector<32x32xf32> -> vector<32x32xf32>
    %c0_4 = arith.constant 0 : index
    %c0_5 = arith.constant 0 : index
    %5 = vector.load %arg3[%c0_4, %c0_5] : memref<32x32xf32, #tpu.memory_space<vmem>>, vector<32x32xf32>
    %6 = arith.addf %4, %5 : vector<32x32xf32>
    %c0_6 = arith.constant 0 : index
    %c0_7 = arith.constant 0 : index
    %c0_8 = arith.constant 0 : index
    %7 = vector.load %arg4[%c0_6, %c0_7, %c0_8] : memref<2x1x32xf32, #tpu.memory_space<vmem>>, vector<1x1x32xf32>
    %8 = vector.shape_cast %7 : vector<1x1x32xf32> to vector<1x32xf32>
    %c0_9 = arith.constant 0 : index
    %c0_10 = arith.constant 0 : index
    %c0_11 = arith.constant 0 : index
    %9 = vector.load %arg5[%c0_9, %c0_10, %c0_11] : memref<2x1x32xf32, #tpu.memory_space<vmem>>, vector<1x1x32xf32>
    %10 = vector.shape_cast %9 : vector<1x1x32xf32> to vector<1x32xf32>
    %cst_12 = arith.constant dense<0.000000e+00> : vector<32xf32>
    %11 = vector.multi_reduction <add>, %6, %cst_12 [1] : vector<32x32xf32> to vector<32xf32>
    %12 = vector.shape_cast %11 : vector<32xf32> to vector<32x1xf32>
    %cst_13 = arith.constant 3.200000e+01 : f32
    %13 = vector.broadcast %cst_13 : f32 to vector<32x1xf32>
    %14 = arith.divf %12, %13 : vector<32x1xf32>
    %15 = vector.broadcast %14 : vector<32x1xf32> to vector<32x32xf32>
    %16 = arith.subf %6, %15 : vector<32x32xf32>
    %17 = arith.mulf %16, %16 : vector<32x32xf32>
    %cst_14 = arith.constant dense<0.000000e+00> : vector<32xf32>
    %18 = vector.multi_reduction <add>, %17, %cst_14 [1] : vector<32x32xf32> to vector<32xf32>
    %19 = vector.shape_cast %18 : vector<32xf32> to vector<32x1xf32>
    %cst_15 = arith.constant 3.200000e+01 : f32
    %20 = vector.broadcast %cst_15 : f32 to vector<32x1xf32>
    %21 = arith.divf %19, %20 : vector<32x1xf32>
    %cst_16 = arith.constant 9.99999997E-7 : f32
    %22 = vector.broadcast %cst_16 : f32 to vector<32x1xf32>
    %23 = arith.addf %21, %22 : vector<32x1xf32>
    %24 = math.rsqrt %23 : vector<32x1xf32>
    %25 = vector.broadcast %24 : vector<32x1xf32> to vector<32x32xf32>
    %26 = arith.mulf %16, %25 : vector<32x32xf32>
    %27 = vector.broadcast %8 : vector<1x32xf32> to vector<32x32xf32>
    %28 = arith.mulf %26, %27 : vector<32x32xf32>
    %29 = vector.broadcast %10 : vector<1x32xf32> to vector<32x32xf32>
    %30 = arith.addf %28, %29 : vector<32x32xf32>
    %31 = arith.truncf %30 : vector<32x32xf32> to vector<32x32xbf16>
    %c0_17 = arith.constant 0 : index
    %c0_18 = arith.constant 0 : index
    %c0_19 = arith.constant 0 : index
    %c0_20 = arith.constant 0 : index
    %32 = vector.load %arg6[%c0_17, %c0_18, %c0_19, %c0_20] : memref<2x4x32x8xbf16, #tpu.memory_space<vmem>>, vector<1x1x32x8xbf16>
    %33 = vector.shape_cast %32 : vector<1x1x32x8xbf16> to vector<32x8xbf16>
    %cst_21 = arith.constant dense<0.000000e+00> : vector<32x8xf32>
    %34 = tpu.matmul %31, %33, %cst_21 {dimension_numbers = #tpu.dot_dimension_numbers<[1], [0], [0], [1], [0, 0, 1, 1], [], []>} : vector<32x32xbf16>, vector<32x8xbf16>, vector<32x8xf32> -> vector<32x8xf32>
    %c0_22 = arith.constant 0 : index
    %c0_23 = arith.constant 0 : index
    %c0_24 = arith.constant 0 : index
    %c0_25 = arith.constant 0 : index
    %35 = vector.load %arg7[%c0_22, %c0_23, %c0_24, %c0_25] : memref<2x4x1x8xf32, #tpu.memory_space<vmem>>, vector<1x1x1x8xf32>
    %36 = vector.shape_cast %35 : vector<1x1x1x8xf32> to vector<1x8xf32>
    %37 = vector.broadcast %36 : vector<1x8xf32> to vector<32x8xf32>
    %38 = arith.addf %34, %37 : vector<32x8xf32>
    %c0_26 = arith.constant 0 : index
    %c0_27 = arith.constant 0 : index
    %c0_28 = arith.constant 0 : index
    %c0_29 = arith.constant 0 : index
    %39 = vector.load %arg8[%c0_26, %c0_27, %c0_28, %c0_29] : memref<2x4x32x8xbf16, #tpu.memory_space<vmem>>, vector<1x1x32x8xbf16>
    %40 = vector.shape_cast %39 : vector<1x1x32x8xbf16> to vector<32x8xbf16>
    %cst_30 = arith.constant dense<0.000000e+00> : vector<32x8xf32>
    %41 = tpu.matmul %31, %40, %cst_30 {dimension_numbers = #tpu.dot_dimension_numbers<[1], [0], [0], [1], [0, 0, 1, 1], [], []>} : vector<32x32xbf16>, vector<32x8xbf16>, vector<32x8xf32> -> vector<32x8xf32>
    %c0_31 = arith.constant 0 : index
    %c0_32 = arith.constant 0 : index
    %c0_33 = arith.constant 0 : index
    %c0_34 = arith.constant 0 : index
    %42 = vector.load %arg9[%c0_31, %c0_32, %c0_33, %c0_34] : memref<2x4x1x8xf32, #tpu.memory_space<vmem>>, vector<1x1x1x8xf32>
    %43 = vector.shape_cast %42 : vector<1x1x1x8xf32> to vector<1x8xf32>
    %44 = vector.broadcast %43 : vector<1x8xf32> to vector<32x8xf32>
    %45 = arith.addf %41, %44 : vector<32x8xf32>
    %c0_35 = arith.constant 0 : index
    %c0_36 = arith.constant 0 : index
    %c0_37 = arith.constant 0 : index
    %c0_38 = arith.constant 0 : index
    %46 = vector.load %arg10[%c0_35, %c0_36, %c0_37, %c0_38] : memref<2x4x32x8xbf16, #tpu.memory_space<vmem>>, vector<1x1x32x8xbf16>
    %47 = vector.shape_cast %46 : vector<1x1x32x8xbf16> to vector<32x8xbf16>
    %cst_39 = arith.constant dense<0.000000e+00> : vector<32x8xf32>
    %48 = tpu.matmul %31, %47, %cst_39 {dimension_numbers = #tpu.dot_dimension_numbers<[1], [0], [0], [1], [0, 0, 1, 1], [], []>} : vector<32x32xbf16>, vector<32x8xbf16>, vector<32x8xf32> -> vector<32x8xf32>
    %c0_40 = arith.constant 0 : index
    %c0_41 = arith.constant 0 : index
    %c0_42 = arith.constant 0 : index
    %c0_43 = arith.constant 0 : index
    %49 = vector.load %arg11[%c0_40, %c0_41, %c0_42, %c0_43] : memref<2x4x1x8xf32, #tpu.memory_space<vmem>>, vector<1x1x1x8xf32>
    %50 = vector.shape_cast %49 : vector<1x1x1x8xf32> to vector<1x8xf32>
    %51 = vector.broadcast %50 : vector<1x8xf32> to vector<32x8xf32>
    %52 = arith.addf %48, %51 : vector<32x8xf32>
    %53 = vector.extract_strided_slice %38 {offsets = [0, 0], sizes = [16, 8], strides = [1, 1]} : vector<32x8xf32> to vector<16x8xf32>
    %54 = vector.extract_strided_slice %45 {offsets = [0, 0], sizes = [16, 8], strides = [1, 1]} : vector<32x8xf32> to vector<16x8xf32>
    %55 = vector.extract_strided_slice %52 {offsets = [0, 0], sizes = [16, 8], strides = [1, 1]} : vector<32x8xf32> to vector<16x8xf32>
    %56 = arith.truncf %53 : vector<16x8xf32> to vector<16x8xbf16>
    %57 = arith.truncf %54 : vector<16x8xf32> to vector<16x8xbf16>
    %58 = tpu.transpose %57, [1, 0] : vector<16x8xbf16> -> vector<8x16xbf16>
    %cst_44 = arith.constant dense<0.000000e+00> : vector<16x16xf32>
    %59 = tpu.matmul %56, %58, %cst_44 {dimension_numbers = #tpu.dot_dimension_numbers<[1], [0], [0], [1], [0, 0, 1, 1], [], []>} : vector<16x8xbf16>, vector<8x16xbf16>, vector<16x16xf32> -> vector<16x16xf32>
    %cst_45 = arith.constant dense<0xFF800000> : vector<16xf32>
    %60 = vector.multi_reduction <maximumf>, %59, %cst_45 [1] : vector<16x16xf32> to vector<16xf32>
    %61 = vector.shape_cast %60 : vector<16xf32> to vector<16x1xf32>
    %62 = vector.broadcast %61 : vector<16x1xf32> to vector<16x16xf32>
    %63 = arith.subf %59, %62 : vector<16x16xf32>
    %64 = math.exp %63 : vector<16x16xf32>
    %cst_46 = arith.constant dense<0.000000e+00> : vector<16xf32>
    %65 = vector.multi_reduction <add>, %64, %cst_46 [1] : vector<16x16xf32> to vector<16xf32>
    %66 = vector.shape_cast %65 : vector<16xf32> to vector<16x1xf32>
    %67 = tpu.reciprocal %66 {approx = true} : vector<16x1xf32> -> vector<16x1xf32>
    %68 = vector.broadcast %67 : vector<16x1xf32> to vector<16x16xf32>
    %69 = arith.mulf %64, %68 : vector<16x16xf32>
    %70 = arith.truncf %69 : vector<16x16xf32> to vector<16x16xbf16>
    %71 = arith.truncf %55 : vector<16x8xf32> to vector<16x8xbf16>
    %cst_47 = arith.constant dense<0.000000e+00> : vector<16x8xf32>
    %72 = tpu.matmul %70, %71, %cst_47 {dimension_numbers = #tpu.dot_dimension_numbers<[1], [0], [0], [1], [0, 0, 1, 1], [], []>} : vector<16x16xbf16>, vector<16x8xbf16>, vector<16x8xf32> -> vector<16x8xf32>
    %73 = vector.extract_strided_slice %38 {offsets = [16, 0], sizes = [16, 8], strides = [1, 1]} : vector<32x8xf32> to vector<16x8xf32>
    %74 = vector.extract_strided_slice %45 {offsets = [16, 0], sizes = [16, 8], strides = [1, 1]} : vector<32x8xf32> to vector<16x8xf32>
    %75 = vector.extract_strided_slice %52 {offsets = [16, 0], sizes = [16, 8], strides = [1, 1]} : vector<32x8xf32> to vector<16x8xf32>
    %76 = arith.truncf %73 : vector<16x8xf32> to vector<16x8xbf16>
    %77 = arith.truncf %74 : vector<16x8xf32> to vector<16x8xbf16>
    %78 = tpu.transpose %77, [1, 0] : vector<16x8xbf16> -> vector<8x16xbf16>
    %cst_48 = arith.constant dense<0.000000e+00> : vector<16x16xf32>
    %79 = tpu.matmul %76, %78, %cst_48 {dimension_numbers = #tpu.dot_dimension_numbers<[1], [0], [0], [1], [0, 0, 1, 1], [], []>} : vector<16x8xbf16>, vector<8x16xbf16>, vector<16x16xf32> -> vector<16x16xf32>
    %cst_49 = arith.constant dense<0xFF800000> : vector<16xf32>
    %80 = vector.multi_reduction <maximumf>, %79, %cst_49 [1] : vector<16x16xf32> to vector<16xf32>
    %81 = vector.shape_cast %80 : vector<16xf32> to vector<16x1xf32>
    %82 = vector.broadcast %81 : vector<16x1xf32> to vector<16x16xf32>
    %83 = arith.subf %79, %82 : vector<16x16xf32>
    %84 = math.exp %83 : vector<16x16xf32>
    %cst_50 = arith.constant dense<0.000000e+00> : vector<16xf32>
    %85 = vector.multi_reduction <add>, %84, %cst_50 [1] : vector<16x16xf32> to vector<16xf32>
    %86 = vector.shape_cast %85 : vector<16xf32> to vector<16x1xf32>
    %87 = tpu.reciprocal %86 {approx = true} : vector<16x1xf32> -> vector<16x1xf32>
    %88 = vector.broadcast %87 : vector<16x1xf32> to vector<16x16xf32>
    %89 = arith.mulf %84, %88 : vector<16x16xf32>
    %90 = arith.truncf %89 : vector<16x16xf32> to vector<16x16xbf16>
    %91 = arith.truncf %75 : vector<16x8xf32> to vector<16x8xbf16>
    %cst_51 = arith.constant dense<0.000000e+00> : vector<16x8xf32>
    %92 = tpu.matmul %90, %91, %cst_51 {dimension_numbers = #tpu.dot_dimension_numbers<[1], [0], [0], [1], [0, 0, 1, 1], [], []>} : vector<16x16xbf16>, vector<16x8xbf16>, vector<16x8xf32> -> vector<16x8xf32>
    %93 = tpu.concatenate %72, %92 in 0 : vector<16x8xf32>, vector<16x8xf32> -> vector<32x8xf32>
    %94 = arith.truncf %93 : vector<32x8xf32> to vector<32x8xbf16>
    %c0_52 = arith.constant 0 : index
    %c0_53 = arith.constant 0 : index
    %c0_54 = arith.constant 0 : index
    %c0_55 = arith.constant 0 : index
    %95 = vector.load %arg12[%c0_52, %c0_53, %c0_54, %c0_55] : memref<2x4x8x32xbf16, #tpu.memory_space<vmem>>, vector<1x1x8x32xbf16>
    %96 = vector.shape_cast %95 : vector<1x1x8x32xbf16> to vector<8x32xbf16>
    %cst_56 = arith.constant dense<0.000000e+00> : vector<32x32xf32>
    %97 = tpu.matmul %94, %96, %cst_56 {dimension_numbers = #tpu.dot_dimension_numbers<[1], [0], [0], [1], [0, 0, 1, 1], [], []>} : vector<32x8xbf16>, vector<8x32xbf16>, vector<32x32xf32> -> vector<32x32xf32>
    %c0_57 = arith.constant 0 : index
    %c1 = arith.constant 1 : index
    %c0_58 = arith.constant 0 : index
    %c0_59 = arith.constant 0 : index
    %98 = vector.load %arg6[%c0_57, %c1, %c0_58, %c0_59] : memref<2x4x32x8xbf16, #tpu.memory_space<vmem>>, vector<1x1x32x8xbf16>
    %99 = vector.shape_cast %98 : vector<1x1x32x8xbf16> to vector<32x8xbf16>
    %cst_60 = arith.constant dense<0.000000e+00> : vector<32x8xf32>
    %100 = tpu.matmul %31, %99, %cst_60 {dimension_numbers = #tpu.dot_dimension_numbers<[1], [0], [0], [1], [0, 0, 1, 1], [], []>} : vector<32x32xbf16>, vector<32x8xbf16>, vector<32x8xf32> -> vector<32x8xf32>
    %c0_61 = arith.constant 0 : index
    %c1_62 = arith.constant 1 : index
    %c0_63 = arith.constant 0 : index
    %c0_64 = arith.constant 0 : index
    %101 = vector.load %arg7[%c0_61, %c1_62, %c0_63, %c0_64] : memref<2x4x1x8xf32, #tpu.memory_space<vmem>>, vector<1x1x1x8xf32>
    %102 = vector.shape_cast %101 : vector<1x1x1x8xf32> to vector<1x8xf32>
    %103 = vector.broadcast %102 : vector<1x8xf32> to vector<32x8xf32>
    %104 = arith.addf %100, %103 : vector<32x8xf32>
    %c0_65 = arith.constant 0 : index
    %c1_66 = arith.constant 1 : index
    %c0_67 = arith.constant 0 : index
    %c0_68 = arith.constant 0 : index
    %105 = vector.load %arg8[%c0_65, %c1_66, %c0_67, %c0_68] : memref<2x4x32x8xbf16, #tpu.memory_space<vmem>>, vector<1x1x32x8xbf16>
    %106 = vector.shape_cast %105 : vector<1x1x32x8xbf16> to vector<32x8xbf16>
    %cst_69 = arith.constant dense<0.000000e+00> : vector<32x8xf32>
    %107 = tpu.matmul %31, %106, %cst_69 {dimension_numbers = #tpu.dot_dimension_numbers<[1], [0], [0], [1], [0, 0, 1, 1], [], []>} : vector<32x32xbf16>, vector<32x8xbf16>, vector<32x8xf32> -> vector<32x8xf32>
    %c0_70 = arith.constant 0 : index
    %c1_71 = arith.constant 1 : index
    %c0_72 = arith.constant 0 : index
    %c0_73 = arith.constant 0 : index
    %108 = vector.load %arg9[%c0_70, %c1_71, %c0_72, %c0_73] : memref<2x4x1x8xf32, #tpu.memory_space<vmem>>, vector<1x1x1x8xf32>
    %109 = vector.shape_cast %108 : vector<1x1x1x8xf32> to vector<1x8xf32>
    %110 = vector.broadcast %109 : vector<1x8xf32> to vector<32x8xf32>
    %111 = arith.addf %107, %110 : vector<32x8xf32>
    %c0_74 = arith.constant 0 : index
    %c1_75 = arith.constant 1 : index
    %c0_76 = arith.constant 0 : index
    %c0_77 = arith.constant 0 : index
    %112 = vector.load %arg10[%c0_74, %c1_75, %c0_76, %c0_77] : memref<2x4x32x8xbf16, #tpu.memory_space<vmem>>, vector<1x1x32x8xbf16>
    %113 = vector.shape_cast %112 : vector<1x1x32x8xbf16> to vector<32x8xbf16>
    %cst_78 = arith.constant dense<0.000000e+00> : vector<32x8xf32>
    %114 = tpu.matmul %31, %113, %cst_78 {dimension_numbers = #tpu.dot_dimension_numbers<[1], [0], [0], [1], [0, 0, 1, 1], [], []>} : vector<32x32xbf16>, vector<32x8xbf16>, vector<32x8xf32> -> vector<32x8xf32>
    %c0_79 = arith.constant 0 : index
    %c1_80 = arith.constant 1 : index
    %c0_81 = arith.constant 0 : index
    %c0_82 = arith.constant 0 : index
    %115 = vector.load %arg11[%c0_79, %c1_80, %c0_81, %c0_82] : memref<2x4x1x8xf32, #tpu.memory_space<vmem>>, vector<1x1x1x8xf32>
    %116 = vector.shape_cast %115 : vector<1x1x1x8xf32> to vector<1x8xf32>
    %117 = vector.broadcast %116 : vector<1x8xf32> to vector<32x8xf32>
    %118 = arith.addf %114, %117 : vector<32x8xf32>
    %119 = vector.extract_strided_slice %104 {offsets = [0, 0], sizes = [16, 8], strides = [1, 1]} : vector<32x8xf32> to vector<16x8xf32>
    %120 = vector.extract_strided_slice %111 {offsets = [0, 0], sizes = [16, 8], strides = [1, 1]} : vector<32x8xf32> to vector<16x8xf32>
    %121 = vector.extract_strided_slice %118 {offsets = [0, 0], sizes = [16, 8], strides = [1, 1]} : vector<32x8xf32> to vector<16x8xf32>
    %122 = arith.truncf %119 : vector<16x8xf32> to vector<16x8xbf16>
    %123 = arith.truncf %120 : vector<16x8xf32> to vector<16x8xbf16>
    %124 = tpu.transpose %123, [1, 0] : vector<16x8xbf16> -> vector<8x16xbf16>
    %cst_83 = arith.constant dense<0.000000e+00> : vector<16x16xf32>
    %125 = tpu.matmul %122, %124, %cst_83 {dimension_numbers = #tpu.dot_dimension_numbers<[1], [0], [0], [1], [0, 0, 1, 1], [], []>} : vector<16x8xbf16>, vector<8x16xbf16>, vector<16x16xf32> -> vector<16x16xf32>
    %cst_84 = arith.constant dense<0xFF800000> : vector<16xf32>
    %126 = vector.multi_reduction <maximumf>, %125, %cst_84 [1] : vector<16x16xf32> to vector<16xf32>
    %127 = vector.shape_cast %126 : vector<16xf32> to vector<16x1xf32>
    %128 = vector.broadcast %127 : vector<16x1xf32> to vector<16x16xf32>
    %129 = arith.subf %125, %128 : vector<16x16xf32>
    %130 = math.exp %129 : vector<16x16xf32>
    %cst_85 = arith.constant dense<0.000000e+00> : vector<16xf32>
    %131 = vector.multi_reduction <add>, %130, %cst_85 [1] : vector<16x16xf32> to vector<16xf32>
    %132 = vector.shape_cast %131 : vector<16xf32> to vector<16x1xf32>
    %133 = tpu.reciprocal %132 {approx = true} : vector<16x1xf32> -> vector<16x1xf32>
    %134 = vector.broadcast %133 : vector<16x1xf32> to vector<16x16xf32>
    %135 = arith.mulf %130, %134 : vector<16x16xf32>
    %136 = arith.truncf %135 : vector<16x16xf32> to vector<16x16xbf16>
    %137 = arith.truncf %121 : vector<16x8xf32> to vector<16x8xbf16>
    %cst_86 = arith.constant dense<0.000000e+00> : vector<16x8xf32>
    %138 = tpu.matmul %136, %137, %cst_86 {dimension_numbers = #tpu.dot_dimension_numbers<[1], [0], [0], [1], [0, 0, 1, 1], [], []>} : vector<16x16xbf16>, vector<16x8xbf16>, vector<16x8xf32> -> vector<16x8xf32>
    %139 = vector.extract_strided_slice %104 {offsets = [16, 0], sizes = [16, 8], strides = [1, 1]} : vector<32x8xf32> to vector<16x8xf32>
    %140 = vector.extract_strided_slice %111 {offsets = [16, 0], sizes = [16, 8], strides = [1, 1]} : vector<32x8xf32> to vector<16x8xf32>
    %141 = vector.extract_strided_slice %118 {offsets = [16, 0], sizes = [16, 8], strides = [1, 1]} : vector<32x8xf32> to vector<16x8xf32>
    %142 = arith.truncf %139 : vector<16x8xf32> to vector<16x8xbf16>
    %143 = arith.truncf %140 : vector<16x8xf32> to vector<16x8xbf16>
    %144 = tpu.transpose %143, [1, 0] : vector<16x8xbf16> -> vector<8x16xbf16>
    %cst_87 = arith.constant dense<0.000000e+00> : vector<16x16xf32>
    %145 = tpu.matmul %142, %144, %cst_87 {dimension_numbers = #tpu.dot_dimension_numbers<[1], [0], [0], [1], [0, 0, 1, 1], [], []>} : vector<16x8xbf16>, vector<8x16xbf16>, vector<16x16xf32> -> vector<16x16xf32>
    %cst_88 = arith.constant dense<0xFF800000> : vector<16xf32>
    %146 = vector.multi_reduction <maximumf>, %145, %cst_88 [1] : vector<16x16xf32> to vector<16xf32>
    %147 = vector.shape_cast %146 : vector<16xf32> to vector<16x1xf32>
    %148 = vector.broadcast %147 : vector<16x1xf32> to vector<16x16xf32>
    %149 = arith.subf %145, %148 : vector<16x16xf32>
    %150 = math.exp %149 : vector<16x16xf32>
    %cst_89 = arith.constant dense<0.000000e+00> : vector<16xf32>
    %151 = vector.multi_reduction <add>, %150, %cst_89 [1] : vector<16x16xf32> to vector<16xf32>
    %152 = vector.shape_cast %151 : vector<16xf32> to vector<16x1xf32>
    %153 = tpu.reciprocal %152 {approx = true} : vector<16x1xf32> -> vector<16x1xf32>
    %154 = vector.broadcast %153 : vector<16x1xf32> to vector<16x16xf32>
    %155 = arith.mulf %150, %154 : vector<16x16xf32>
    %156 = arith.truncf %155 : vector<16x16xf32> to vector<16x16xbf16>
    %157 = arith.truncf %141 : vector<16x8xf32> to vector<16x8xbf16>
    %cst_90 = arith.constant dense<0.000000e+00> : vector<16x8xf32>
    %158 = tpu.matmul %156, %157, %cst_90 {dimension_numbers = #tpu.dot_dimension_numbers<[1], [0], [0], [1], [0, 0, 1, 1], [], []>} : vector<16x16xbf16>, vector<16x8xbf16>, vector<16x8xf32> -> vector<16x8xf32>
    %159 = tpu.concatenate %138, %158 in 0 : vector<16x8xf32>, vector<16x8xf32> -> vector<32x8xf32>
    %160 = arith.truncf %159 : vector<32x8xf32> to vector<32x8xbf16>
    %c0_91 = arith.constant 0 : index
    %c1_92 = arith.constant 1 : index
    %c0_93 = arith.constant 0 : index
    %c0_94 = arith.constant 0 : index
    %161 = vector.load %arg12[%c0_91, %c1_92, %c0_93, %c0_94] : memref<2x4x8x32xbf16, #tpu.memory_space<vmem>>, vector<1x1x8x32xbf16>
    %162 = vector.shape_cast %161 : vector<1x1x8x32xbf16> to vector<8x32xbf16>
    %cst_95 = arith.constant dense<0.000000e+00> : vector<32x32xf32>
    %163 = tpu.matmul %160, %162, %cst_95 {dimension_numbers = #tpu.dot_dimension_numbers<[1], [0], [0], [1], [0, 0, 1, 1], [], []>} : vector<32x8xbf16>, vector<8x32xbf16>, vector<32x32xf32> -> vector<32x32xf32>
    %164 = arith.addf %97, %163 : vector<32x32xf32>
    %c0_96 = arith.constant 0 : index
    %c2 = arith.constant 2 : index
    %c0_97 = arith.constant 0 : index
    %c0_98 = arith.constant 0 : index
    %165 = vector.load %arg6[%c0_96, %c2, %c0_97, %c0_98] : memref<2x4x32x8xbf16, #tpu.memory_space<vmem>>, vector<1x1x32x8xbf16>
    %166 = vector.shape_cast %165 : vector<1x1x32x8xbf16> to vector<32x8xbf16>
    %cst_99 = arith.constant dense<0.000000e+00> : vector<32x8xf32>
    %167 = tpu.matmul %31, %166, %cst_99 {dimension_numbers = #tpu.dot_dimension_numbers<[1], [0], [0], [1], [0, 0, 1, 1], [], []>} : vector<32x32xbf16>, vector<32x8xbf16>, vector<32x8xf32> -> vector<32x8xf32>
    %c0_100 = arith.constant 0 : index
    %c2_101 = arith.constant 2 : index
    %c0_102 = arith.constant 0 : index
    %c0_103 = arith.constant 0 : index
    %168 = vector.load %arg7[%c0_100, %c2_101, %c0_102, %c0_103] : memref<2x4x1x8xf32, #tpu.memory_space<vmem>>, vector<1x1x1x8xf32>
    %169 = vector.shape_cast %168 : vector<1x1x1x8xf32> to vector<1x8xf32>
    %170 = vector.broadcast %169 : vector<1x8xf32> to vector<32x8xf32>
    %171 = arith.addf %167, %170 : vector<32x8xf32>
    %c0_104 = arith.constant 0 : index
    %c2_105 = arith.constant 2 : index
    %c0_106 = arith.constant 0 : index
    %c0_107 = arith.constant 0 : index
    %172 = vector.load %arg8[%c0_104, %c2_105, %c0_106, %c0_107] : memref<2x4x32x8xbf16, #tpu.memory_space<vmem>>, vector<1x1x32x8xbf16>
    %173 = vector.shape_cast %172 : vector<1x1x32x8xbf16> to vector<32x8xbf16>
    %cst_108 = arith.constant dense<0.000000e+00> : vector<32x8xf32>
    %174 = tpu.matmul %31, %173, %cst_108 {dimension_numbers = #tpu.dot_dimension_numbers<[1], [0], [0], [1], [0, 0, 1, 1], [], []>} : vector<32x32xbf16>, vector<32x8xbf16>, vector<32x8xf32> -> vector<32x8xf32>
    %c0_109 = arith.constant 0 : index
    %c2_110 = arith.constant 2 : index
    %c0_111 = arith.constant 0 : index
    %c0_112 = arith.constant 0 : index
    %175 = vector.load %arg9[%c0_109, %c2_110, %c0_111, %c0_112] : memref<2x4x1x8xf32, #tpu.memory_space<vmem>>, vector<1x1x1x8xf32>
    %176 = vector.shape_cast %175 : vector<1x1x1x8xf32> to vector<1x8xf32>
    %177 = vector.broadcast %176 : vector<1x8xf32> to vector<32x8xf32>
    %178 = arith.addf %174, %177 : vector<32x8xf32>
    %c0_113 = arith.constant 0 : index
    %c2_114 = arith.constant 2 : index
    %c0_115 = arith.constant 0 : index
    %c0_116 = arith.constant 0 : index
    %179 = vector.load %arg10[%c0_113, %c2_114, %c0_115, %c0_116] : memref<2x4x32x8xbf16, #tpu.memory_space<vmem>>, vector<1x1x32x8xbf16>
    %180 = vector.shape_cast %179 : vector<1x1x32x8xbf16> to vector<32x8xbf16>
    %cst_117 = arith.constant dense<0.000000e+00> : vector<32x8xf32>
    %181 = tpu.matmul %31, %180, %cst_117 {dimension_numbers = #tpu.dot_dimension_numbers<[1], [0], [0], [1], [0, 0, 1, 1], [], []>} : vector<32x32xbf16>, vector<32x8xbf16>, vector<32x8xf32> -> vector<32x8xf32>
    %c0_118 = arith.constant 0 : index
    %c2_119 = arith.constant 2 : index
    %c0_120 = arith.constant 0 : index
    %c0_121 = arith.constant 0 : index
    %182 = vector.load %arg11[%c0_118, %c2_119, %c0_120, %c0_121] : memref<2x4x1x8xf32, #tpu.memory_space<vmem>>, vector<1x1x1x8xf32>
    %183 = vector.shape_cast %182 : vector<1x1x1x8xf32> to vector<1x8xf32>
    %184 = vector.broadcast %183 : vector<1x8xf32> to vector<32x8xf32>
    %185 = arith.addf %181, %184 : vector<32x8xf32>
    %186 = vector.extract_strided_slice %171 {offsets = [0, 0], sizes = [16, 8], strides = [1, 1]} : vector<32x8xf32> to vector<16x8xf32>
    %187 = vector.extract_strided_slice %178 {offsets = [0, 0], sizes = [16, 8], strides = [1, 1]} : vector<32x8xf32> to vector<16x8xf32>
    %188 = vector.extract_strided_slice %185 {offsets = [0, 0], sizes = [16, 8], strides = [1, 1]} : vector<32x8xf32> to vector<16x8xf32>
    %189 = arith.truncf %186 : vector<16x8xf32> to vector<16x8xbf16>
    %190 = arith.truncf %187 : vector<16x8xf32> to vector<16x8xbf16>
    %191 = tpu.transpose %190, [1, 0] : vector<16x8xbf16> -> vector<8x16xbf16>
    %cst_122 = arith.constant dense<0.000000e+00> : vector<16x16xf32>
    %192 = tpu.matmul %189, %191, %cst_122 {dimension_numbers = #tpu.dot_dimension_numbers<[1], [0], [0], [1], [0, 0, 1, 1], [], []>} : vector<16x8xbf16>, vector<8x16xbf16>, vector<16x16xf32> -> vector<16x16xf32>
    %cst_123 = arith.constant dense<0xFF800000> : vector<16xf32>
    %193 = vector.multi_reduction <maximumf>, %192, %cst_123 [1] : vector<16x16xf32> to vector<16xf32>
    %194 = vector.shape_cast %193 : vector<16xf32> to vector<16x1xf32>
    %195 = vector.broadcast %194 : vector<16x1xf32> to vector<16x16xf32>
    %196 = arith.subf %192, %195 : vector<16x16xf32>
    %197 = math.exp %196 : vector<16x16xf32>
    %cst_124 = arith.constant dense<0.000000e+00> : vector<16xf32>
    %198 = vector.multi_reduction <add>, %197, %cst_124 [1] : vector<16x16xf32> to vector<16xf32>
    %199 = vector.shape_cast %198 : vector<16xf32> to vector<16x1xf32>
    %200 = tpu.reciprocal %199 {approx = true} : vector<16x1xf32> -> vector<16x1xf32>
    %201 = vector.broadcast %200 : vector<16x1xf32> to vector<16x16xf32>
    %202 = arith.mulf %197, %201 : vector<16x16xf32>
    %203 = arith.truncf %202 : vector<16x16xf32> to vector<16x16xbf16>
    %204 = arith.truncf %188 : vector<16x8xf32> to vector<16x8xbf16>
    %cst_125 = arith.constant dense<0.000000e+00> : vector<16x8xf32>
    %205 = tpu.matmul %203, %204, %cst_125 {dimension_numbers = #tpu.dot_dimension_numbers<[1], [0], [0], [1], [0, 0, 1, 1], [], []>} : vector<16x16xbf16>, vector<16x8xbf16>, vector<16x8xf32> -> vector<16x8xf32>
    %206 = vector.extract_strided_slice %171 {offsets = [16, 0], sizes = [16, 8], strides = [1, 1]} : vector<32x8xf32> to vector<16x8xf32>
    %207 = vector.extract_strided_slice %178 {offsets = [16, 0], sizes = [16, 8], strides = [1, 1]} : vector<32x8xf32> to vector<16x8xf32>
    %208 = vector.extract_strided_slice %185 {offsets = [16, 0], sizes = [16, 8], strides = [1, 1]} : vector<32x8xf32> to vector<16x8xf32>
    %209 = arith.truncf %206 : vector<16x8xf32> to vector<16x8xbf16>
    %210 = arith.truncf %207 : vector<16x8xf32> to vector<16x8xbf16>
    %211 = tpu.transpose %210, [1, 0] : vector<16x8xbf16> -> vector<8x16xbf16>
    %cst_126 = arith.constant dense<0.000000e+00> : vector<16x16xf32>
    %212 = tpu.matmul %209, %211, %cst_126 {dimension_numbers = #tpu.dot_dimension_numbers<[1], [0], [0], [1], [0, 0, 1, 1], [], []>} : vector<16x8xbf16>, vector<8x16xbf16>, vector<16x16xf32> -> vector<16x16xf32>
    %cst_127 = arith.constant dense<0xFF800000> : vector<16xf32>
    %213 = vector.multi_reduction <maximumf>, %212, %cst_127 [1] : vector<16x16xf32> to vector<16xf32>
    %214 = vector.shape_cast %213 : vector<16xf32> to vector<16x1xf32>
    %215 = vector.broadcast %214 : vector<16x1xf32> to vector<16x16xf32>
    %216 = arith.subf %212, %215 : vector<16x16xf32>
    %217 = math.exp %216 : vector<16x16xf32>
    %cst_128 = arith.constant dense<0.000000e+00> : vector<16xf32>
    %218 = vector.multi_reduction <add>, %217, %cst_128 [1] : vector<16x16xf32> to vector<16xf32>
    %219 = vector.shape_cast %218 : vector<16xf32> to vector<16x1xf32>
    %220 = tpu.reciprocal %219 {approx = true} : vector<16x1xf32> -> vector<16x1xf32>
    %221 = vector.broadcast %220 : vector<16x1xf32> to vector<16x16xf32>
    %222 = arith.mulf %217, %221 : vector<16x16xf32>
    %223 = arith.truncf %222 : vector<16x16xf32> to vector<16x16xbf16>
    %224 = arith.truncf %208 : vector<16x8xf32> to vector<16x8xbf16>
    %cst_129 = arith.constant dense<0.000000e+00> : vector<16x8xf32>
    %225 = tpu.matmul %223, %224, %cst_129 {dimension_numbers = #tpu.dot_dimension_numbers<[1], [0], [0], [1], [0, 0, 1, 1], [], []>} : vector<16x16xbf16>, vector<16x8xbf16>, vector<16x8xf32> -> vector<16x8xf32>
    %226 = tpu.concatenate %205, %225 in 0 : vector<16x8xf32>, vector<16x8xf32> -> vector<32x8xf32>
    %227 = arith.truncf %226 : vector<32x8xf32> to vector<32x8xbf16>
    %c0_130 = arith.constant 0 : index
    %c2_131 = arith.constant 2 : index
    %c0_132 = arith.constant 0 : index
    %c0_133 = arith.constant 0 : index
    %228 = vector.load %arg12[%c0_130, %c2_131, %c0_132, %c0_133] : memref<2x4x8x32xbf16, #tpu.memory_space<vmem>>, vector<1x1x8x32xbf16>
    %229 = vector.shape_cast %228 : vector<1x1x8x32xbf16> to vector<8x32xbf16>
    %cst_134 = arith.constant dense<0.000000e+00> : vector<32x32xf32>
    %230 = tpu.matmul %227, %229, %cst_134 {dimension_numbers = #tpu.dot_dimension_numbers<[1], [0], [0], [1], [0, 0, 1, 1], [], []>} : vector<32x8xbf16>, vector<8x32xbf16>, vector<32x32xf32> -> vector<32x32xf32>
    %231 = arith.addf %164, %230 : vector<32x32xf32>
    %c0_135 = arith.constant 0 : index
    %c3 = arith.constant 3 : index
    %c0_136 = arith.constant 0 : index
    %c0_137 = arith.constant 0 : index
    %232 = vector.load %arg6[%c0_135, %c3, %c0_136, %c0_137] : memref<2x4x32x8xbf16, #tpu.memory_space<vmem>>, vector<1x1x32x8xbf16>
    %233 = vector.shape_cast %232 : vector<1x1x32x8xbf16> to vector<32x8xbf16>
    %cst_138 = arith.constant dense<0.000000e+00> : vector<32x8xf32>
    %234 = tpu.matmul %31, %233, %cst_138 {dimension_numbers = #tpu.dot_dimension_numbers<[1], [0], [0], [1], [0, 0, 1, 1], [], []>} : vector<32x32xbf16>, vector<32x8xbf16>, vector<32x8xf32> -> vector<32x8xf32>
    %c0_139 = arith.constant 0 : index
    %c3_140 = arith.constant 3 : index
    %c0_141 = arith.constant 0 : index
    %c0_142 = arith.constant 0 : index
    %235 = vector.load %arg7[%c0_139, %c3_140, %c0_141, %c0_142] : memref<2x4x1x8xf32, #tpu.memory_space<vmem>>, vector<1x1x1x8xf32>
    %236 = vector.shape_cast %235 : vector<1x1x1x8xf32> to vector<1x8xf32>
    %237 = vector.broadcast %236 : vector<1x8xf32> to vector<32x8xf32>
    %238 = arith.addf %234, %237 : vector<32x8xf32>
    %c0_143 = arith.constant 0 : index
    %c3_144 = arith.constant 3 : index
    %c0_145 = arith.constant 0 : index
    %c0_146 = arith.constant 0 : index
    %239 = vector.load %arg8[%c0_143, %c3_144, %c0_145, %c0_146] : memref<2x4x32x8xbf16, #tpu.memory_space<vmem>>, vector<1x1x32x8xbf16>
    %240 = vector.shape_cast %239 : vector<1x1x32x8xbf16> to vector<32x8xbf16>
    %cst_147 = arith.constant dense<0.000000e+00> : vector<32x8xf32>
    %241 = tpu.matmul %31, %240, %cst_147 {dimension_numbers = #tpu.dot_dimension_numbers<[1], [0], [0], [1], [0, 0, 1, 1], [], []>} : vector<32x32xbf16>, vector<32x8xbf16>, vector<32x8xf32> -> vector<32x8xf32>
    %c0_148 = arith.constant 0 : index
    %c3_149 = arith.constant 3 : index
    %c0_150 = arith.constant 0 : index
    %c0_151 = arith.constant 0 : index
    %242 = vector.load %arg9[%c0_148, %c3_149, %c0_150, %c0_151] : memref<2x4x1x8xf32, #tpu.memory_space<vmem>>, vector<1x1x1x8xf32>
    %243 = vector.shape_cast %242 : vector<1x1x1x8xf32> to vector<1x8xf32>
    %244 = vector.broadcast %243 : vector<1x8xf32> to vector<32x8xf32>
    %245 = arith.addf %241, %244 : vector<32x8xf32>
    %c0_152 = arith.constant 0 : index
    %c3_153 = arith.constant 3 : index
    %c0_154 = arith.constant 0 : index
    %c0_155 = arith.constant 0 : index
    %246 = vector.load %arg10[%c0_152, %c3_153, %c0_154, %c0_155] : memref<2x4x32x8xbf16, #tpu.memory_space<vmem>>, vector<1x1x32x8xbf16>
    %247 = vector.shape_cast %246 : vector<1x1x32x8xbf16> to vector<32x8xbf16>
    %cst_156 = arith.constant dense<0.000000e+00> : vector<32x8xf32>
    %248 = tpu.matmul %31, %247, %cst_156 {dimension_numbers = #tpu.dot_dimension_numbers<[1], [0], [0], [1], [0, 0, 1, 1], [], []>} : vector<32x32xbf16>, vector<32x8xbf16>, vector<32x8xf32> -> vector<32x8xf32>
    %c0_157 = arith.constant 0 : index
    %c3_158 = arith.constant 3 : index
    %c0_159 = arith.constant 0 : index
    %c0_160 = arith.constant 0 : index
    %249 = vector.load %arg11[%c0_157, %c3_158, %c0_159, %c0_160] : memref<2x4x1x8xf32, #tpu.memory_space<vmem>>, vector<1x1x1x8xf32>
    %250 = vector.shape_cast %249 : vector<1x1x1x8xf32> to vector<1x8xf32>
    %251 = vector.broadcast %250 : vector<1x8xf32> to vector<32x8xf32>
    %252 = arith.addf %248, %251 : vector<32x8xf32>
    %253 = vector.extract_strided_slice %238 {offsets = [0, 0], sizes = [16, 8], strides = [1, 1]} : vector<32x8xf32> to vector<16x8xf32>
    %254 = vector.extract_strided_slice %245 {offsets = [0, 0], sizes = [16, 8], strides = [1, 1]} : vector<32x8xf32> to vector<16x8xf32>
    %255 = vector.extract_strided_slice %252 {offsets = [0, 0], sizes = [16, 8], strides = [1, 1]} : vector<32x8xf32> to vector<16x8xf32>
    %256 = arith.truncf %253 : vector<16x8xf32> to vector<16x8xbf16>
    %257 = arith.truncf %254 : vector<16x8xf32> to vector<16x8xbf16>
    %258 = tpu.transpose %257, [1, 0] : vector<16x8xbf16> -> vector<8x16xbf16>
    %cst_161 = arith.constant dense<0.000000e+00> : vector<16x16xf32>
    %259 = tpu.matmul %256, %258, %cst_161 {dimension_numbers = #tpu.dot_dimension_numbers<[1], [0], [0], [1], [0, 0, 1, 1], [], []>} : vector<16x8xbf16>, vector<8x16xbf16>, vector<16x16xf32> -> vector<16x16xf32>
    %cst_162 = arith.constant dense<0xFF800000> : vector<16xf32>
    %260 = vector.multi_reduction <maximumf>, %259, %cst_162 [1] : vector<16x16xf32> to vector<16xf32>
    %261 = vector.shape_cast %260 : vector<16xf32> to vector<16x1xf32>
    %262 = vector.broadcast %261 : vector<16x1xf32> to vector<16x16xf32>
    %263 = arith.subf %259, %262 : vector<16x16xf32>
    %264 = math.exp %263 : vector<16x16xf32>
    %cst_163 = arith.constant dense<0.000000e+00> : vector<16xf32>
    %265 = vector.multi_reduction <add>, %264, %cst_163 [1] : vector<16x16xf32> to vector<16xf32>
    %266 = vector.shape_cast %265 : vector<16xf32> to vector<16x1xf32>
    %267 = tpu.reciprocal %266 {approx = true} : vector<16x1xf32> -> vector<16x1xf32>
    %268 = vector.broadcast %267 : vector<16x1xf32> to vector<16x16xf32>
    %269 = arith.mulf %264, %268 : vector<16x16xf32>
    %270 = arith.truncf %269 : vector<16x16xf32> to vector<16x16xbf16>
    %271 = arith.truncf %255 : vector<16x8xf32> to vector<16x8xbf16>
    %cst_164 = arith.constant dense<0.000000e+00> : vector<16x8xf32>
    %272 = tpu.matmul %270, %271, %cst_164 {dimension_numbers = #tpu.dot_dimension_numbers<[1], [0], [0], [1], [0, 0, 1, 1], [], []>} : vector<16x16xbf16>, vector<16x8xbf16>, vector<16x8xf32> -> vector<16x8xf32>
    %273 = vector.extract_strided_slice %238 {offsets = [16, 0], sizes = [16, 8], strides = [1, 1]} : vector<32x8xf32> to vector<16x8xf32>
    %274 = vector.extract_strided_slice %245 {offsets = [16, 0], sizes = [16, 8], strides = [1, 1]} : vector<32x8xf32> to vector<16x8xf32>
    %275 = vector.extract_strided_slice %252 {offsets = [16, 0], sizes = [16, 8], strides = [1, 1]} : vector<32x8xf32> to vector<16x8xf32>
    %276 = arith.truncf %273 : vector<16x8xf32> to vector<16x8xbf16>
    %277 = arith.truncf %274 : vector<16x8xf32> to vector<16x8xbf16>
    %278 = tpu.transpose %277, [1, 0] : vector<16x8xbf16> -> vector<8x16xbf16>
    %cst_165 = arith.constant dense<0.000000e+00> : vector<16x16xf32>
    %279 = tpu.matmul %276, %278, %cst_165 {dimension_numbers = #tpu.dot_dimension_numbers<[1], [0], [0], [1], [0, 0, 1, 1], [], []>} : vector<16x8xbf16>, vector<8x16xbf16>, vector<16x16xf32> -> vector<16x16xf32>
    %cst_166 = arith.constant dense<0xFF800000> : vector<16xf32>
    %280 = vector.multi_reduction <maximumf>, %279, %cst_166 [1] : vector<16x16xf32> to vector<16xf32>
    %281 = vector.shape_cast %280 : vector<16xf32> to vector<16x1xf32>
    %282 = vector.broadcast %281 : vector<16x1xf32> to vector<16x16xf32>
    %283 = arith.subf %279, %282 : vector<16x16xf32>
    %284 = math.exp %283 : vector<16x16xf32>
    %cst_167 = arith.constant dense<0.000000e+00> : vector<16xf32>
    %285 = vector.multi_reduction <add>, %284, %cst_167 [1] : vector<16x16xf32> to vector<16xf32>
    %286 = vector.shape_cast %285 : vector<16xf32> to vector<16x1xf32>
    %287 = tpu.reciprocal %286 {approx = true} : vector<16x1xf32> -> vector<16x1xf32>
    %288 = vector.broadcast %287 : vector<16x1xf32> to vector<16x16xf32>
    %289 = arith.mulf %284, %288 : vector<16x16xf32>
    %290 = arith.truncf %289 : vector<16x16xf32> to vector<16x16xbf16>
    %291 = arith.truncf %275 : vector<16x8xf32> to vector<16x8xbf16>
    %cst_168 = arith.constant dense<0.000000e+00> : vector<16x8xf32>
    %292 = tpu.matmul %290, %291, %cst_168 {dimension_numbers = #tpu.dot_dimension_numbers<[1], [0], [0], [1], [0, 0, 1, 1], [], []>} : vector<16x16xbf16>, vector<16x8xbf16>, vector<16x8xf32> -> vector<16x8xf32>
    %293 = tpu.concatenate %272, %292 in 0 : vector<16x8xf32>, vector<16x8xf32> -> vector<32x8xf32>
    %294 = arith.truncf %293 : vector<32x8xf32> to vector<32x8xbf16>
    %c0_169 = arith.constant 0 : index
    %c3_170 = arith.constant 3 : index
    %c0_171 = arith.constant 0 : index
    %c0_172 = arith.constant 0 : index
    %295 = vector.load %arg12[%c0_169, %c3_170, %c0_171, %c0_172] : memref<2x4x8x32xbf16, #tpu.memory_space<vmem>>, vector<1x1x8x32xbf16>
    %296 = vector.shape_cast %295 : vector<1x1x8x32xbf16> to vector<8x32xbf16>
    %cst_173 = arith.constant dense<0.000000e+00> : vector<32x32xf32>
    %297 = tpu.matmul %294, %296, %cst_173 {dimension_numbers = #tpu.dot_dimension_numbers<[1], [0], [0], [1], [0, 0, 1, 1], [], []>} : vector<32x8xbf16>, vector<8x32xbf16>, vector<32x32xf32> -> vector<32x32xf32>
    %298 = arith.addf %231, %297 : vector<32x32xf32>
    %299 = arith.addf %6, %298 : vector<32x32xf32>
    %c0_174 = arith.constant 0 : index
    %c0_175 = arith.constant 0 : index
    %c0_176 = arith.constant 0 : index
    %300 = vector.load %arg13[%c0_174, %c0_175, %c0_176] : memref<2x1x32xf32, #tpu.memory_space<vmem>>, vector<1x1x32xf32>
    %301 = vector.shape_cast %300 : vector<1x1x32xf32> to vector<1x32xf32>
    %302 = vector.broadcast %301 : vector<1x32xf32> to vector<32x32xf32>
    %303 = arith.addf %299, %302 : vector<32x32xf32>
    %c0_177 = arith.constant 0 : index
    %c0_178 = arith.constant 0 : index
    %c0_179 = arith.constant 0 : index
    %304 = vector.load %arg14[%c0_177, %c0_178, %c0_179] : memref<2x1x32xf32, #tpu.memory_space<vmem>>, vector<1x1x32xf32>
    %305 = vector.shape_cast %304 : vector<1x1x32xf32> to vector<1x32xf32>
    %c0_180 = arith.constant 0 : index
    %c0_181 = arith.constant 0 : index
    %c0_182 = arith.constant 0 : index
    %306 = vector.load %arg15[%c0_180, %c0_181, %c0_182] : memref<2x1x32xf32, #tpu.memory_space<vmem>>, vector<1x1x32xf32>
    %307 = vector.shape_cast %306 : vector<1x1x32xf32> to vector<1x32xf32>
    %cst_183 = arith.constant dense<0.000000e+00> : vector<32xf32>
    %308 = vector.multi_reduction <add>, %303, %cst_183 [1] : vector<32x32xf32> to vector<32xf32>
    %309 = vector.shape_cast %308 : vector<32xf32> to vector<32x1xf32>
    %cst_184 = arith.constant 3.200000e+01 : f32
    %310 = vector.broadcast %cst_184 : f32 to vector<32x1xf32>
    %311 = arith.divf %309, %310 : vector<32x1xf32>
    %312 = vector.broadcast %311 : vector<32x1xf32> to vector<32x32xf32>
    %313 = arith.subf %303, %312 : vector<32x32xf32>
    %314 = arith.mulf %313, %313 : vector<32x32xf32>
    %cst_185 = arith.constant dense<0.000000e+00> : vector<32xf32>
    %315 = vector.multi_reduction <add>, %314, %cst_185 [1] : vector<32x32xf32> to vector<32xf32>
    %316 = vector.shape_cast %315 : vector<32xf32> to vector<32x1xf32>
    %cst_186 = arith.constant 3.200000e+01 : f32
    %317 = vector.broadcast %cst_186 : f32 to vector<32x1xf32>
    %318 = arith.divf %316, %317 : vector<32x1xf32>
    %cst_187 = arith.constant 9.99999997E-7 : f32
    %319 = vector.broadcast %cst_187 : f32 to vector<32x1xf32>
    %320 = arith.addf %318, %319 : vector<32x1xf32>
    %321 = math.rsqrt %320 : vector<32x1xf32>
    %322 = vector.broadcast %321 : vector<32x1xf32> to vector<32x32xf32>
    %323 = arith.mulf %313, %322 : vector<32x32xf32>
    %324 = vector.broadcast %305 : vector<1x32xf32> to vector<32x32xf32>
    %325 = arith.mulf %323, %324 : vector<32x32xf32>
    %326 = vector.broadcast %307 : vector<1x32xf32> to vector<32x32xf32>
    %327 = arith.addf %325, %326 : vector<32x32xf32>
    %c0_188 = arith.constant 0 : index
    %c0_189 = arith.constant 0 : index
    %c0_190 = arith.constant 0 : index
    %328 = vector.load %arg16[%c0_188, %c0_189, %c0_190] : memref<2x32x64xbf16, #tpu.memory_space<vmem>>, vector<1x32x64xbf16>
    %329 = vector.shape_cast %328 : vector<1x32x64xbf16> to vector<32x64xbf16>
    %330 = arith.truncf %327 : vector<32x32xf32> to vector<32x32xbf16>
    %cst_191 = arith.constant dense<0.000000e+00> : vector<32x64xf32>
    %331 = tpu.matmul %330, %329, %cst_191 {dimension_numbers = #tpu.dot_dimension_numbers<[1], [0], [0], [1], [0, 0, 1, 1], [], []>} : vector<32x32xbf16>, vector<32x64xbf16>, vector<32x64xf32> -> vector<32x64xf32>
    %c0_192 = arith.constant 0 : index
    %c0_193 = arith.constant 0 : index
    %c0_194 = arith.constant 0 : index
    %332 = vector.load %arg17[%c0_192, %c0_193, %c0_194] : memref<2x1x64xf32, #tpu.memory_space<vmem>>, vector<1x1x64xf32>
    %333 = vector.shape_cast %332 : vector<1x1x64xf32> to vector<1x64xf32>
    %334 = vector.broadcast %333 : vector<1x64xf32> to vector<32x64xf32>
    %335 = arith.addf %331, %334 : vector<32x64xf32>
    %cst_195 = arith.constant 5.000000e-01 : f32
    %336 = vector.broadcast %cst_195 : f32 to vector<32x64xf32>
    %337 = arith.mulf %336, %335 : vector<32x64xf32>
    %cst_196 = arith.constant 4.471500e-02 : f32
    %338 = vector.broadcast %cst_196 : f32 to vector<32x64xf32>
    %339 = arith.mulf %338, %335 : vector<32x64xf32>
    %340 = arith.mulf %339, %335 : vector<32x64xf32>
    %341 = arith.mulf %340, %335 : vector<32x64xf32>
    %342 = arith.addf %335, %341 : vector<32x64xf32>
    %cst_197 = arith.constant 0.797884583 : f32
    %343 = vector.broadcast %cst_197 : f32 to vector<32x64xf32>
    %344 = arith.mulf %343, %342 : vector<32x64xf32>
    %345 = math.tanh %344 : vector<32x64xf32>
    %cst_198 = arith.constant 1.000000e+00 : f32
    %346 = vector.broadcast %cst_198 : f32 to vector<32x64xf32>
    %347 = arith.addf %346, %345 : vector<32x64xf32>
    %348 = arith.mulf %337, %347 : vector<32x64xf32>
    %c0_199 = arith.constant 0 : index
    %c0_200 = arith.constant 0 : index
    %c0_201 = arith.constant 0 : index
    %349 = vector.load %arg18[%c0_199, %c0_200, %c0_201] : memref<2x64x32xbf16, #tpu.memory_space<vmem>>, vector<1x64x32xbf16>
    %350 = vector.shape_cast %349 : vector<1x64x32xbf16> to vector<64x32xbf16>
    %351 = arith.truncf %348 : vector<32x64xf32> to vector<32x64xbf16>
    %cst_202 = arith.constant dense<0.000000e+00> : vector<32x32xf32>
    %352 = tpu.matmul %351, %350, %cst_202 {dimension_numbers = #tpu.dot_dimension_numbers<[1], [0], [0], [1], [0, 0, 1, 1], [], []>} : vector<32x64xbf16>, vector<64x32xbf16>, vector<32x32xf32> -> vector<32x32xf32>
    %353 = arith.addf %303, %352 : vector<32x32xf32>
    %c0_203 = arith.constant 0 : index
    %c0_204 = arith.constant 0 : index
    %c0_205 = arith.constant 0 : index
    %354 = vector.load %arg19[%c0_203, %c0_204, %c0_205] : memref<2x1x32xf32, #tpu.memory_space<vmem>>, vector<1x1x32xf32>
    %355 = vector.shape_cast %354 : vector<1x1x32xf32> to vector<1x32xf32>
    %356 = vector.broadcast %355 : vector<1x32xf32> to vector<32x32xf32>
    %357 = arith.addf %353, %356 : vector<32x32xf32>
    %c1_206 = arith.constant 1 : index
    %c0_207 = arith.constant 0 : index
    %c0_208 = arith.constant 0 : index
    %358 = vector.load %arg4[%c1_206, %c0_207, %c0_208] : memref<2x1x32xf32, #tpu.memory_space<vmem>>, vector<1x1x32xf32>
    %359 = vector.shape_cast %358 : vector<1x1x32xf32> to vector<1x32xf32>
    %c1_209 = arith.constant 1 : index
    %c0_210 = arith.constant 0 : index
    %c0_211 = arith.constant 0 : index
    %360 = vector.load %arg5[%c1_209, %c0_210, %c0_211] : memref<2x1x32xf32, #tpu.memory_space<vmem>>, vector<1x1x32xf32>
    %361 = vector.shape_cast %360 : vector<1x1x32xf32> to vector<1x32xf32>
    %cst_212 = arith.constant dense<0.000000e+00> : vector<32xf32>
    %362 = vector.multi_reduction <add>, %357, %cst_212 [1] : vector<32x32xf32> to vector<32xf32>
    %363 = vector.shape_cast %362 : vector<32xf32> to vector<32x1xf32>
    %cst_213 = arith.constant 3.200000e+01 : f32
    %364 = vector.broadcast %cst_213 : f32 to vector<32x1xf32>
    %365 = arith.divf %363, %364 : vector<32x1xf32>
    %366 = vector.broadcast %365 : vector<32x1xf32> to vector<32x32xf32>
    %367 = arith.subf %357, %366 : vector<32x32xf32>
    %368 = arith.mulf %367, %367 : vector<32x32xf32>
    %cst_214 = arith.constant dense<0.000000e+00> : vector<32xf32>
    %369 = vector.multi_reduction <add>, %368, %cst_214 [1] : vector<32x32xf32> to vector<32xf32>
    %370 = vector.shape_cast %369 : vector<32xf32> to vector<32x1xf32>
    %cst_215 = arith.constant 3.200000e+01 : f32
    %371 = vector.broadcast %cst_215 : f32 to vector<32x1xf32>
    %372 = arith.divf %370, %371 : vector<32x1xf32>
    %cst_216 = arith.constant 9.99999997E-7 : f32
    %373 = vector.broadcast %cst_216 : f32 to vector<32x1xf32>
    %374 = arith.addf %372, %373 : vector<32x1xf32>
    %375 = math.rsqrt %374 : vector<32x1xf32>
    %376 = vector.broadcast %375 : vector<32x1xf32> to vector<32x32xf32>
    %377 = arith.mulf %367, %376 : vector<32x32xf32>
    %378 = vector.broadcast %359 : vector<1x32xf32> to vector<32x32xf32>
    %379 = arith.mulf %377, %378 : vector<32x32xf32>
    %380 = vector.broadcast %361 : vector<1x32xf32> to vector<32x32xf32>
    %381 = arith.addf %379, %380 : vector<32x32xf32>
    %382 = arith.truncf %381 : vector<32x32xf32> to vector<32x32xbf16>
    %c1_217 = arith.constant 1 : index
    %c0_218 = arith.constant 0 : index
    %c0_219 = arith.constant 0 : index
    %c0_220 = arith.constant 0 : index
    %383 = vector.load %arg6[%c1_217, %c0_218, %c0_219, %c0_220] : memref<2x4x32x8xbf16, #tpu.memory_space<vmem>>, vector<1x1x32x8xbf16>
    %384 = vector.shape_cast %383 : vector<1x1x32x8xbf16> to vector<32x8xbf16>
    %cst_221 = arith.constant dense<0.000000e+00> : vector<32x8xf32>
    %385 = tpu.matmul %382, %384, %cst_221 {dimension_numbers = #tpu.dot_dimension_numbers<[1], [0], [0], [1], [0, 0, 1, 1], [], []>} : vector<32x32xbf16>, vector<32x8xbf16>, vector<32x8xf32> -> vector<32x8xf32>
    %c1_222 = arith.constant 1 : index
    %c0_223 = arith.constant 0 : index
    %c0_224 = arith.constant 0 : index
    %c0_225 = arith.constant 0 : index
    %386 = vector.load %arg7[%c1_222, %c0_223, %c0_224, %c0_225] : memref<2x4x1x8xf32, #tpu.memory_space<vmem>>, vector<1x1x1x8xf32>
    %387 = vector.shape_cast %386 : vector<1x1x1x8xf32> to vector<1x8xf32>
    %388 = vector.broadcast %387 : vector<1x8xf32> to vector<32x8xf32>
    %389 = arith.addf %385, %388 : vector<32x8xf32>
    %c1_226 = arith.constant 1 : index
    %c0_227 = arith.constant 0 : index
    %c0_228 = arith.constant 0 : index
    %c0_229 = arith.constant 0 : index
    %390 = vector.load %arg8[%c1_226, %c0_227, %c0_228, %c0_229] : memref<2x4x32x8xbf16, #tpu.memory_space<vmem>>, vector<1x1x32x8xbf16>
    %391 = vector.shape_cast %390 : vector<1x1x32x8xbf16> to vector<32x8xbf16>
    %cst_230 = arith.constant dense<0.000000e+00> : vector<32x8xf32>
    %392 = tpu.matmul %382, %391, %cst_230 {dimension_numbers = #tpu.dot_dimension_numbers<[1], [0], [0], [1], [0, 0, 1, 1], [], []>} : vector<32x32xbf16>, vector<32x8xbf16>, vector<32x8xf32> -> vector<32x8xf32>
    %c1_231 = arith.constant 1 : index
    %c0_232 = arith.constant 0 : index
    %c0_233 = arith.constant 0 : index
    %c0_234 = arith.constant 0 : index
    %393 = vector.load %arg9[%c1_231, %c0_232, %c0_233, %c0_234] : memref<2x4x1x8xf32, #tpu.memory_space<vmem>>, vector<1x1x1x8xf32>
    %394 = vector.shape_cast %393 : vector<1x1x1x8xf32> to vector<1x8xf32>
    %395 = vector.broadcast %394 : vector<1x8xf32> to vector<32x8xf32>
    %396 = arith.addf %392, %395 : vector<32x8xf32>
    %c1_235 = arith.constant 1 : index
    %c0_236 = arith.constant 0 : index
    %c0_237 = arith.constant 0 : index
    %c0_238 = arith.constant 0 : index
    %397 = vector.load %arg10[%c1_235, %c0_236, %c0_237, %c0_238] : memref<2x4x32x8xbf16, #tpu.memory_space<vmem>>, vector<1x1x32x8xbf16>
    %398 = vector.shape_cast %397 : vector<1x1x32x8xbf16> to vector<32x8xbf16>
    %cst_239 = arith.constant dense<0.000000e+00> : vector<32x8xf32>
    %399 = tpu.matmul %382, %398, %cst_239 {dimension_numbers = #tpu.dot_dimension_numbers<[1], [0], [0], [1], [0, 0, 1, 1], [], []>} : vector<32x32xbf16>, vector<32x8xbf16>, vector<32x8xf32> -> vector<32x8xf32>
    %c1_240 = arith.constant 1 : index
    %c0_241 = arith.constant 0 : index
    %c0_242 = arith.constant 0 : index
    %c0_243 = arith.constant 0 : index
    %400 = vector.load %arg11[%c1_240, %c0_241, %c0_242, %c0_243] : memref<2x4x1x8xf32, #tpu.memory_space<vmem>>, vector<1x1x1x8xf32>
    %401 = vector.shape_cast %400 : vector<1x1x1x8xf32> to vector<1x8xf32>
    %402 = vector.broadcast %401 : vector<1x8xf32> to vector<32x8xf32>
    %403 = arith.addf %399, %402 : vector<32x8xf32>
    %404 = vector.extract_strided_slice %389 {offsets = [0, 0], sizes = [16, 8], strides = [1, 1]} : vector<32x8xf32> to vector<16x8xf32>
    %405 = vector.extract_strided_slice %396 {offsets = [0, 0], sizes = [16, 8], strides = [1, 1]} : vector<32x8xf32> to vector<16x8xf32>
    %406 = vector.extract_strided_slice %403 {offsets = [0, 0], sizes = [16, 8], strides = [1, 1]} : vector<32x8xf32> to vector<16x8xf32>
    %407 = arith.truncf %404 : vector<16x8xf32> to vector<16x8xbf16>
    %408 = arith.truncf %405 : vector<16x8xf32> to vector<16x8xbf16>
    %409 = tpu.transpose %408, [1, 0] : vector<16x8xbf16> -> vector<8x16xbf16>
    %cst_244 = arith.constant dense<0.000000e+00> : vector<16x16xf32>
    %410 = tpu.matmul %407, %409, %cst_244 {dimension_numbers = #tpu.dot_dimension_numbers<[1], [0], [0], [1], [0, 0, 1, 1], [], []>} : vector<16x8xbf16>, vector<8x16xbf16>, vector<16x16xf32> -> vector<16x16xf32>
    %cst_245 = arith.constant dense<0xFF800000> : vector<16xf32>
    %411 = vector.multi_reduction <maximumf>, %410, %cst_245 [1] : vector<16x16xf32> to vector<16xf32>
    %412 = vector.shape_cast %411 : vector<16xf32> to vector<16x1xf32>
    %413 = vector.broadcast %412 : vector<16x1xf32> to vector<16x16xf32>
    %414 = arith.subf %410, %413 : vector<16x16xf32>
    %415 = math.exp %414 : vector<16x16xf32>
    %cst_246 = arith.constant dense<0.000000e+00> : vector<16xf32>
    %416 = vector.multi_reduction <add>, %415, %cst_246 [1] : vector<16x16xf32> to vector<16xf32>
    %417 = vector.shape_cast %416 : vector<16xf32> to vector<16x1xf32>
    %418 = tpu.reciprocal %417 {approx = true} : vector<16x1xf32> -> vector<16x1xf32>
    %419 = vector.broadcast %418 : vector<16x1xf32> to vector<16x16xf32>
    %420 = arith.mulf %415, %419 : vector<16x16xf32>
    %421 = arith.truncf %420 : vector<16x16xf32> to vector<16x16xbf16>
    %422 = arith.truncf %406 : vector<16x8xf32> to vector<16x8xbf16>
    %cst_247 = arith.constant dense<0.000000e+00> : vector<16x8xf32>
    %423 = tpu.matmul %421, %422, %cst_247 {dimension_numbers = #tpu.dot_dimension_numbers<[1], [0], [0], [1], [0, 0, 1, 1], [], []>} : vector<16x16xbf16>, vector<16x8xbf16>, vector<16x8xf32> -> vector<16x8xf32>
    %424 = vector.extract_strided_slice %389 {offsets = [16, 0], sizes = [16, 8], strides = [1, 1]} : vector<32x8xf32> to vector<16x8xf32>
    %425 = vector.extract_strided_slice %396 {offsets = [16, 0], sizes = [16, 8], strides = [1, 1]} : vector<32x8xf32> to vector<16x8xf32>
    %426 = vector.extract_strided_slice %403 {offsets = [16, 0], sizes = [16, 8], strides = [1, 1]} : vector<32x8xf32> to vector<16x8xf32>
    %427 = arith.truncf %424 : vector<16x8xf32> to vector<16x8xbf16>
    %428 = arith.truncf %425 : vector<16x8xf32> to vector<16x8xbf16>
    %429 = tpu.transpose %428, [1, 0] : vector<16x8xbf16> -> vector<8x16xbf16>
    %cst_248 = arith.constant dense<0.000000e+00> : vector<16x16xf32>
    %430 = tpu.matmul %427, %429, %cst_248 {dimension_numbers = #tpu.dot_dimension_numbers<[1], [0], [0], [1], [0, 0, 1, 1], [], []>} : vector<16x8xbf16>, vector<8x16xbf16>, vector<16x16xf32> -> vector<16x16xf32>
    %cst_249 = arith.constant dense<0xFF800000> : vector<16xf32>
    %431 = vector.multi_reduction <maximumf>, %430, %cst_249 [1] : vector<16x16xf32> to vector<16xf32>
    %432 = vector.shape_cast %431 : vector<16xf32> to vector<16x1xf32>
    %433 = vector.broadcast %432 : vector<16x1xf32> to vector<16x16xf32>
    %434 = arith.subf %430, %433 : vector<16x16xf32>
    %435 = math.exp %434 : vector<16x16xf32>
    %cst_250 = arith.constant dense<0.000000e+00> : vector<16xf32>
    %436 = vector.multi_reduction <add>, %435, %cst_250 [1] : vector<16x16xf32> to vector<16xf32>
    %437 = vector.shape_cast %436 : vector<16xf32> to vector<16x1xf32>
    %438 = tpu.reciprocal %437 {approx = true} : vector<16x1xf32> -> vector<16x1xf32>
    %439 = vector.broadcast %438 : vector<16x1xf32> to vector<16x16xf32>
    %440 = arith.mulf %435, %439 : vector<16x16xf32>
    %441 = arith.truncf %440 : vector<16x16xf32> to vector<16x16xbf16>
    %442 = arith.truncf %426 : vector<16x8xf32> to vector<16x8xbf16>
    %cst_251 = arith.constant dense<0.000000e+00> : vector<16x8xf32>
    %443 = tpu.matmul %441, %442, %cst_251 {dimension_numbers = #tpu.dot_dimension_numbers<[1], [0], [0], [1], [0, 0, 1, 1], [], []>} : vector<16x16xbf16>, vector<16x8xbf16>, vector<16x8xf32> -> vector<16x8xf32>
    %444 = tpu.concatenate %423, %443 in 0 : vector<16x8xf32>, vector<16x8xf32> -> vector<32x8xf32>
    %445 = arith.truncf %444 : vector<32x8xf32> to vector<32x8xbf16>
    %c1_252 = arith.constant 1 : index
    %c0_253 = arith.constant 0 : index
    %c0_254 = arith.constant 0 : index
    %c0_255 = arith.constant 0 : index
    %446 = vector.load %arg12[%c1_252, %c0_253, %c0_254, %c0_255] : memref<2x4x8x32xbf16, #tpu.memory_space<vmem>>, vector<1x1x8x32xbf16>
    %447 = vector.shape_cast %446 : vector<1x1x8x32xbf16> to vector<8x32xbf16>
    %cst_256 = arith.constant dense<0.000000e+00> : vector<32x32xf32>
    %448 = tpu.matmul %445, %447, %cst_256 {dimension_numbers = #tpu.dot_dimension_numbers<[1], [0], [0], [1], [0, 0, 1, 1], [], []>} : vector<32x8xbf16>, vector<8x32xbf16>, vector<32x32xf32> -> vector<32x32xf32>
    %c1_257 = arith.constant 1 : index
    %c1_258 = arith.constant 1 : index
    %c0_259 = arith.constant 0 : index
    %c0_260 = arith.constant 0 : index
    %449 = vector.load %arg6[%c1_257, %c1_258, %c0_259, %c0_260] : memref<2x4x32x8xbf16, #tpu.memory_space<vmem>>, vector<1x1x32x8xbf16>
    %450 = vector.shape_cast %449 : vector<1x1x32x8xbf16> to vector<32x8xbf16>
    %cst_261 = arith.constant dense<0.000000e+00> : vector<32x8xf32>
    %451 = tpu.matmul %382, %450, %cst_261 {dimension_numbers = #tpu.dot_dimension_numbers<[1], [0], [0], [1], [0, 0, 1, 1], [], []>} : vector<32x32xbf16>, vector<32x8xbf16>, vector<32x8xf32> -> vector<32x8xf32>
    %c1_262 = arith.constant 1 : index
    %c1_263 = arith.constant 1 : index
    %c0_264 = arith.constant 0 : index
    %c0_265 = arith.constant 0 : index
    %452 = vector.load %arg7[%c1_262, %c1_263, %c0_264, %c0_265] : memref<2x4x1x8xf32, #tpu.memory_space<vmem>>, vector<1x1x1x8xf32>
    %453 = vector.shape_cast %452 : vector<1x1x1x8xf32> to vector<1x8xf32>
    %454 = vector.broadcast %453 : vector<1x8xf32> to vector<32x8xf32>
    %455 = arith.addf %451, %454 : vector<32x8xf32>
    %c1_266 = arith.constant 1 : index
    %c1_267 = arith.constant 1 : index
    %c0_268 = arith.constant 0 : index
    %c0_269 = arith.constant 0 : index
    %456 = vector.load %arg8[%c1_266, %c1_267, %c0_268, %c0_269] : memref<2x4x32x8xbf16, #tpu.memory_space<vmem>>, vector<1x1x32x8xbf16>
    %457 = vector.shape_cast %456 : vector<1x1x32x8xbf16> to vector<32x8xbf16>
    %cst_270 = arith.constant dense<0.000000e+00> : vector<32x8xf32>
    %458 = tpu.matmul %382, %457, %cst_270 {dimension_numbers = #tpu.dot_dimension_numbers<[1], [0], [0], [1], [0, 0, 1, 1], [], []>} : vector<32x32xbf16>, vector<32x8xbf16>, vector<32x8xf32> -> vector<32x8xf32>
    %c1_271 = arith.constant 1 : index
    %c1_272 = arith.constant 1 : index
    %c0_273 = arith.constant 0 : index
    %c0_274 = arith.constant 0 : index
    %459 = vector.load %arg9[%c1_271, %c1_272, %c0_273, %c0_274] : memref<2x4x1x8xf32, #tpu.memory_space<vmem>>, vector<1x1x1x8xf32>
    %460 = vector.shape_cast %459 : vector<1x1x1x8xf32> to vector<1x8xf32>
    %461 = vector.broadcast %460 : vector<1x8xf32> to vector<32x8xf32>
    %462 = arith.addf %458, %461 : vector<32x8xf32>
    %c1_275 = arith.constant 1 : index
    %c1_276 = arith.constant 1 : index
    %c0_277 = arith.constant 0 : index
    %c0_278 = arith.constant 0 : index
    %463 = vector.load %arg10[%c1_275, %c1_276, %c0_277, %c0_278] : memref<2x4x32x8xbf16, #tpu.memory_space<vmem>>, vector<1x1x32x8xbf16>
    %464 = vector.shape_cast %463 : vector<1x1x32x8xbf16> to vector<32x8xbf16>
    %cst_279 = arith.constant dense<0.000000e+00> : vector<32x8xf32>
    %465 = tpu.matmul %382, %464, %cst_279 {dimension_numbers = #tpu.dot_dimension_numbers<[1], [0], [0], [1], [0, 0, 1, 1], [], []>} : vector<32x32xbf16>, vector<32x8xbf16>, vector<32x8xf32> -> vector<32x8xf32>
    %c1_280 = arith.constant 1 : index
    %c1_281 = arith.constant 1 : index
    %c0_282 = arith.constant 0 : index
    %c0_283 = arith.constant 0 : index
    %466 = vector.load %arg11[%c1_280, %c1_281, %c0_282, %c0_283] : memref<2x4x1x8xf32, #tpu.memory_space<vmem>>, vector<1x1x1x8xf32>
    %467 = vector.shape_cast %466 : vector<1x1x1x8xf32> to vector<1x8xf32>
    %468 = vector.broadcast %467 : vector<1x8xf32> to vector<32x8xf32>
    %469 = arith.addf %465, %468 : vector<32x8xf32>
    %470 = vector.extract_strided_slice %455 {offsets = [0, 0], sizes = [16, 8], strides = [1, 1]} : vector<32x8xf32> to vector<16x8xf32>
    %471 = vector.extract_strided_slice %462 {offsets = [0, 0], sizes = [16, 8], strides = [1, 1]} : vector<32x8xf32> to vector<16x8xf32>
    %472 = vector.extract_strided_slice %469 {offsets = [0, 0], sizes = [16, 8], strides = [1, 1]} : vector<32x8xf32> to vector<16x8xf32>
    %473 = arith.truncf %470 : vector<16x8xf32> to vector<16x8xbf16>
    %474 = arith.truncf %471 : vector<16x8xf32> to vector<16x8xbf16>
    %475 = tpu.transpose %474, [1, 0] : vector<16x8xbf16> -> vector<8x16xbf16>
    %cst_284 = arith.constant dense<0.000000e+00> : vector<16x16xf32>
    %476 = tpu.matmul %473, %475, %cst_284 {dimension_numbers = #tpu.dot_dimension_numbers<[1], [0], [0], [1], [0, 0, 1, 1], [], []>} : vector<16x8xbf16>, vector<8x16xbf16>, vector<16x16xf32> -> vector<16x16xf32>
    %cst_285 = arith.constant dense<0xFF800000> : vector<16xf32>
    %477 = vector.multi_reduction <maximumf>, %476, %cst_285 [1] : vector<16x16xf32> to vector<16xf32>
    %478 = vector.shape_cast %477 : vector<16xf32> to vector<16x1xf32>
    %479 = vector.broadcast %478 : vector<16x1xf32> to vector<16x16xf32>
    %480 = arith.subf %476, %479 : vector<16x16xf32>
    %481 = math.exp %480 : vector<16x16xf32>
    %cst_286 = arith.constant dense<0.000000e+00> : vector<16xf32>
    %482 = vector.multi_reduction <add>, %481, %cst_286 [1] : vector<16x16xf32> to vector<16xf32>
    %483 = vector.shape_cast %482 : vector<16xf32> to vector<16x1xf32>
    %484 = tpu.reciprocal %483 {approx = true} : vector<16x1xf32> -> vector<16x1xf32>
    %485 = vector.broadcast %484 : vector<16x1xf32> to vector<16x16xf32>
    %486 = arith.mulf %481, %485 : vector<16x16xf32>
    %487 = arith.truncf %486 : vector<16x16xf32> to vector<16x16xbf16>
    %488 = arith.truncf %472 : vector<16x8xf32> to vector<16x8xbf16>
    %cst_287 = arith.constant dense<0.000000e+00> : vector<16x8xf32>
    %489 = tpu.matmul %487, %488, %cst_287 {dimension_numbers = #tpu.dot_dimension_numbers<[1], [0], [0], [1], [0, 0, 1, 1], [], []>} : vector<16x16xbf16>, vector<16x8xbf16>, vector<16x8xf32> -> vector<16x8xf32>
    %490 = vector.extract_strided_slice %455 {offsets = [16, 0], sizes = [16, 8], strides = [1, 1]} : vector<32x8xf32> to vector<16x8xf32>
    %491 = vector.extract_strided_slice %462 {offsets = [16, 0], sizes = [16, 8], strides = [1, 1]} : vector<32x8xf32> to vector<16x8xf32>
    %492 = vector.extract_strided_slice %469 {offsets = [16, 0], sizes = [16, 8], strides = [1, 1]} : vector<32x8xf32> to vector<16x8xf32>
    %493 = arith.truncf %490 : vector<16x8xf32> to vector<16x8xbf16>
    %494 = arith.truncf %491 : vector<16x8xf32> to vector<16x8xbf16>
    %495 = tpu.transpose %494, [1, 0] : vector<16x8xbf16> -> vector<8x16xbf16>
    %cst_288 = arith.constant dense<0.000000e+00> : vector<16x16xf32>
    %496 = tpu.matmul %493, %495, %cst_288 {dimension_numbers = #tpu.dot_dimension_numbers<[1], [0], [0], [1], [0, 0, 1, 1], [], []>} : vector<16x8xbf16>, vector<8x16xbf16>, vector<16x16xf32> -> vector<16x16xf32>
    %cst_289 = arith.constant dense<0xFF800000> : vector<16xf32>
    %497 = vector.multi_reduction <maximumf>, %496, %cst_289 [1] : vector<16x16xf32> to vector<16xf32>
    %498 = vector.shape_cast %497 : vector<16xf32> to vector<16x1xf32>
    %499 = vector.broadcast %498 : vector<16x1xf32> to vector<16x16xf32>
    %500 = arith.subf %496, %499 : vector<16x16xf32>
    %501 = math.exp %500 : vector<16x16xf32>
    %cst_290 = arith.constant dense<0.000000e+00> : vector<16xf32>
    %502 = vector.multi_reduction <add>, %501, %cst_290 [1] : vector<16x16xf32> to vector<16xf32>
    %503 = vector.shape_cast %502 : vector<16xf32> to vector<16x1xf32>
    %504 = tpu.reciprocal %503 {approx = true} : vector<16x1xf32> -> vector<16x1xf32>
    %505 = vector.broadcast %504 : vector<16x1xf32> to vector<16x16xf32>
    %506 = arith.mulf %501, %505 : vector<16x16xf32>
    %507 = arith.truncf %506 : vector<16x16xf32> to vector<16x16xbf16>
    %508 = arith.truncf %492 : vector<16x8xf32> to vector<16x8xbf16>
    %cst_291 = arith.constant dense<0.000000e+00> : vector<16x8xf32>
    %509 = tpu.matmul %507, %508, %cst_291 {dimension_numbers = #tpu.dot_dimension_numbers<[1], [0], [0], [1], [0, 0, 1, 1], [], []>} : vector<16x16xbf16>, vector<16x8xbf16>, vector<16x8xf32> -> vector<16x8xf32>
    %510 = tpu.concatenate %489, %509 in 0 : vector<16x8xf32>, vector<16x8xf32> -> vector<32x8xf32>
    %511 = arith.truncf %510 : vector<32x8xf32> to vector<32x8xbf16>
    %c1_292 = arith.constant 1 : index
    %c1_293 = arith.constant 1 : index
    %c0_294 = arith.constant 0 : index
    %c0_295 = arith.constant 0 : index
    %512 = vector.load %arg12[%c1_292, %c1_293, %c0_294, %c0_295] : memref<2x4x8x32xbf16, #tpu.memory_space<vmem>>, vector<1x1x8x32xbf16>
    %513 = vector.shape_cast %512 : vector<1x1x8x32xbf16> to vector<8x32xbf16>
    %cst_296 = arith.constant dense<0.000000e+00> : vector<32x32xf32>
    %514 = tpu.matmul %511, %513, %cst_296 {dimension_numbers = #tpu.dot_dimension_numbers<[1], [0], [0], [1], [0, 0, 1, 1], [], []>} : vector<32x8xbf16>, vector<8x32xbf16>, vector<32x32xf32> -> vector<32x32xf32>
    %515 = arith.addf %448, %514 : vector<32x32xf32>
    %c1_297 = arith.constant 1 : index
    %c2_298 = arith.constant 2 : index
    %c0_299 = arith.constant 0 : index
    %c0_300 = arith.constant 0 : index
    %516 = vector.load %arg6[%c1_297, %c2_298, %c0_299, %c0_300] : memref<2x4x32x8xbf16, #tpu.memory_space<vmem>>, vector<1x1x32x8xbf16>
    %517 = vector.shape_cast %516 : vector<1x1x32x8xbf16> to vector<32x8xbf16>
    %cst_301 = arith.constant dense<0.000000e+00> : vector<32x8xf32>
    %518 = tpu.matmul %382, %517, %cst_301 {dimension_numbers = #tpu.dot_dimension_numbers<[1], [0], [0], [1], [0, 0, 1, 1], [], []>} : vector<32x32xbf16>, vector<32x8xbf16>, vector<32x8xf32> -> vector<32x8xf32>
    %c1_302 = arith.constant 1 : index
    %c2_303 = arith.constant 2 : index
    %c0_304 = arith.constant 0 : index
    %c0_305 = arith.constant 0 : index
    %519 = vector.load %arg7[%c1_302, %c2_303, %c0_304, %c0_305] : memref<2x4x1x8xf32, #tpu.memory_space<vmem>>, vector<1x1x1x8xf32>
    %520 = vector.shape_cast %519 : vector<1x1x1x8xf32> to vector<1x8xf32>
    %521 = vector.broadcast %520 : vector<1x8xf32> to vector<32x8xf32>
    %522 = arith.addf %518, %521 : vector<32x8xf32>
    %c1_306 = arith.constant 1 : index
    %c2_307 = arith.constant 2 : index
    %c0_308 = arith.constant 0 : index
    %c0_309 = arith.constant 0 : index
    %523 = vector.load %arg8[%c1_306, %c2_307, %c0_308, %c0_309] : memref<2x4x32x8xbf16, #tpu.memory_space<vmem>>, vector<1x1x32x8xbf16>
    %524 = vector.shape_cast %523 : vector<1x1x32x8xbf16> to vector<32x8xbf16>
    %cst_310 = arith.constant dense<0.000000e+00> : vector<32x8xf32>
    %525 = tpu.matmul %382, %524, %cst_310 {dimension_numbers = #tpu.dot_dimension_numbers<[1], [0], [0], [1], [0, 0, 1, 1], [], []>} : vector<32x32xbf16>, vector<32x8xbf16>, vector<32x8xf32> -> vector<32x8xf32>
    %c1_311 = arith.constant 1 : index
    %c2_312 = arith.constant 2 : index
    %c0_313 = arith.constant 0 : index
    %c0_314 = arith.constant 0 : index
    %526 = vector.load %arg9[%c1_311, %c2_312, %c0_313, %c0_314] : memref<2x4x1x8xf32, #tpu.memory_space<vmem>>, vector<1x1x1x8xf32>
    %527 = vector.shape_cast %526 : vector<1x1x1x8xf32> to vector<1x8xf32>
    %528 = vector.broadcast %527 : vector<1x8xf32> to vector<32x8xf32>
    %529 = arith.addf %525, %528 : vector<32x8xf32>
    %c1_315 = arith.constant 1 : index
    %c2_316 = arith.constant 2 : index
    %c0_317 = arith.constant 0 : index
    %c0_318 = arith.constant 0 : index
    %530 = vector.load %arg10[%c1_315, %c2_316, %c0_317, %c0_318] : memref<2x4x32x8xbf16, #tpu.memory_space<vmem>>, vector<1x1x32x8xbf16>
    %531 = vector.shape_cast %530 : vector<1x1x32x8xbf16> to vector<32x8xbf16>
    %cst_319 = arith.constant dense<0.000000e+00> : vector<32x8xf32>
    %532 = tpu.matmul %382, %531, %cst_319 {dimension_numbers = #tpu.dot_dimension_numbers<[1], [0], [0], [1], [0, 0, 1, 1], [], []>} : vector<32x32xbf16>, vector<32x8xbf16>, vector<32x8xf32> -> vector<32x8xf32>
    %c1_320 = arith.constant 1 : index
    %c2_321 = arith.constant 2 : index
    %c0_322 = arith.constant 0 : index
    %c0_323 = arith.constant 0 : index
    %533 = vector.load %arg11[%c1_320, %c2_321, %c0_322, %c0_323] : memref<2x4x1x8xf32, #tpu.memory_space<vmem>>, vector<1x1x1x8xf32>
    %534 = vector.shape_cast %533 : vector<1x1x1x8xf32> to vector<1x8xf32>
    %535 = vector.broadcast %534 : vector<1x8xf32> to vector<32x8xf32>
    %536 = arith.addf %532, %535 : vector<32x8xf32>
    %537 = vector.extract_strided_slice %522 {offsets = [0, 0], sizes = [16, 8], strides = [1, 1]} : vector<32x8xf32> to vector<16x8xf32>
    %538 = vector.extract_strided_slice %529 {offsets = [0, 0], sizes = [16, 8], strides = [1, 1]} : vector<32x8xf32> to vector<16x8xf32>
    %539 = vector.extract_strided_slice %536 {offsets = [0, 0], sizes = [16, 8], strides = [1, 1]} : vector<32x8xf32> to vector<16x8xf32>
    %540 = arith.truncf %537 : vector<16x8xf32> to vector<16x8xbf16>
    %541 = arith.truncf %538 : vector<16x8xf32> to vector<16x8xbf16>
    %542 = tpu.transpose %541, [1, 0] : vector<16x8xbf16> -> vector<8x16xbf16>
    %cst_324 = arith.constant dense<0.000000e+00> : vector<16x16xf32>
    %543 = tpu.matmul %540, %542, %cst_324 {dimension_numbers = #tpu.dot_dimension_numbers<[1], [0], [0], [1], [0, 0, 1, 1], [], []>} : vector<16x8xbf16>, vector<8x16xbf16>, vector<16x16xf32> -> vector<16x16xf32>
    %cst_325 = arith.constant dense<0xFF800000> : vector<16xf32>
    %544 = vector.multi_reduction <maximumf>, %543, %cst_325 [1] : vector<16x16xf32> to vector<16xf32>
    %545 = vector.shape_cast %544 : vector<16xf32> to vector<16x1xf32>
    %546 = vector.broadcast %545 : vector<16x1xf32> to vector<16x16xf32>
    %547 = arith.subf %543, %546 : vector<16x16xf32>
    %548 = math.exp %547 : vector<16x16xf32>
    %cst_326 = arith.constant dense<0.000000e+00> : vector<16xf32>
    %549 = vector.multi_reduction <add>, %548, %cst_326 [1] : vector<16x16xf32> to vector<16xf32>
    %550 = vector.shape_cast %549 : vector<16xf32> to vector<16x1xf32>
    %551 = tpu.reciprocal %550 {approx = true} : vector<16x1xf32> -> vector<16x1xf32>
    %552 = vector.broadcast %551 : vector<16x1xf32> to vector<16x16xf32>
    %553 = arith.mulf %548, %552 : vector<16x16xf32>
    %554 = arith.truncf %553 : vector<16x16xf32> to vector<16x16xbf16>
    %555 = arith.truncf %539 : vector<16x8xf32> to vector<16x8xbf16>
    %cst_327 = arith.constant dense<0.000000e+00> : vector<16x8xf32>
    %556 = tpu.matmul %554, %555, %cst_327 {dimension_numbers = #tpu.dot_dimension_numbers<[1], [0], [0], [1], [0, 0, 1, 1], [], []>} : vector<16x16xbf16>, vector<16x8xbf16>, vector<16x8xf32> -> vector<16x8xf32>
    %557 = vector.extract_strided_slice %522 {offsets = [16, 0], sizes = [16, 8], strides = [1, 1]} : vector<32x8xf32> to vector<16x8xf32>
    %558 = vector.extract_strided_slice %529 {offsets = [16, 0], sizes = [16, 8], strides = [1, 1]} : vector<32x8xf32> to vector<16x8xf32>
    %559 = vector.extract_strided_slice %536 {offsets = [16, 0], sizes = [16, 8], strides = [1, 1]} : vector<32x8xf32> to vector<16x8xf32>
    %560 = arith.truncf %557 : vector<16x8xf32> to vector<16x8xbf16>
    %561 = arith.truncf %558 : vector<16x8xf32> to vector<16x8xbf16>
    %562 = tpu.transpose %561, [1, 0] : vector<16x8xbf16> -> vector<8x16xbf16>
    %cst_328 = arith.constant dense<0.000000e+00> : vector<16x16xf32>
    %563 = tpu.matmul %560, %562, %cst_328 {dimension_numbers = #tpu.dot_dimension_numbers<[1], [0], [0], [1], [0, 0, 1, 1], [], []>} : vector<16x8xbf16>, vector<8x16xbf16>, vector<16x16xf32> -> vector<16x16xf32>
    %cst_329 = arith.constant dense<0xFF800000> : vector<16xf32>
    %564 = vector.multi_reduction <maximumf>, %563, %cst_329 [1] : vector<16x16xf32> to vector<16xf32>
    %565 = vector.shape_cast %564 : vector<16xf32> to vector<16x1xf32>
    %566 = vector.broadcast %565 : vector<16x1xf32> to vector<16x16xf32>
    %567 = arith.subf %563, %566 : vector<16x16xf32>
    %568 = math.exp %567 : vector<16x16xf32>
    %cst_330 = arith.constant dense<0.000000e+00> : vector<16xf32>
    %569 = vector.multi_reduction <add>, %568, %cst_330 [1] : vector<16x16xf32> to vector<16xf32>
    %570 = vector.shape_cast %569 : vector<16xf32> to vector<16x1xf32>
    %571 = tpu.reciprocal %570 {approx = true} : vector<16x1xf32> -> vector<16x1xf32>
    %572 = vector.broadcast %571 : vector<16x1xf32> to vector<16x16xf32>
    %573 = arith.mulf %568, %572 : vector<16x16xf32>
    %574 = arith.truncf %573 : vector<16x16xf32> to vector<16x16xbf16>
    %575 = arith.truncf %559 : vector<16x8xf32> to vector<16x8xbf16>
    %cst_331 = arith.constant dense<0.000000e+00> : vector<16x8xf32>
    %576 = tpu.matmul %574, %575, %cst_331 {dimension_numbers = #tpu.dot_dimension_numbers<[1], [0], [0], [1], [0, 0, 1, 1], [], []>} : vector<16x16xbf16>, vector<16x8xbf16>, vector<16x8xf32> -> vector<16x8xf32>
    %577 = tpu.concatenate %556, %576 in 0 : vector<16x8xf32>, vector<16x8xf32> -> vector<32x8xf32>
    %578 = arith.truncf %577 : vector<32x8xf32> to vector<32x8xbf16>
    %c1_332 = arith.constant 1 : index
    %c2_333 = arith.constant 2 : index
    %c0_334 = arith.constant 0 : index
    %c0_335 = arith.constant 0 : index
    %579 = vector.load %arg12[%c1_332, %c2_333, %c0_334, %c0_335] : memref<2x4x8x32xbf16, #tpu.memory_space<vmem>>, vector<1x1x8x32xbf16>
    %580 = vector.shape_cast %579 : vector<1x1x8x32xbf16> to vector<8x32xbf16>
    %cst_336 = arith.constant dense<0.000000e+00> : vector<32x32xf32>
    %581 = tpu.matmul %578, %580, %cst_336 {dimension_numbers = #tpu.dot_dimension_numbers<[1], [0], [0], [1], [0, 0, 1, 1], [], []>} : vector<32x8xbf16>, vector<8x32xbf16>, vector<32x32xf32> -> vector<32x32xf32>
    %582 = arith.addf %515, %581 : vector<32x32xf32>
    %c1_337 = arith.constant 1 : index
    %c3_338 = arith.constant 3 : index
    %c0_339 = arith.constant 0 : index
    %c0_340 = arith.constant 0 : index
    %583 = vector.load %arg6[%c1_337, %c3_338, %c0_339, %c0_340] : memref<2x4x32x8xbf16, #tpu.memory_space<vmem>>, vector<1x1x32x8xbf16>
    %584 = vector.shape_cast %583 : vector<1x1x32x8xbf16> to vector<32x8xbf16>
    %cst_341 = arith.constant dense<0.000000e+00> : vector<32x8xf32>
    %585 = tpu.matmul %382, %584, %cst_341 {dimension_numbers = #tpu.dot_dimension_numbers<[1], [0], [0], [1], [0, 0, 1, 1], [], []>} : vector<32x32xbf16>, vector<32x8xbf16>, vector<32x8xf32> -> vector<32x8xf32>
    %c1_342 = arith.constant 1 : index
    %c3_343 = arith.constant 3 : index
    %c0_344 = arith.constant 0 : index
    %c0_345 = arith.constant 0 : index
    %586 = vector.load %arg7[%c1_342, %c3_343, %c0_344, %c0_345] : memref<2x4x1x8xf32, #tpu.memory_space<vmem>>, vector<1x1x1x8xf32>
    %587 = vector.shape_cast %586 : vector<1x1x1x8xf32> to vector<1x8xf32>
    %588 = vector.broadcast %587 : vector<1x8xf32> to vector<32x8xf32>
    %589 = arith.addf %585, %588 : vector<32x8xf32>
    %c1_346 = arith.constant 1 : index
    %c3_347 = arith.constant 3 : index
    %c0_348 = arith.constant 0 : index
    %c0_349 = arith.constant 0 : index
    %590 = vector.load %arg8[%c1_346, %c3_347, %c0_348, %c0_349] : memref<2x4x32x8xbf16, #tpu.memory_space<vmem>>, vector<1x1x32x8xbf16>
    %591 = vector.shape_cast %590 : vector<1x1x32x8xbf16> to vector<32x8xbf16>
    %cst_350 = arith.constant dense<0.000000e+00> : vector<32x8xf32>
    %592 = tpu.matmul %382, %591, %cst_350 {dimension_numbers = #tpu.dot_dimension_numbers<[1], [0], [0], [1], [0, 0, 1, 1], [], []>} : vector<32x32xbf16>, vector<32x8xbf16>, vector<32x8xf32> -> vector<32x8xf32>
    %c1_351 = arith.constant 1 : index
    %c3_352 = arith.constant 3 : index
    %c0_353 = arith.constant 0 : index
    %c0_354 = arith.constant 0 : index
    %593 = vector.load %arg9[%c1_351, %c3_352, %c0_353, %c0_354] : memref<2x4x1x8xf32, #tpu.memory_space<vmem>>, vector<1x1x1x8xf32>
    %594 = vector.shape_cast %593 : vector<1x1x1x8xf32> to vector<1x8xf32>
    %595 = vector.broadcast %594 : vector<1x8xf32> to vector<32x8xf32>
    %596 = arith.addf %592, %595 : vector<32x8xf32>
    %c1_355 = arith.constant 1 : index
    %c3_356 = arith.constant 3 : index
    %c0_357 = arith.constant 0 : index
    %c0_358 = arith.constant 0 : index
    %597 = vector.load %arg10[%c1_355, %c3_356, %c0_357, %c0_358] : memref<2x4x32x8xbf16, #tpu.memory_space<vmem>>, vector<1x1x32x8xbf16>
    %598 = vector.shape_cast %597 : vector<1x1x32x8xbf16> to vector<32x8xbf16>
    %cst_359 = arith.constant dense<0.000000e+00> : vector<32x8xf32>
    %599 = tpu.matmul %382, %598, %cst_359 {dimension_numbers = #tpu.dot_dimension_numbers<[1], [0], [0], [1], [0, 0, 1, 1], [], []>} : vector<32x32xbf16>, vector<32x8xbf16>, vector<32x8xf32> -> vector<32x8xf32>
    %c1_360 = arith.constant 1 : index
    %c3_361 = arith.constant 3 : index
    %c0_362 = arith.constant 0 : index
    %c0_363 = arith.constant 0 : index
    %600 = vector.load %arg11[%c1_360, %c3_361, %c0_362, %c0_363] : memref<2x4x1x8xf32, #tpu.memory_space<vmem>>, vector<1x1x1x8xf32>
    %601 = vector.shape_cast %600 : vector<1x1x1x8xf32> to vector<1x8xf32>
    %602 = vector.broadcast %601 : vector<1x8xf32> to vector<32x8xf32>
    %603 = arith.addf %599, %602 : vector<32x8xf32>
    %604 = vector.extract_strided_slice %589 {offsets = [0, 0], sizes = [16, 8], strides = [1, 1]} : vector<32x8xf32> to vector<16x8xf32>
    %605 = vector.extract_strided_slice %596 {offsets = [0, 0], sizes = [16, 8], strides = [1, 1]} : vector<32x8xf32> to vector<16x8xf32>
    %606 = vector.extract_strided_slice %603 {offsets = [0, 0], sizes = [16, 8], strides = [1, 1]} : vector<32x8xf32> to vector<16x8xf32>
    %607 = arith.truncf %604 : vector<16x8xf32> to vector<16x8xbf16>
    %608 = arith.truncf %605 : vector<16x8xf32> to vector<16x8xbf16>
    %609 = tpu.transpose %608, [1, 0] : vector<16x8xbf16> -> vector<8x16xbf16>
    %cst_364 = arith.constant dense<0.000000e+00> : vector<16x16xf32>
    %610 = tpu.matmul %607, %609, %cst_364 {dimension_numbers = #tpu.dot_dimension_numbers<[1], [0], [0], [1], [0, 0, 1, 1], [], []>} : vector<16x8xbf16>, vector<8x16xbf16>, vector<16x16xf32> -> vector<16x16xf32>
    %cst_365 = arith.constant dense<0xFF800000> : vector<16xf32>
    %611 = vector.multi_reduction <maximumf>, %610, %cst_365 [1] : vector<16x16xf32> to vector<16xf32>
    %612 = vector.shape_cast %611 : vector<16xf32> to vector<16x1xf32>
    %613 = vector.broadcast %612 : vector<16x1xf32> to vector<16x16xf32>
    %614 = arith.subf %610, %613 : vector<16x16xf32>
    %615 = math.exp %614 : vector<16x16xf32>
    %cst_366 = arith.constant dense<0.000000e+00> : vector<16xf32>
    %616 = vector.multi_reduction <add>, %615, %cst_366 [1] : vector<16x16xf32> to vector<16xf32>
    %617 = vector.shape_cast %616 : vector<16xf32> to vector<16x1xf32>
    %618 = tpu.reciprocal %617 {approx = true} : vector<16x1xf32> -> vector<16x1xf32>
    %619 = vector.broadcast %618 : vector<16x1xf32> to vector<16x16xf32>
    %620 = arith.mulf %615, %619 : vector<16x16xf32>
    %621 = arith.truncf %620 : vector<16x16xf32> to vector<16x16xbf16>
    %622 = arith.truncf %606 : vector<16x8xf32> to vector<16x8xbf16>
    %cst_367 = arith.constant dense<0.000000e+00> : vector<16x8xf32>
    %623 = tpu.matmul %621, %622, %cst_367 {dimension_numbers = #tpu.dot_dimension_numbers<[1], [0], [0], [1], [0, 0, 1, 1], [], []>} : vector<16x16xbf16>, vector<16x8xbf16>, vector<16x8xf32> -> vector<16x8xf32>
    %624 = vector.extract_strided_slice %589 {offsets = [16, 0], sizes = [16, 8], strides = [1, 1]} : vector<32x8xf32> to vector<16x8xf32>
    %625 = vector.extract_strided_slice %596 {offsets = [16, 0], sizes = [16, 8], strides = [1, 1]} : vector<32x8xf32> to vector<16x8xf32>
    %626 = vector.extract_strided_slice %603 {offsets = [16, 0], sizes = [16, 8], strides = [1, 1]} : vector<32x8xf32> to vector<16x8xf32>
    %627 = arith.truncf %624 : vector<16x8xf32> to vector<16x8xbf16>
    %628 = arith.truncf %625 : vector<16x8xf32> to vector<16x8xbf16>
    %629 = tpu.transpose %628, [1, 0] : vector<16x8xbf16> -> vector<8x16xbf16>
    %cst_368 = arith.constant dense<0.000000e+00> : vector<16x16xf32>
    %630 = tpu.matmul %627, %629, %cst_368 {dimension_numbers = #tpu.dot_dimension_numbers<[1], [0], [0], [1], [0, 0, 1, 1], [], []>} : vector<16x8xbf16>, vector<8x16xbf16>, vector<16x16xf32> -> vector<16x16xf32>
    %cst_369 = arith.constant dense<0xFF800000> : vector<16xf32>
    %631 = vector.multi_reduction <maximumf>, %630, %cst_369 [1] : vector<16x16xf32> to vector<16xf32>
    %632 = vector.shape_cast %631 : vector<16xf32> to vector<16x1xf32>
    %633 = vector.broadcast %632 : vector<16x1xf32> to vector<16x16xf32>
    %634 = arith.subf %630, %633 : vector<16x16xf32>
    %635 = math.exp %634 : vector<16x16xf32>
    %cst_370 = arith.constant dense<0.000000e+00> : vector<16xf32>
    %636 = vector.multi_reduction <add>, %635, %cst_370 [1] : vector<16x16xf32> to vector<16xf32>
    %637 = vector.shape_cast %636 : vector<16xf32> to vector<16x1xf32>
    %638 = tpu.reciprocal %637 {approx = true} : vector<16x1xf32> -> vector<16x1xf32>
    %639 = vector.broadcast %638 : vector<16x1xf32> to vector<16x16xf32>
    %640 = arith.mulf %635, %639 : vector<16x16xf32>
    %641 = arith.truncf %640 : vector<16x16xf32> to vector<16x16xbf16>
    %642 = arith.truncf %626 : vector<16x8xf32> to vector<16x8xbf16>
    %cst_371 = arith.constant dense<0.000000e+00> : vector<16x8xf32>
    %643 = tpu.matmul %641, %642, %cst_371 {dimension_numbers = #tpu.dot_dimension_numbers<[1], [0], [0], [1], [0, 0, 1, 1], [], []>} : vector<16x16xbf16>, vector<16x8xbf16>, vector<16x8xf32> -> vector<16x8xf32>
    %644 = tpu.concatenate %623, %643 in 0 : vector<16x8xf32>, vector<16x8xf32> -> vector<32x8xf32>
    %645 = arith.truncf %644 : vector<32x8xf32> to vector<32x8xbf16>
    %c1_372 = arith.constant 1 : index
    %c3_373 = arith.constant 3 : index
    %c0_374 = arith.constant 0 : index
    %c0_375 = arith.constant 0 : index
    %646 = vector.load %arg12[%c1_372, %c3_373, %c0_374, %c0_375] : memref<2x4x8x32xbf16, #tpu.memory_space<vmem>>, vector<1x1x8x32xbf16>
    %647 = vector.shape_cast %646 : vector<1x1x8x32xbf16> to vector<8x32xbf16>
    %cst_376 = arith.constant dense<0.000000e+00> : vector<32x32xf32>
    %648 = tpu.matmul %645, %647, %cst_376 {dimension_numbers = #tpu.dot_dimension_numbers<[1], [0], [0], [1], [0, 0, 1, 1], [], []>} : vector<32x8xbf16>, vector<8x32xbf16>, vector<32x32xf32> -> vector<32x32xf32>
    %649 = arith.addf %582, %648 : vector<32x32xf32>
    %650 = arith.addf %357, %649 : vector<32x32xf32>
    %c1_377 = arith.constant 1 : index
    %c0_378 = arith.constant 0 : index
    %c0_379 = arith.constant 0 : index
    %651 = vector.load %arg13[%c1_377, %c0_378, %c0_379] : memref<2x1x32xf32, #tpu.memory_space<vmem>>, vector<1x1x32xf32>
    %652 = vector.shape_cast %651 : vector<1x1x32xf32> to vector<1x32xf32>
    %653 = vector.broadcast %652 : vector<1x32xf32> to vector<32x32xf32>
    %654 = arith.addf %650, %653 : vector<32x32xf32>
    %c1_380 = arith.constant 1 : index
    %c0_381 = arith.constant 0 : index
    %c0_382 = arith.constant 0 : index
    %655 = vector.load %arg14[%c1_380, %c0_381, %c0_382] : memref<2x1x32xf32, #tpu.memory_space<vmem>>, vector<1x1x32xf32>
    %656 = vector.shape_cast %655 : vector<1x1x32xf32> to vector<1x32xf32>
    %c1_383 = arith.constant 1 : index
    %c0_384 = arith.constant 0 : index
    %c0_385 = arith.constant 0 : index
    %657 = vector.load %arg15[%c1_383, %c0_384, %c0_385] : memref<2x1x32xf32, #tpu.memory_space<vmem>>, vector<1x1x32xf32>
    %658 = vector.shape_cast %657 : vector<1x1x32xf32> to vector<1x32xf32>
    %cst_386 = arith.constant dense<0.000000e+00> : vector<32xf32>
    %659 = vector.multi_reduction <add>, %654, %cst_386 [1] : vector<32x32xf32> to vector<32xf32>
    %660 = vector.shape_cast %659 : vector<32xf32> to vector<32x1xf32>
    %cst_387 = arith.constant 3.200000e+01 : f32
    %661 = vector.broadcast %cst_387 : f32 to vector<32x1xf32>
    %662 = arith.divf %660, %661 : vector<32x1xf32>
    %663 = vector.broadcast %662 : vector<32x1xf32> to vector<32x32xf32>
    %664 = arith.subf %654, %663 : vector<32x32xf32>
    %665 = arith.mulf %664, %664 : vector<32x32xf32>
    %cst_388 = arith.constant dense<0.000000e+00> : vector<32xf32>
    %666 = vector.multi_reduction <add>, %665, %cst_388 [1] : vector<32x32xf32> to vector<32xf32>
    %667 = vector.shape_cast %666 : vector<32xf32> to vector<32x1xf32>
    %cst_389 = arith.constant 3.200000e+01 : f32
    %668 = vector.broadcast %cst_389 : f32 to vector<32x1xf32>
    %669 = arith.divf %667, %668 : vector<32x1xf32>
    %cst_390 = arith.constant 9.99999997E-7 : f32
    %670 = vector.broadcast %cst_390 : f32 to vector<32x1xf32>
    %671 = arith.addf %669, %670 : vector<32x1xf32>
    %672 = math.rsqrt %671 : vector<32x1xf32>
    %673 = vector.broadcast %672 : vector<32x1xf32> to vector<32x32xf32>
    %674 = arith.mulf %664, %673 : vector<32x32xf32>
    %675 = vector.broadcast %656 : vector<1x32xf32> to vector<32x32xf32>
    %676 = arith.mulf %674, %675 : vector<32x32xf32>
    %677 = vector.broadcast %658 : vector<1x32xf32> to vector<32x32xf32>
    %678 = arith.addf %676, %677 : vector<32x32xf32>
    %c1_391 = arith.constant 1 : index
    %c0_392 = arith.constant 0 : index
    %c0_393 = arith.constant 0 : index
    %679 = vector.load %arg16[%c1_391, %c0_392, %c0_393] : memref<2x32x64xbf16, #tpu.memory_space<vmem>>, vector<1x32x64xbf16>
    %680 = vector.shape_cast %679 : vector<1x32x64xbf16> to vector<32x64xbf16>
    %681 = arith.truncf %678 : vector<32x32xf32> to vector<32x32xbf16>
    %cst_394 = arith.constant dense<0.000000e+00> : vector<32x64xf32>
    %682 = tpu.matmul %681, %680, %cst_394 {dimension_numbers = #tpu.dot_dimension_numbers<[1], [0], [0], [1], [0, 0, 1, 1], [], []>} : vector<32x32xbf16>, vector<32x64xbf16>, vector<32x64xf32> -> vector<32x64xf32>
    %c1_395 = arith.constant 1 : index
    %c0_396 = arith.constant 0 : index
    %c0_397 = arith.constant 0 : index
    %683 = vector.load %arg17[%c1_395, %c0_396, %c0_397] : memref<2x1x64xf32, #tpu.memory_space<vmem>>, vector<1x1x64xf32>
    %684 = vector.shape_cast %683 : vector<1x1x64xf32> to vector<1x64xf32>
    %685 = vector.broadcast %684 : vector<1x64xf32> to vector<32x64xf32>
    %686 = arith.addf %682, %685 : vector<32x64xf32>
    %cst_398 = arith.constant 5.000000e-01 : f32
    %687 = vector.broadcast %cst_398 : f32 to vector<32x64xf32>
    %688 = arith.mulf %687, %686 : vector<32x64xf32>
    %cst_399 = arith.constant 4.471500e-02 : f32
    %689 = vector.broadcast %cst_399 : f32 to vector<32x64xf32>
    %690 = arith.mulf %689, %686 : vector<32x64xf32>
    %691 = arith.mulf %690, %686 : vector<32x64xf32>
    %692 = arith.mulf %691, %686 : vector<32x64xf32>
    %693 = arith.addf %686, %692 : vector<32x64xf32>
    %cst_400 = arith.constant 0.797884583 : f32
    %694 = vector.broadcast %cst_400 : f32 to vector<32x64xf32>
    %695 = arith.mulf %694, %693 : vector<32x64xf32>
    %696 = math.tanh %695 : vector<32x64xf32>
    %cst_401 = arith.constant 1.000000e+00 : f32
    %697 = vector.broadcast %cst_401 : f32 to vector<32x64xf32>
    %698 = arith.addf %697, %696 : vector<32x64xf32>
    %699 = arith.mulf %688, %698 : vector<32x64xf32>
    %c1_402 = arith.constant 1 : index
    %c0_403 = arith.constant 0 : index
    %c0_404 = arith.constant 0 : index
    %700 = vector.load %arg18[%c1_402, %c0_403, %c0_404] : memref<2x64x32xbf16, #tpu.memory_space<vmem>>, vector<1x64x32xbf16>
    %701 = vector.shape_cast %700 : vector<1x64x32xbf16> to vector<64x32xbf16>
    %702 = arith.truncf %699 : vector<32x64xf32> to vector<32x64xbf16>
    %cst_405 = arith.constant dense<0.000000e+00> : vector<32x32xf32>
    %703 = tpu.matmul %702, %701, %cst_405 {dimension_numbers = #tpu.dot_dimension_numbers<[1], [0], [0], [1], [0, 0, 1, 1], [], []>} : vector<32x64xbf16>, vector<64x32xbf16>, vector<32x32xf32> -> vector<32x32xf32>
    %704 = arith.addf %654, %703 : vector<32x32xf32>
    %c1_406 = arith.constant 1 : index
    %c0_407 = arith.constant 0 : index
    %c0_408 = arith.constant 0 : index
    %705 = vector.load %arg19[%c1_406, %c0_407, %c0_408] : memref<2x1x32xf32, #tpu.memory_space<vmem>>, vector<1x1x32xf32>
    %706 = vector.shape_cast %705 : vector<1x1x32xf32> to vector<1x32xf32>
    %707 = vector.broadcast %706 : vector<1x32xf32> to vector<32x32xf32>
    %708 = arith.addf %704, %707 : vector<32x32xf32>
    %c0_409 = arith.constant 0 : index
    %c0_410 = arith.constant 0 : index
    %709 = vector.load %arg20[%c0_409, %c0_410] : memref<1x32xf32, #tpu.memory_space<vmem>>, vector<1x32xf32>
    %c0_411 = arith.constant 0 : index
    %c0_412 = arith.constant 0 : index
    %710 = vector.load %arg21[%c0_411, %c0_412] : memref<1x32xf32, #tpu.memory_space<vmem>>, vector<1x32xf32>
    %cst_413 = arith.constant dense<0.000000e+00> : vector<32xf32>
    %711 = vector.multi_reduction <add>, %708, %cst_413 [1] : vector<32x32xf32> to vector<32xf32>
    %712 = vector.shape_cast %711 : vector<32xf32> to vector<32x1xf32>
    %cst_414 = arith.constant 3.200000e+01 : f32
    %713 = vector.broadcast %cst_414 : f32 to vector<32x1xf32>
    %714 = arith.divf %712, %713 : vector<32x1xf32>
    %715 = vector.broadcast %714 : vector<32x1xf32> to vector<32x32xf32>
    %716 = arith.subf %708, %715 : vector<32x32xf32>
    %717 = arith.mulf %716, %716 : vector<32x32xf32>
    %cst_415 = arith.constant dense<0.000000e+00> : vector<32xf32>
    %718 = vector.multi_reduction <add>, %717, %cst_415 [1] : vector<32x32xf32> to vector<32xf32>
    %719 = vector.shape_cast %718 : vector<32xf32> to vector<32x1xf32>
    %cst_416 = arith.constant 3.200000e+01 : f32
    %720 = vector.broadcast %cst_416 : f32 to vector<32x1xf32>
    %721 = arith.divf %719, %720 : vector<32x1xf32>
    %cst_417 = arith.constant 9.99999997E-7 : f32
    %722 = vector.broadcast %cst_417 : f32 to vector<32x1xf32>
    %723 = arith.addf %721, %722 : vector<32x1xf32>
    %724 = math.rsqrt %723 : vector<32x1xf32>
    %725 = vector.broadcast %724 : vector<32x1xf32> to vector<32x32xf32>
    %726 = arith.mulf %716, %725 : vector<32x32xf32>
    %727 = vector.broadcast %709 : vector<1x32xf32> to vector<32x32xf32>
    %728 = arith.mulf %726, %727 : vector<32x32xf32>
    %729 = vector.broadcast %710 : vector<1x32xf32> to vector<32x32xf32>
    %730 = arith.addf %728, %729 : vector<32x32xf32>
    %731 = vector.shape_cast %730 : vector<32x32xf32> to vector<2x16x32xf32>
    %cst_418 = arith.constant dense<0.000000e+00> : vector<2x32xf32>
    %732 = vector.multi_reduction <add>, %731, %cst_418 [1] : vector<2x16x32xf32> to vector<2x32xf32>
    %cst_419 = arith.constant 1.600000e+01 : f32
    %733 = vector.broadcast %cst_419 : f32 to vector<2x32xf32>
    %734 = arith.divf %732, %733 : vector<2x32xf32>
    %735 = vector.shape_cast %734 : vector<2x32xf32> to vector<1x2x32xf32>
    %c0_420 = arith.constant 0 : index
    %c0_421 = arith.constant 0 : index
    %c0_422 = arith.constant 0 : index
    %736 = vector.load %arg22[%c0_420, %c0_421, %c0_422] : memref<1x2x32xf32, #tpu.memory_space<vmem>>, vector<1x2x32xf32>
    tpu.vector_store %arg22[%c0_420, %c0_421, %c0_422], %735 {strides = array<i32>} : memref<1x2x32xf32, #tpu.memory_space<vmem>>, vector<1x2x32xf32>,
    return
  }
  func.func @transform_0(%arg0: i32) -> (i32, i32, i32) {
    %c0_i32 = arith.constant 0 : i32
    %c0_i32_0 = arith.constant 0 : i32
    %c0_i32_1 = arith.constant 0 : i32
    return %arg0, %c0_i32, %c0_i32_0 : i32, i32, i32
  }
  func.func @transform_1(%arg0: i32) -> (i32, i32) {
    %c0_i32 = arith.constant 0 : i32
    %c0_i32_0 = arith.constant 0 : i32
    %c0_i32_1 = arith.constant 0 : i32
    return %c0_i32, %c0_i32_0 : i32, i32
  }
  func.func @transform_2(%arg0: i32) -> (i32, i32) {
    %c0_i32 = arith.constant 0 : i32
    %c0_i32_0 = arith.constant 0 : i32
    %c0_i32_1 = arith.constant 0 : i32
    return %c0_i32, %c0_i32_0 : i32, i32
  }
  func.func @transform_3(%arg0: i32) -> (i32, i32, i32) {
    %c0_i32 = arith.constant 0 : i32
    %c0_i32_0 = arith.constant 0 : i32
    %c0_i32_1 = arith.constant 0 : i32
    %c0_i32_2 = arith.constant 0 : i32
    return %c0_i32, %c0_i32_0, %c0_i32_1 : i32, i32, i32
  }
  func.func @transform_4(%arg0: i32) -> (i32, i32, i32) {
    %c0_i32 = arith.constant 0 : i32
    %c0_i32_0 = arith.constant 0 : i32
    %c0_i32_1 = arith.constant 0 : i32
    %c0_i32_2 = arith.constant 0 : i32
    return %c0_i32, %c0_i32_0, %c0_i32_1 : i32, i32, i32
  }
  func.func @transform_5(%arg0: i32) -> (i32, i32, i32, i32) {
    %c0_i32 = arith.constant 0 : i32
    %c0_i32_0 = arith.constant 0 : i32
    %c0_i32_1 = arith.constant 0 : i32
    %c0_i32_2 = arith.constant 0 : i32
    %c0_i32_3 = arith.constant 0 : i32
    return %c0_i32, %c0_i32_0, %c0_i32_1, %c0_i32_2 : i32, i32, i32, i32
  }
  func.func @transform_6(%arg0: i32) -> (i32, i32, i32, i32) {
    %c0_i32 = arith.constant 0 : i32
    %c0_i32_0 = arith.constant 0 : i32
    %c0_i32_1 = arith.constant 0 : i32
    %c0_i32_2 = arith.constant 0 : i32
    %c0_i32_3 = arith.constant 0 : i32
    return %c0_i32, %c0_i32_0, %c0_i32_1, %c0_i32_2 : i32, i32, i32, i32
  }
  func.func @transform_7(%arg0: i32) -> (i32, i32, i32, i32) {
    %c0_i32 = arith.constant 0 : i32
    %c0_i32_0 = arith.constant 0 : i32
    %c0_i32_1 = arith.constant 0 : i32
    %c0_i32_2 = arith.constant 0 : i32
    %c0_i32_3 = arith.constant 0 : i32
    return %c0_i32, %c0_i32_0, %c0_i32_1, %c0_i32_2 : i32, i32, i32, i32
  }
  func.func @transform_8(%arg0: i32) -> (i32, i32, i32, i32) {
    %c0_i32 = arith.constant 0 : i32
    %c0_i32_0 = arith.constant 0 : i32
    %c0_i32_1 = arith.constant 0 : i32
    %c0_i32_2 = arith.constant 0 : i32
    %c0_i32_3 = arith.constant 0 : i32
    return %c0_i32, %c0_i32_0, %c0_i32_1, %c0_i32_2 : i32, i32, i32, i32
  }
  func.func @transform_9(%arg0: i32) -> (i32, i32, i32, i32) {
    %c0_i32 = arith.constant 0 : i32
    %c0_i32_0 = arith.constant 0 : i32
    %c0_i32_1 = arith.constant 0 : i32
    %c0_i32_2 = arith.constant 0 : i32
    %c0_i32_3 = arith.constant 0 : i32
    return %c0_i32, %c0_i32_0, %c0_i32_1, %c0_i32_2 : i32, i32, i32, i32
  }
  func.func @transform_10(%arg0: i32) -> (i32, i32, i32, i32) {
    %c0_i32 = arith.constant 0 : i32
    %c0_i32_0 = arith.constant 0 : i32
    %c0_i32_1 = arith.constant 0 : i32
    %c0_i32_2 = arith.constant 0 : i32
    %c0_i32_3 = arith.constant 0 : i32
    return %c0_i32, %c0_i32_0, %c0_i32_1, %c0_i32_2 : i32, i32, i32, i32
  }
  func.func @transform_11(%arg0: i32) -> (i32, i32, i32, i32) {
    %c0_i32 = arith.constant 0 : i32
    %c0_i32_0 = arith.constant 0 : i32
    %c0_i32_1 = arith.constant 0 : i32
    %c0_i32_2 = arith.constant 0 : i32
    %c0_i32_3 = arith.constant 0 : i32
    return %c0_i32, %c0_i32_0, %c0_i32_1, %c0_i32_2 : i32, i32, i32, i32
  }
  func.func @transform_12(%arg0: i32) -> (i32, i32, i32) {
    %c0_i32 = arith.constant 0 : i32
    %c0_i32_0 = arith.constant 0 : i32
    %c0_i32_1 = arith.constant 0 : i32
    %c0_i32_2 = arith.constant 0 : i32
    return %c0_i32, %c0_i32_0, %c0_i32_1 : i32, i32, i32
  }
  func.func @transform_13(%arg0: i32) -> (i32, i32, i32) {
    %c0_i32 = arith.constant 0 : i32
    %c0_i32_0 = arith.constant 0 : i32
    %c0_i32_1 = arith.constant 0 : i32
    %c0_i32_2 = arith.constant 0 : i32
    return %c0_i32, %c0_i32_0, %c0_i32_1 : i32, i32, i32
  }
  func.func @transform_14(%arg0: i32) -> (i32, i32, i32) {
    %c0_i32 = arith.constant 0 : i32
    %c0_i32_0 = arith.constant 0 : i32
    %c0_i32_1 = arith.constant 0 : i32
    %c0_i32_2 = arith.constant 0 : i32
    return %c0_i32, %c0_i32_0, %c0_i32_1 : i32, i32, i32
  }
  func.func @transform_15(%arg0: i32) -> (i32, i32, i32) {
    %c0_i32 = arith.constant 0 : i32
    %c0_i32_0 = arith.constant 0 : i32
    %c0_i32_1 = arith.constant 0 : i32
    %c0_i32_2 = arith.constant 0 : i32
    return %c0_i32, %c0_i32_0, %c0_i32_1 : i32, i32, i32
  }
  func.func @transform_16(%arg0: i32) -> (i32, i32, i32) {
    %c0_i32 = arith.constant 0 : i32
    %c0_i32_0 = arith.constant 0 : i32
    %c0_i32_1 = arith.constant 0 : i32
    %c0_i32_2 = arith.constant 0 : i32
    return %c0_i32, %c0_i32_0, %c0_i32_1 : i32, i32, i32
  }
  func.func @transform_17(%arg0: i32) -> (i32, i32, i32) {
    %c0_i32 = arith.constant 0 : i32
    %c0_i32_0 = arith.constant 0 : i32
    %c0_i32_1 = arith.constant 0 : i32
    %c0_i32_2 = arith.constant 0 : i32
    return %c0_i32, %c0_i32_0, %c0_i32_1 : i32, i32, i32
  }
  func.func @transform_18(%arg0: i32) -> (i32, i32, i32) {
    %c0_i32 = arith.constant 0 : i32
    %c0_i32_0 = arith.constant 0 : i32
    %c0_i32_1 = arith.constant 0 : i32
    %c0_i32_2 = arith.constant 0 : i32
    return %c0_i32, %c0_i32_0, %c0_i32_1 : i32, i32, i32
  }
  func.func @transform_19(%arg0: i32) -> (i32, i32) {
    %c0_i32 = arith.constant 0 : i32
    %c0_i32_0 = arith.constant 0 : i32
    %c0_i32_1 = arith.constant 0 : i32
    return %c0_i32, %c0_i32_0 : i32, i32
  }
  func.func @transform_20(%arg0: i32) -> (i32, i32) {
    %c0_i32 = arith.constant 0 : i32
    %c0_i32_0 = arith.constant 0 : i32
    %c0_i32_1 = arith.constant 0 : i32
    return %c0_i32, %c0_i32_0 : i32, i32
  }
  func.func @transform_21(%arg0: i32) -> (i32, i32, i32) {
    %c0_i32 = arith.constant 0 : i32
    %c0_i32_0 = arith.constant 0 : i32
    %c0_i32_1 = arith.constant 0 : i32
    return %arg0, %c0_i32, %c0_i32_0 : i32, i32, i32
  }
}

</mosaic_0001>

<bundles_post_ra>
// kernel: paligemma_forward.1
= control target key start
LH: loop header
LB: loop body
LE: loop exit
PB: predicated region body
PF: predicated region fallthrough
CT: control target
= control target key end

     0   :  { %s7647_s0 = inlined_call_operand.vmem [shape: f32[1,32,48], index: 0, kind: input, shape index: {}]   ;;  %s7648_s1 = inlined_call_operand.vmem [shape: bf16[48,32], index: 1, kind: input, shape index: {}]   ;;  %s7649_s2 = inlined_call_operand.vmem [shape: f32[32,32], index: 2, kind: input, shape index: {}]   ;;  %s7650_s3 = inlined_call_operand.vmem [shape: f32[2,1,32], index: 3, kind: input, shape index: {}]   ;;  %s7651_s4 = inlined_call_operand.vmem [shape: f32[2,1,32], index: 4, kind: input, shape index: {}]   ;;  %s7652_s5 = inlined_call_operand.vmem [shape: bf16[2,4,32,8], index: 5, kind: input, shape index: {}]   ;;  %s7653_s6 = inlined_call_operand.vmem [shape: f32[2,4,1,8], index: 6, kind: input, shape index: {}]   ;;  %s7654_s7 = inlined_call_operand.vmem [shape: bf16[2,4,32,8], index: 7, kind: input, shape index: {}]   ;;  %s7655_s8 = inlined_call_operand.vmem [shape: f32[2,4,1,8], index: 8, kind: input, shape index: {}]   ;;  %s7656_s9 = inlined_call_operand.vmem [shape: bf16[2,4,32,8], index: 9, kind: input, shape index: {}]   ;;  %s7657_s10 = inlined_call_operand.vmem [shape: f32[2,4,1,8], index: 10, kind: input, shape index: {}]   ;;  %s7658_s11 = inlined_call_operand.vmem [shape: bf16[2,4,8,32], index: 11, kind: input, shape index: {}]   ;;  %s7659_s12 = inlined_call_operand.vmem [shape: f32[2,1,32], index: 12, kind: input, shape index: {}]   ;;  %s7660_s13 = inlined_call_operand.vmem [shape: f32[2,1,32], index: 13, kind: input, shape index: {}]   ;;  %s7661_s14 = inlined_call_operand.vmem [shape: f32[2,1,32], index: 14, kind: input, shape index: {}]   ;;  %s7662_s15 = inlined_call_operand.vmem [shape: bf16[2,32,64], index: 15, kind: input, shape index: {}]   ;;  %s7663_s16 = inlined_call_operand.vmem [shape: f32[2,1,64], index: 16, kind: input, shape index: {}]   ;;  %s7664_s17 = inlined_call_operand.vmem [shape: bf16[2,64,32], index: 17, kind: input, shape index: {}]   ;;  %s7665_s18 = inlined_call_operand.vmem [shape: f32[2,1,32], index: 18, kind: input, shape index: {}]   ;;  %s7666_s19 = inlined_call_operand.vmem [shape: f32[1,32], index: 19, kind: input, shape index: {}]   ;;  %s7667_s20 = inlined_call_operand.vmem [shape: f32[1,32], index: 20, kind: input, shape index: {}]   ;;  %s7668_s21 = inlined_call_operand.hbm [shape: f32[1,2,32], index: 21, kind: output, shape index: {}]  }
   0x1   :  { %7675 = sst [smem:[#allocation5_spill]] %s7647_s0 }
   0x2   :  { %7676 = sst [smem:[#allocation6_spill]] %s7648_s1 }
   0x3   :  { %7677 = sst [smem:[#allocation7_spill]] %s7649_s2 }
   0x4   :  { %7678 = sst [smem:[#allocation8_spill]] %s7650_s3 }
   0x5   :  { %7679 = sst [smem:[#allocation9_spill]] %s7651_s4 }
   0x6   :  { %7680 = sst [smem:[#allocation10_spill]] %s7652_s5 }
   0x7   :  { %s7681_s26 = sld [smem:[#allocation6_spill]]  ;;  %s7682_s0 = sld [smem:[#allocation5_spill]]  ;;  %vm104_vm0 = vcmask 392192  }
   0xd   :  { %v6292_v0 = vld [vmem:[%s7681_s26] sm:$0xff]   ;;  %v6293_v1 = vld [vmem:[%s7681_s26 + $0x8] sm:$0xff]   ;;  %v6294_v4 = vld [vmem:[%s7681_s26 + $0x10] sm:$0xff]  }
   0xe   :  { %5775 = vmatprep.subr.bf16.mxu0 %v6292_v0  ;;  %v70_v2 = vld [vmem:[%s7682_s0] sm:$0xff]  ;;  %v71_v3 = vld [vmem:[%s7682_s0 + $0x8] sm:$0xff]  ;;  %v72_v6 = vld [vmem:[%s7682_s0 + $0x10] sm:$0xff] }
   0xf   :  { %5776 = vmatpush3.bf16.msra.mxu0 %v6292_v0  ;;  %v80_v5 = vpack.c.bf16 %v71_v3, %v70_v2  ;;  %v73_v7 = vld [vmem:[%s7682_s0 + $0x18] sm:$0xff] }
  0x10   :  { %5777 = vmatprep.subr.bf16.mxu0 %v6293_v1  ;;  %v81_v8 = vpack.c.bf16 %v73_v7, %v72_v6 }
  0x11   :  { %5781 = vmatprep.mubr.msk.bf16.mxu0 %vm104_vm0, %v80_v5 }
  0x13   :  { %5778 = vmatpush3.bf16.msra.mxu0 %v6293_v1 }
  0x14   :  { %5779 = vmatprep.subr.bf16.mxu0 %v6294_v4 }
  0x17   :  { %5780 = vmatpush3.bf16.msra.mxu0 %v6294_v4 }
  0x1a   :  { %5782 = vmatmul.mubr.msk.bf16.vlgmr.msra.gmra.mrb[0].mxu0 %vm104_vm0, %v81_v8 }
  0x1b   :  { %26 = vsyncpa [#allocation3], 0  ;;  %s7683_s3 = sld [smem:[#allocation7_spill]]  ;;  %vm162_vm1 = vcmask 261120   ;;  %s7684_s23 = sld [smem:[#allocation10_spill]]  ;;  %v6297_v47 = vld [vmem:[%s7654_s7] sm:$0xff]  }
  0x1c   :  { %s7685_s26 = sld [smem:[#allocation8_spill]]  ;;  %s7686_s4 = sld [smem:[#allocation9_spill]]  ;;  %vm6564_vm2 = vmmov 0   ;;  %vm462_vm3 = vcmask 64512   ;;  %vm510_vm4 = vcmask 130048   ;;  %vm1165_vm5 = vcmask 1043456  }
  0x1d   :  { %vm2559_vm6 = vcmask 523264   ;;  %vm5207_vm7 = vcmask 1041409   ;;  %vm5210_vm8 = vcmask 254976  }
  0x21   :  { %v84_v9 = vld [vmem:[%s7683_s3 + $0x10] sm:$0xff]  ;;  %v82_v10 = vld [vmem:[%s7683_s3] sm:$0xff]  ;;  %v85_v12 = vld [vmem:[%s7683_s3 + $0x18] sm:$0xff] }
  0x22   :  { %v83_v15 = vld [vmem:[%s7683_s3 + $0x8] sm:$0xff]  ;;  %v6295_v45 = vld [vmem:[%s7684_s23] sm:$0xff]  }
  0x23   :  { %5785 = vmatprep.subr.bf16.mxu1 %v6295_v45  ;;  %v6296_v46 = vld [vmem:[%s7684_s23 + $0x8] sm:$0xff]   ;;  %v5231_v62 = vld [vmem:[%s7685_s26] ss:$0 sm:$0xff] }
  0x24   :  { %5786 = vmatpush3.bf16.msra.mxu1 %v6295_v45  ;;  %v5232_v3 = vld [vmem:[%s7686_s4] ss:$0 sm:$0xff] }
  0x25   :  { %5787 = vmatprep.subr.bf16.mxu1 %v6296_v46 }
  0x28   :  { %5788 = vmatpush3.bf16.msra.mxu1 %v6296_v46  ;;  %v5243_v46 = vld [vmem:[%s7657_s10] ss:$0 sm:$0xff] }
  0x29   :  { %5793 = vmatprep.subr.bf16.mxu1 %v6297_v47 }
  0xed   :  { %v5783_v11 = vpop.f32.mrb[0].mxu0 }
  0xee   :  { %v6706_v13 = vadd.f32 %v5783_v11, %v84_v9  ;;  %v145_v14 = vpop.f32.mrb[1].mxu0 }
  0xef   :  { %v6711_v16 = vadd.f32 %v145_v14, %v82_v10  ;;  %v5784_v17 = vpop.f32.mrb[2].mxu0 }
  0xf0   :  { %v6713_v18 = vadd.f32 %v5784_v17, %v85_v12  ;;  %v148_v19 = vpop.f32.mrb[3].mxu0  ;;  %v169_v20 = vsel %vm162_vm1, %v6706_v13, 0.0 }
  0xf1   :  { %v6717_v21 = vadd.f32 %v148_v19, %v83_v15  ;;  %170 = vadd.xlane.f32.xlu1 %v169_v20  ;;  %v163_v22 = vsel %vm162_vm1, %v6711_v16, 0.0  ;;  %v6298_v19 = vld [vmem:[%s7654_s7 + $0x8] sm:$0xff]   ;;  %v6299_v20 = vld [vmem:[%s7656_s9] sm:$0xff]  }
  0xf2   :  { %164 = vadd.xlane.f32.xlu0 %v163_v22  ;;  %v172_v23 = vsel %vm162_vm1, %v6713_v18, 0.0  ;;  %v6300_v22 = vld [vmem:[%s7656_s9 + $0x8] sm:$0xff]  }
  0xf3   :  { %v166_v24 = vsel %vm162_vm1, %v6717_v21, 0.0 }
  0xf5   :  { %173 = vadd.xlane.f32.xlu1 %v172_v23  ;;  %v6563_v23 = vmov 0.0  }
  0xf6   :  { %167 = vadd.xlane.f32.xlu0 %v166_v24  ;;  %5815 = vmatprep.subr.bf16.mxu0 %v6563_v23 }
  0xf7   :  { %5817 = vmatprep.mubr.msk.bf16.mxu0 %vm6564_vm2, %v6563_v23 }
 0x17e   :  { %v171_v25 = vpop.xlane.xlu1 %170 }
 0x17f   :  { %v178_v26 = vmul.f32 0.03125, %v171_v25  ;;  %v165_v27 = vpop.xlane.xlu0 %164  ;;  %v5233_v25 = vld [vmem:[%s7653_s6] ss:$0 sm:$0xff] }
 0x180   :  { %v176_v28 = vmul.f32 0.03125, %v165_v27 }
 0x181   :  { %v182_v29 = vsub.f32 %v6706_v13, %v178_v26 }
 0x182   :  { %v180_v30 = vsub.f32 %v6711_v16, %v176_v28  ;;  %v174_v31 = vpop.xlane.xlu1 %173 }
 0x183   :  { %v179_v32 = vmul.f32 0.03125, %v174_v31  ;;  %v168_v33 = vpop.xlane.xlu0 %167  ;;  %v186_v39 = vmul.f32 %v182_v29, %v182_v29 }
 0x184   :  { %v177_v34 = vmul.f32 0.03125, %v168_v33  ;;  %v184_v35 = vmul.f32 %v180_v30, %v180_v30 }
 0x185   :  { %v183_v36 = vsub.f32 %v6713_v18, %v179_v32  ;;  %v194_v41 = vsel %vm162_vm1, %v186_v39, 0.0 }
 0x186   :  { %v181_v37 = vsub.f32 %v6717_v21, %v177_v34  ;;  %v188_v38 = vsel %vm162_vm1, %v184_v35, 0.0 }
 0x187   :  { %189 = vadd.xlane.f32.xlu0 %v188_v38  ;;  %v187_v43 = vmul.f32 %v183_v36, %v183_v36 }
 0x188   :  { %v185_v40 = vmul.f32 %v181_v37, %v181_v37 }
 0x189   :  { %v197_v44 = vsel %vm162_vm1, %v187_v43, 0.0 }
 0x18a   :  { %v191_v42 = vsel %vm162_vm1, %v185_v40, 0.0 }
 0x18b   :  { %195 = vadd.xlane.f32.xlu0 %v194_v41  ;;  %192 = vadd.xlane.f32.xlu1 %v191_v42 }
 0x18f   :  { %198 = vadd.xlane.f32.xlu1 %v197_v44 }
 0x214   :  { %v190_v48 = vpop.xlane.xlu0 %189 }
 0x215   :  { %v200_v49 = vmul.f32 0.03125, %v190_v48 }
 0x217   :  { %v204_v50 = vadd.f32 1e-06, %v200_v49 }
 0x218   :  { %v193_v51 = vpop.xlane.xlu1 %192  ;;  %v196_v52 = vpop.xlane.xlu0 %195 }
 0x219   :  { %6355 = vrsqrt.f32 %v204_v50  ;;  %v201_v53 = vmul.f32 0.03125, %v193_v51  ;;  %v202_v54 = vmul.f32 0.03125, %v196_v52 }
 0x21b   :  { %v205_v55 = vadd.f32 1e-06, %v201_v53  ;;  %v206_v56 = vadd.f32 1e-06, %v202_v54 }
 0x21c   :  { %v199_v57 = vpop.xlane.xlu1 %198 }
 0x21d   :  { %6357 = vrsqrt.f32 %v205_v55  ;;  %v203_v58 = vmul.f32 0.03125, %v199_v57 }
 0x21e   :  { %6359 = vrsqrt.f32 %v206_v56 }
 0x21f   :  { %v207_v59 = vadd.f32 1e-06, %v203_v58  ;;  %v6301_v58 = vld [vmem:[%s7684_s23 + $0x10] sm:$0xff]  }
 0x221   :  { %6361 = vrsqrt.f32 %v207_v59 }
 0x223   :  { %v6356_v60 = vpop.eup %6355 }
 0x224   :  { %v212_v61 = vmul.f32 %v6356_v60, %v180_v30  ;;  %v6302_v60 = vld [vmem:[%s7684_s23 + $0x18] sm:$0xff]  }
 0x226   :  { %v222_v1 = vmul.f32 %v5231_v62, %v212_v61  ;;  %v6303_v61 = vld [vmem:[%s7656_s9 + $0x10] sm:$0xff]  }
 0x227   :  { %v6358_v63 = vpop.eup %6357 }
 0x228   :  { %v6360_v0 = vpop.eup %6359  ;;  %v213_v2 = vmul.f32 %v6358_v63, %v181_v37  ;;  %v232_v7 = vadd.f32 %v5232_v3, %v222_v1 }
 0x229   :  { %v214_v4 = vmul.f32 %v6360_v0, %v182_v29 }
 0x22a   :  { %v223_v5 = vmul.f32 %v5231_v62, %v213_v2 }
 0x22b   :  { %v6362_v6 = vpop.eup %6361  ;;  %v224_v9 = vmul.f32 %v5231_v62, %v214_v4 }
 0x22c   :  { %v233_v8 = vadd.f32 %v5232_v3, %v223_v5  ;;  %v215_v10 = vmul.f32 %v6362_v6, %v183_v36  ;;  %v5238_v36 = vld [vmem:[%s7655_s8] ss:$0 sm:$0xff] }
 0x22d   :  { %v234_v14 = vadd.f32 %v5232_v3, %v224_v9 }
 0x22e   :  { %v6748_v11 = vpack.c.bf16 %v233_v8, %v232_v7  ;;  %v225_v12 = vmul.f32 %v5231_v62, %v215_v10  ;;  %v6304_v62 = vld [vmem:[%s7656_s9 + $0x18] sm:$0xff]  }
 0x230   :  { %v235_v15 = vadd.f32 %v5232_v3, %v225_v12  ;;  %5789 = vmatprep.mubr.msk.bf16.mxu1 %vm162_vm1, %v6748_v11 }
 0x232   :  { %v6752_v17 = vpack.c.bf16 %v235_v15, %v234_v14  ;;  %v5257_v14 = vld [vmem:[%s7653_s6 + $0x1] ss:$0 sm:$0xff] }
 0x234   :  { %5790 = vmatmul.mubr.msk.bf16.vlgmr.msra.gmra.mrb[0].mxu1 %vm162_vm1, %v6752_v17 }
 0x235   :  { %5794 = vmatpush3.bf16.msra.mxu1 %v6297_v47  ;;  %5797 = vmatprep.mubr.msk.bf16.mxu1 %vm162_vm1, %v6748_v11 }
 0x236   :  { %5795 = vmatprep.subr.bf16.mxu1 %v6298_v19 }
 0x239   :  { %5796 = vmatpush3.bf16.msra.mxu1 %v6298_v19 }
 0x23a   :  { %5801 = vmatprep.subr.bf16.mxu1 %v6299_v20 }
 0x23c   :  { %5798 = vmatmul.mubr.msk.bf16.vlgmr.msra.gmra.mrb[4].mxu1 %vm162_vm1, %v6752_v17 }
 0x23d   :  { %5802 = vmatpush3.bf16.msra.mxu1 %v6299_v20  ;;  %5805 = vmatprep.mubr.msk.bf16.mxu1 %vm162_vm1, %v6748_v11 }
 0x23e   :  { %5803 = vmatprep.subr.bf16.mxu1 %v6300_v22 }
 0x241   :  { %5804 = vmatpush3.bf16.msra.mxu1 %v6300_v22 }
 0x242   :  { %5809 = vmatprep.subr.bf16.mxu1 %v6563_v23 }
 0x244   :  { %5806 = vmatmul.mubr.msk.bf16.vlgmr.msra.gmra.mrb[8].mxu1 %vm162_vm1, %v6752_v17 }
 0x245   :  { %5811 = vmatprep.mubr.msk.bf16.mxu1 %vm6564_vm2, %v6563_v23 }
 0x307   :  { %v5791_v24 = vpop.f32.mrb[0].mxu1 }
 0x308   :  { %v301_v26 = vpop.f32.mrb[1].mxu1  ;;  %v310_v28 = vadd.f32 %v5791_v24, %v5233_v25 }
 0x309   :  { %v5792_v27 = vpop.f32.mrb[2].mxu1  ;;  %v302_v31 = vadd.f32 %v5233_v25, %v301_v26 }
 0x30a   :  { %v313_v29 = vadd.f32 %v5792_v27, %v5233_v25  ;;  %v304_v30 = vpop.f32.mrb[3].mxu1 }
 0x30b   :  { %v305_v32 = vadd.f32 %v5233_v25, %v304_v30 }
 0x30c   :  { %v579_v33 = vpack.c.bf16 %v313_v29, %v310_v28  ;;  %v5277_v29 = vld [vmem:[%s7657_s10 + $0x1] ss:$0 sm:$0xff] }
 0x30d   :  { %v460_v34 = vpack.c.bf16 %v305_v32, %v302_v31 }
 0x30f   :  { %v5799_v35 = vpop.f32.mrb[4].mxu1 }
 0x310   :  { %v373_v37 = vpop.f32.mrb[5].mxu1  ;;  %v382_v39 = vadd.f32 %v5799_v35, %v5238_v36 }
 0x311   :  { %v5800_v38 = vpop.f32.mrb[6].mxu1  ;;  %v374_v42 = vadd.f32 %v5238_v36, %v373_v37 }
 0x312   :  { %v385_v40 = vadd.f32 %v5800_v38, %v5238_v36  ;;  %v376_v41 = vpop.f32.mrb[7].mxu1 }
 0x313   :  { %v377_v43 = vadd.f32 %v5238_v36, %v376_v41 }
 0x314   :  { %v580_v44 = vpack.c.bf16 %v385_v40, %v382_v39 }
 0x315   :  { %v461_v45 = vpack.c.bf16 %v377_v43, %v374_v42 }
 0x316   :  { %v585_v59 = vsel %vm462_vm3, %v580_v44, 0 }
 0x317   :  { %v5807_v47 = vpop.f32.mrb[8].mxu1  ;;  %v467_v48 = vsel %vm462_vm3, %v461_v45, 0 }
 0x318   :  { %v6789_v49 = vadd.f32 %v5807_v47, %v5243_v46  ;;  %v445_v50 = vpop.f32.mrb[9].mxu1  ;;  %5810 = vmatpush3.bf16.xpose.msra.mxu1 %v467_v48 }
 0x319   :  { %v5808_v51 = vpop.f32.mrb[10].mxu1  ;;  %5821 = vmatprep.subr.bf16.mxu1 %v6563_v23  ;;  %v446_v54 = vadd.f32 %v5243_v46, %v445_v50 }
 0x31a   :  { %v6792_v52 = vadd.f32 %v5808_v51, %v5243_v46  ;;  %v448_v53 = vpop.f32.mrb[11].mxu1 }
 0x31b   :  { %v449_v55 = vadd.f32 %v5243_v46, %v448_v53 }
 0x31c   :  { %v651_v56 = vpack.c.bf16 %v6792_v52, %v6789_v49 }
 0x31d   :  { %v534_v57 = vpack.c.bf16 %v449_v55, %v446_v54 }
 0x31f   :  { %5812 = vmatmul.mubr.msk.bf16.vlgmr.msra.gmra.mrb[12].mxu1 %vm462_vm3, %v460_v34  ;;  %5816 = vmatpush3.bf16.msra.mxu0 %v534_v57 }
 0x320   :  { %5822 = vmatpush3.bf16.xpose.msra.mxu1 %v585_v59  ;;  %5823 = vmatprep.mubr.msk.bf16.mxu1 %vm6564_vm2, %v6563_v23 }
 0x321   :  { %5833 = vmatprep.subr.bf16.mxu1 %v6301_v58  ;;  %5827 = vmatprep.subr.bf16.mxu0 %v6563_v23 }
 0x327   :  { %5824 = vmatmul.mubr.msk.bf16.vlgmr.msra.gmra.mrb[16].mxu1 %vm462_vm3, %v579_v33 }
 0x328   :  { %5834 = vmatpush3.bf16.msra.mxu1 %v6301_v58  ;;  %5837 = vmatprep.mubr.msk.bf16.mxu1 %vm162_vm1, %v6748_v11 }
 0x329   :  { %5835 = vmatprep.subr.bf16.mxu1 %v6302_v60 }
 0x32c   :  { %5836 = vmatpush3.bf16.msra.mxu1 %v6302_v60 }
 0x32d   :  { %5849 = vmatprep.subr.bf16.mxu1 %v6303_v61 }
 0x32f   :  { %5838 = vmatmul.mubr.msk.bf16.vlgmr.msra.gmra.mrb[20].mxu1 %vm162_vm1, %v6752_v17 }
 0x330   :  { %5850 = vmatpush3.bf16.msra.mxu1 %v6303_v61  ;;  %5853 = vmatprep.mubr.msk.bf16.mxu1 %vm162_vm1, %v6748_v11 }
 0x331   :  { %5851 = vmatprep.subr.bf16.mxu1 %v6304_v62 }
 0x334   :  { %5852 = vmatpush3.bf16.msra.mxu1 %v6304_v62 }
 0x335   :  { %5863 = vmatprep.subr.bf16.mxu1 %v6563_v23 }
 0x337   :  { %5854 = vmatmul.mubr.msk.bf16.vlgmr.msra.gmra.mrb[24].mxu1 %vm162_vm1, %v6752_v17 }
 0x338   :  { %5865 = vmatprep.mubr.msk.bf16.mxu1 %vm6564_vm2, %v6563_v23 }
 0x3f2   :  { %v503_v63 = vpop.f32.mrb[12].mxu1 }
 0x3f3   :  { %v5813_v0 = vpop.f32.mrb[13].mxu1  ;;  %v511_v1 = vsel %vm510_vm4, %v503_v63, -inf }
 0x3f4   :  { %512 = vmax.xlane.f32.xlu0 %v511_v1  ;;  %v506_v2 = vpop.f32.mrb[14].mxu1 }
 0x3f5   :  { %v5814_v3 = vpop.f32.mrb[15].mxu1  ;;  %v514_v4 = vsel %vm510_vm4, %v506_v2, -inf }
 0x3f6   :  { %515 = vmax.xlane.f32.xlu1 %v514_v4 }
 0x3fa   :  { %v621_v5 = vpop.f32.mrb[16].mxu1 }
 0x3fb   :  { %v5825_v6 = vpop.f32.mrb[17].mxu1  ;;  %v628_v7 = vsel %vm510_vm4, %v621_v5, -inf }
 0x3fc   :  { %629 = vmax.xlane.f32.xlu0 %v628_v7  ;;  %v624_v8 = vpop.f32.mrb[18].mxu1 }
 0x3fd   :  { %v5826_v9 = vpop.f32.mrb[19].mxu1  ;;  %v631_v10 = vsel %vm510_vm4, %v624_v8, -inf }
 0x3fe   :  { %632 = vmax.xlane.f32.xlu1 %v631_v10 }
 0x402   :  { %v5839_v12 = vpop.f32.mrb[20].mxu1 }
 0x403   :  { %v758_v15 = vpop.f32.mrb[21].mxu1  ;;  %v6832_v20 = vadd.f32 %v5839_v12, %v5257_v14 }
 0x404   :  { %v5840_v19 = vpop.f32.mrb[22].mxu1  ;;  %v6836_v25 = vadd.f32 %v5257_v14, %v758_v15 }
 0x405   :  { %v6834_v22 = vadd.f32 %v5840_v19, %v5257_v14  ;;  %v761_v24 = vpop.f32.mrb[23].mxu1  ;;  %v6306_v19 = vld [vmem:[%s7654_s7 + $0x18] sm:$0xff]  }
 0x406   :  { %v6838_v26 = vadd.f32 %v5257_v14, %v761_v24 }
 0x407   :  { %v1038_v27 = vpack.c.bf16 %v6834_v22, %v6832_v20 }
 0x408   :  { %v921_v28 = vpack.c.bf16 %v6838_v26, %v6836_v25 }
 0x40a   :  { %v5855_v30 = vpop.f32.mrb[24].mxu1 }
 0x40b   :  { %v6847_v31 = vadd.f32 %v5855_v30, %v5277_v29  ;;  %v906_v32 = vpop.f32.mrb[25].mxu1 }
 0x40c   :  { %v5856_v33 = vpop.f32.mrb[26].mxu1  ;;  %v907_v36 = vadd.f32 %v5277_v29, %v906_v32 }
 0x40d   :  { %v6849_v34 = vadd.f32 %v5856_v33, %v5277_v29  ;;  %v909_v35 = vpop.f32.mrb[27].mxu1 }
 0x40e   :  { %v910_v37 = vadd.f32 %v5277_v29, %v909_v35 }
 0x40f   :  { %v1110_v38 = vpack.c.bf16 %v6849_v34, %v6847_v31  ;;  %v6309_v31 = vld [vmem:[%s7654_s7 + $0x20] sm:$0xff]   ;;  %v6310_v34 = vld [vmem:[%s7654_s7 + $0x28] sm:$0xff]  }
 0x410   :  { %v993_v39 = vpack.c.bf16 %v910_v37, %v907_v36 }
 0x412   :  { %5864 = vmatpush3.bf16.msra.mxu1 %v993_v39  ;;  %v5267_v39 = vld [vmem:[%s7655_s8 + $0x1] ss:$0 sm:$0xff] }
 0x413   :  { %5875 = vmatprep.subr.bf16.mxu1 %v6563_v23 }
 0x481   :  { %v513_v40 = vpop.xlane.xlu0 %512 }
 0x482   :  { %v517_v41 = vsub.f32 %v503_v63, %v513_v40 }
 0x483   :  { %v516_v42 = vpop.xlane.xlu1 %515 }
 0x484   :  { %v519_v43 = vmul.f32 1.442695, %v517_v41  ;;  %v518_v44 = vsub.f32 %v506_v2, %v516_v42 }
 0x486   :  { %6363 = vpow2.f32 %v519_v43  ;;  %v521_v45 = vmul.f32 1.442695, %v518_v44 }
 0x488   :  { %6365 = vpow2.f32 %v521_v45 }
 0x489   :  { %v630_v46 = vpop.xlane.xlu0 %629 }
 0x48a   :  { %v634_v47 = vsub.f32 %v621_v5, %v630_v46 }
 0x48b   :  { %v633_v48 = vpop.xlane.xlu1 %632 }
 0x48c   :  { %v636_v50 = vmul.f32 1.442695, %v634_v47  ;;  %v635_v51 = vsub.f32 %v624_v8, %v633_v48  ;;  %v6305_v8 = vld [vmem:[%s7654_s7 + $0x10] sm:$0xff]  }
 0x48e   :  { %6367 = vpow2.f32 %v636_v50  ;;  %v638_v53 = vmul.f32 1.442695, %v635_v51 }
 0x490   :  { %v6364_v54 = vpop.eup %6363  ;;  %6369 = vpow2.f32 %v638_v53 }
 0x491   :  { %v523_v55 = vsel %vm510_vm4, %v6364_v54, 0.0 }
 0x492   :  { %v6366_v57 = vpop.eup %6365  ;;  %524 = vadd.xlane.f32.xlu0 %v523_v55 }
 0x493   :  { %v526_v58 = vsel %vm510_vm4, %v6366_v57, 0.0 }
 0x494   :  { %527 = vadd.xlane.f32.xlu1 %v526_v58 }
 0x498   :  { %v6368_v59 = vpop.eup %6367 }
 0x499   :  { %v640_v60 = vsel %vm510_vm4, %v6368_v59, 0.0 }
 0x49a   :  { %v6370_v61 = vpop.eup %6369  ;;  %641 = vadd.xlane.f32.xlu0 %v640_v60 }
 0x49b   :  { %v643_v62 = vsel %vm510_vm4, %v6370_v61, 0.0 }
 0x49c   :  { %644 = vadd.xlane.f32.xlu1 %v643_v62 }
 0x51f   :  { %v525_v63 = vpop.xlane.xlu0 %524 }
 0x520   :  { %6371 = vrcp.f32 %v525_v63 }
 0x521   :  { %v528_v0 = vpop.xlane.xlu1 %527 }
 0x522   :  { %6373 = vrcp.f32 %v528_v0 }
 0x527   :  { %v642_v1 = vpop.xlane.xlu0 %641 }
 0x528   :  { %6375 = vrcp.f32 %v642_v1 }
 0x529   :  { %v645_v2 = vpop.xlane.xlu1 %644 }
 0x52a   :  { %v6372_v3 = vpop.eup %6371  ;;  %6377 = vrcp.f32 %v645_v2 }
 0x52b   :  { %v531_v5 = vmul.f32 %v6372_v3, %v6364_v54 }
 0x52c   :  { %v6374_v4 = vpop.eup %6373 }
 0x52d   :  { %v532_v6 = vmul.f32 %v6374_v4, %v6366_v57 }
 0x52f   :  { %v533_v7 = vpack.c.bf16 %v532_v6, %v531_v5 }
 0x531   :  { %5818 = vmatmul.mubr.msk.bf16.vlgmr.msra.gmra.mrb[4].mxu0 %vm510_vm4, %v533_v7 }
 0x532   :  { %v6376_v9 = vpop.eup %6375  ;;  %5828 = vmatpush3.bf16.msra.mxu0 %v651_v56  ;;  %5829 = vmatprep.mubr.msk.bf16.mxu0 %vm6564_vm2, %v6563_v23 }
 0x533   :  { %5841 = vmatprep.subr.bf16.mxu0 %v6305_v8  ;;  %v648_v12 = vmul.f32 %v6376_v9, %v6368_v59 }
 0x534   :  { %v6378_v10 = vpop.eup %6377 }
 0x535   :  { %v649_v14 = vmul.f32 %v6378_v10, %v6370_v61 }
 0x537   :  { %v650_v15 = vpack.c.bf16 %v649_v14, %v648_v12 }
 0x539   :  { %5830 = vmatmul.mubr.msk.bf16.vlgmr.msra.gmra.mrb[8].mxu0 %vm510_vm4, %v650_v15 }
 0x53a   :  { %5842 = vmatpush3.bf16.msra.mxu0 %v6305_v8  ;;  %5845 = vmatprep.mubr.msk.bf16.mxu0 %vm162_vm1, %v6748_v11 }
 0x53b   :  { %5843 = vmatprep.subr.bf16.mxu0 %v6306_v19 }
 0x53e   :  { %5844 = vmatpush3.bf16.msra.mxu0 %v6306_v19 }
 0x53f   :  { %5857 = vmatprep.subr.bf16.mxu0 %v6563_v23 }
 0x541   :  { %5846 = vmatmul.mubr.msk.bf16.vlgmr.msra.gmra.mrb[12].mxu0 %vm162_vm1, %v6752_v17 }
 0x542   :  { %5859 = vmatprep.mubr.msk.bf16.mxu0 %vm6564_vm2, %v6563_v23 }
 0x604   :  { %v6878_v49 = vpop.f32.mrb[4].mxu0 }
 0x605   :  { %v5819_v52 = vpop.f32.mrb[5].mxu0 }
 0x606   :  { %v6880_v56 = vpop.f32.mrb[6].mxu0 }
 0x607   :  { %v696_v24 = vpack.c.bf16 %v6880_v56, %v6878_v49  ;;  %v5820_v29 = vpop.f32.mrb[7].mxu0  ;;  %v6312_v49 = vld [vmem:[%s7656_s9 + $0x28] sm:$0xff]  }
 0x60c   :  { %v6884_v30 = vpop.f32.mrb[8].mxu0 }
 0x60d   :  { %v5831_v32 = vpop.f32.mrb[9].mxu0 }
 0x60e   :  { %v6886_v33 = vpop.f32.mrb[10].mxu0 }
 0x60f   :  { %v697_v35 = vpack.c.bf16 %v6886_v33, %v6884_v30  ;;  %v5832_v36 = vpop.f32.mrb[11].mxu0  ;;  %v6313_v33 = vld [vmem:[%s7684_s23 + $0x30] sm:$0xff]  }
 0x614   :  { %v5847_v37 = vpop.f32.mrb[12].mxu0 }
 0x615   :  { %v832_v40 = vpop.f32.mrb[13].mxu0  ;;  %v841_v42 = vadd.f32 %v5847_v37, %v5267_v39 }
 0x616   :  { %v5848_v41 = vpop.f32.mrb[14].mxu0  ;;  %v833_v45 = vadd.f32 %v5267_v39, %v832_v40 }
 0x617   :  { %v844_v43 = vadd.f32 %v5848_v41, %v5267_v39  ;;  %v835_v44 = vpop.f32.mrb[15].mxu0 }
 0x618   :  { %v836_v46 = vadd.f32 %v5267_v39, %v835_v44  ;;  %v6307_v44 = vld [vmem:[%s7684_s23 + $0x20] sm:$0xff]  }
 0x619   :  { %v1039_v47 = vpack.c.bf16 %v844_v43, %v841_v42 }
 0x61a   :  { %v922_v48 = vpack.c.bf16 %v836_v46, %v833_v45 }
 0x61b   :  { %v1044_v51 = vsel %vm462_vm3, %v1039_v47, 0 }
 0x61c   :  { %v927_v50 = vsel %vm462_vm3, %v922_v48, 0 }
 0x61d   :  { %5858 = vmatpush3.bf16.xpose.msra.mxu0 %v927_v50 }
 0x61e   :  { %5869 = vmatprep.subr.bf16.mxu0 %v6563_v23 }
 0x624   :  { %5860 = vmatmul.mubr.msk.bf16.vlgmr.msra.gmra.mrb[16].mxu0 %vm462_vm3, %v921_v28 }
 0x625   :  { %5870 = vmatpush3.bf16.xpose.msra.mxu0 %v1044_v51  ;;  %5871 = vmatprep.mubr.msk.bf16.mxu0 %vm6564_vm2, %v6563_v23  ;;  %v6308_v51 = vld [vmem:[%s7684_s23 + $0x28] sm:$0xff]  }
 0x62c   :  { %5872 = vmatmul.mubr.msk.bf16.vlgmr.msra.gmra.mrb[20].mxu0 %vm462_vm3, %v1038_v27 }
 0x6f7   :  { %v963_v53 = vpop.f32.mrb[16].mxu0 }
 0x6f8   :  { %v5861_v54 = vpop.f32.mrb[17].mxu0  ;;  %v970_v55 = vsel %vm510_vm4, %v963_v53, -inf }
 0x6f9   :  { %971 = vmax.xlane.f32.xlu0 %v970_v55  ;;  %v966_v57 = vpop.f32.mrb[18].mxu0  ;;  %v698_v54 = vld [vmem:[%s7658_s11] sm:$0xf] }
 0x6fa   :  { %v5862_v25 = vpop.f32.mrb[19].mxu0  ;;  %v973_v26 = vsel %vm510_vm4, %v966_v57, -inf }
 0x6fb   :  { %974 = vmax.xlane.f32.xlu1 %v973_v26 }
 0x6ff   :  { %v1080_v28 = vpop.f32.mrb[20].mxu0 }
 0x700   :  { %v5873_v58 = vpop.f32.mrb[21].mxu0  ;;  %v1087_v59 = vsel %vm510_vm4, %v1080_v28, -inf }
 0x701   :  { %1088 = vmax.xlane.f32.xlu0 %v1087_v59  ;;  %v1083_v60 = vpop.f32.mrb[22].mxu0 }
 0x702   :  { %v5874_v61 = vpop.f32.mrb[23].mxu0  ;;  %v1090_v20 = vsel %vm510_vm4, %v1083_v60, -inf }
 0x703   :  { %1091 = vmax.xlane.f32.xlu1 %v1090_v20 }
 0x786   :  { %v972_v22 = vpop.xlane.xlu0 %971 }
 0x787   :  { %v976_v27 = vsub.f32 %v963_v53, %v972_v22  ;;  %v1225_v22 = vsel %vm1165_vm5, %v698_v54, 0 }
 0x788   :  { %v975_v62 = vpop.xlane.xlu1 %974 }
 0x789   :  { %v978_v63 = vmul.f32 1.442695, %v976_v27  ;;  %v977_v0 = vsub.f32 %v966_v57, %v975_v62  ;;  %v6311_v27 = vld [vmem:[%s7656_s9 + $0x20] sm:$0xff]  }
 0x78b   :  { %6379 = vpow2.f32 %v978_v63  ;;  %v980_v1 = vmul.f32 1.442695, %v977_v0  ;;  %v5296_v63 = vld [vmem:[%s7653_s6 + $0x2] ss:$0 sm:$0xff] }
 0x78d   :  { %6381 = vpow2.f32 %v980_v1 }
 0x78e   :  { %v1089_v2 = vpop.xlane.xlu0 %1088 }
 0x78f   :  { %v1093_v3 = vsub.f32 %v1080_v28, %v1089_v2 }
 0x790   :  { %v1092_v4 = vpop.xlane.xlu1 %1091 }
 0x791   :  { %v1095_v5 = vmul.f32 1.442695, %v1093_v3  ;;  %v1094_v6 = vsub.f32 %v1083_v60, %v1092_v4 }
 0x793   :  { %6383 = vpow2.f32 %v1095_v5  ;;  %v1097_v7 = vmul.f32 1.442695, %v1094_v6 }
 0x795   :  { %v6380_v8 = vpop.eup %6379  ;;  %6385 = vpow2.f32 %v1097_v7 }
 0x796   :  { %v982_v9 = vsel %vm510_vm4, %v6380_v8, 0.0 }
 0x797   :  { %v6382_v10 = vpop.eup %6381  ;;  %983 = vadd.xlane.f32.xlu0 %v982_v9 }
 0x798   :  { %v985_v12 = vsel %vm510_vm4, %v6382_v10, 0.0 }
 0x799   :  { %986 = vadd.xlane.f32.xlu1 %v985_v12 }
 0x79d   :  { %v6384_v14 = vpop.eup %6383 }
 0x79e   :  { %v1099_v15 = vsel %vm510_vm4, %v6384_v14, 0.0 }
 0x79f   :  { %v6386_v19 = vpop.eup %6385  ;;  %1100 = vadd.xlane.f32.xlu0 %v1099_v15 }
 0x7a0   :  { %v1102_v52 = vsel %vm510_vm4, %v6386_v19, 0.0 }
 0x7a1   :  { %1103 = vadd.xlane.f32.xlu1 %v1102_v52 }
 0x824   :  { %v984_v29 = vpop.xlane.xlu0 %983 }
 0x825   :  { %6387 = vrcp.f32 %v984_v29 }
 0x826   :  { %v987_v32 = vpop.xlane.xlu1 %986 }
 0x827   :  { %6389 = vrcp.f32 %v987_v32 }
 0x82c   :  { %v1101_v36 = vpop.xlane.xlu0 %1100 }
 0x82d   :  { %6391 = vrcp.f32 %v1101_v36  ;;  %v6314_v36 = vld [vmem:[%s7684_s23 + $0x38] sm:$0xff]  }
 0x82e   :  { %v1104_v37 = vpop.xlane.xlu1 %1103 }
 0x82f   :  { %v6388_v39 = vpop.eup %6387  ;;  %6393 = vrcp.f32 %v1104_v37  ;;  %v6315_v37 = vld [vmem:[%s7654_s7 + $0x30] sm:$0xff]  }
 0x830   :  { %v990_v41 = vmul.f32 %v6388_v39, %v6380_v8  ;;  %v6316_v39 = vld [vmem:[%s7654_s7 + $0x38] sm:$0xff]  }
 0x831   :  { %v6390_v40 = vpop.eup %6389 }
 0x832   :  { %v991_v42 = vmul.f32 %v6390_v40, %v6382_v10  ;;  %v5316_v40 = vld [vmem:[%s7657_s10 + $0x2] ss:$0 sm:$0xff] }
 0x834   :  { %v992_v43 = vpack.c.bf16 %v991_v42, %v990_v41 }
 0x836   :  { %5866 = vmatmul.mubr.msk.bf16.vlgmr.msra.gmra.mrb[28].mxu1 %vm510_vm4, %v992_v43 }
 0x837   :  { %v6392_v45 = vpop.eup %6391  ;;  %5876 = vmatpush3.bf16.msra.mxu1 %v1110_v38  ;;  %5877 = vmatprep.mubr.msk.bf16.mxu1 %vm6564_vm2, %v6563_v23  ;;  %v5286_v38 = vld [vmem:[%s7658_s11 + $0x4] sm:$0xf] }
 0x838   :  { %5893 = vmatprep.subr.bf16.mxu1 %v6307_v44  ;;  %v1107_v47 = vmul.f32 %v6392_v45, %v6384_v14  ;;  %6281 = vmatprep.subr.msk.bf16.mxu0 %vm1165_vm5, %v5286_v38  ;;  %v1167_v53 = vsel %vm1165_vm5, %v5286_v38, 0 }
 0x839   :  { %v6394_v46 = vpop.eup %6393  ;;  %5882 = vmatpush3.bf16.msra.mxu0 %v1167_v53 }
 0x83a   :  { %v1108_v48 = vmul.f32 %v6394_v46, %v6386_v19  ;;  %6282 = vmatprep.subr.msk.bf16.mxu0 %vm1165_vm5, %v698_v54 }
 0x83c   :  { %v1109_v50 = vpack.c.bf16 %v1108_v48, %v1107_v47 }
 0x83e   :  { %5878 = vmatmul.mubr.msk.bf16.vlgmr.msra.gmra.mrb[32].mxu1 %vm510_vm4, %v1109_v50 }
 0x83f   :  { %5894 = vmatpush3.bf16.msra.mxu1 %v6307_v44  ;;  %5897 = vmatprep.mubr.msk.bf16.mxu1 %vm162_vm1, %v6748_v11 }
 0x840   :  { %5895 = vmatprep.subr.bf16.mxu1 %v6308_v51 }
 0x843   :  { %5896 = vmatpush3.bf16.msra.mxu1 %v6308_v51 }
 0x844   :  { %5901 = vmatprep.subr.bf16.mxu1 %v6309_v31 }
 0x846   :  { %5898 = vmatmul.mubr.msk.bf16.vlgmr.msra.gmra.mrb[36].mxu1 %vm162_vm1, %v6752_v17 }
 0x847   :  { %5902 = vmatpush3.bf16.msra.mxu1 %v6309_v31  ;;  %5905 = vmatprep.mubr.msk.bf16.mxu1 %vm162_vm1, %v6748_v11 }
 0x848   :  { %5903 = vmatprep.subr.bf16.mxu1 %v6310_v34 }
 0x84b   :  { %5904 = vmatpush3.bf16.msra.mxu1 %v6310_v34 }
 0x84c   :  { %5917 = vmatprep.subr.bf16.mxu1 %v6563_v23 }
 0x84e   :  { %5906 = vmatmul.mubr.msk.bf16.vlgmr.msra.gmra.mrb[40].mxu1 %vm162_vm1, %v6752_v17 }
 0x84f   :  { %5919 = vmatprep.mubr.msk.bf16.mxu1 %vm6564_vm2, %v6563_v23 }
 0x909   :  { %v1031_v55 = vpop.f32.mrb[28].mxu1 }
 0x90a   :  { %v5867_v57 = vpop.f32.mrb[29].mxu1 }
 0x90b   :  { %v1034_v25 = vpop.f32.mrb[30].mxu1 }
 0x90c   :  { %v1155_v26 = vpack.c.bf16 %v1034_v25, %v1031_v55  ;;  %v5868_v28 = vpop.f32.mrb[31].mxu1 }
 0x90e   :  { %5883 = vmatprep.mubr.msk.bf16.mxu0 %vm462_vm3, %v1155_v26 }
 0x911   :  { %v1148_v58 = vpop.f32.mrb[32].mxu1 }
 0x912   :  { %v5879_v59 = vpop.f32.mrb[33].mxu1 }
 0x913   :  { %v1151_v60 = vpop.f32.mrb[34].mxu1 }
 0x914   :  { %v1156_v61 = vpack.c.bf16 %v1151_v60, %v1148_v58  ;;  %v5880_v20 = vpop.f32.mrb[35].mxu1 }
 0x916   :  { %5884 = vmatmul.mubr.msk.bf16.vlgmr.msra.gmra.mrb[24].mxu0 %vm462_vm3, %v1156_v61  ;;  %v5333_v61 = vld [vmem:[%s7653_s6 + $0x3] ss:$0 sm:$0xff] }
 0x917   :  { %5889 = vmatprep.mubr.msk.bf16.mxu0 %vm462_vm3, %v696_v24  ;;  %5888 = vmatpush3.bf16.msra.mxu0 %v1225_v22  ;;  %v5306_v24 = vld [vmem:[%s7655_s8 + $0x2] ss:$0 sm:$0xff] }
 0x918   :  { %5909 = vmatprep.subr.bf16.mxu0 %v6311_v27 }
 0x919   :  { %v5899_v62 = vpop.f32.mrb[36].mxu1 }
 0x91a   :  { %v1335_v0 = vpop.f32.mrb[37].mxu1  ;;  %v1344_v2 = vadd.f32 %v5899_v62, %v5296_v63 }
 0x91b   :  { %v5900_v1 = vpop.f32.mrb[38].mxu1  ;;  %v1336_v5 = vadd.f32 %v5296_v63, %v1335_v0 }
 0x91c   :  { %v1347_v3 = vadd.f32 %v5900_v1, %v5296_v63  ;;  %v1338_v4 = vpop.f32.mrb[39].mxu1 }
 0x91d   :  { %v1339_v6 = vadd.f32 %v5296_v63, %v1338_v4 }
 0x91e   :  { %v1615_v7 = vpack.c.bf16 %v1347_v3, %v1344_v2 }
 0x91f   :  { %v1498_v8 = vpack.c.bf16 %v1339_v6, %v1336_v5  ;;  %v5343_v5 = vld [vmem:[%s7655_s8 + $0x3] ss:$0 sm:$0xff] }
 0x921   :  { %v5907_v56 = vpop.f32.mrb[40].mxu1 }
 0x922   :  { %5890 = vmatmul.mubr.msk.bf16.vlgmr.msra.gmra.mrb[24].mxu0 %vm462_vm3, %v697_v35  ;;  %v1409_v9 = vpop.f32.mrb[41].mxu1  ;;  %v1418_v12 = vadd.f32 %v5907_v56, %v5306_v24 }
 0x923   :  { %v5908_v10 = vpop.f32.mrb[42].mxu1  ;;  %5910 = vmatpush3.bf16.msra.mxu0 %v6311_v27  ;;  %5913 = vmatprep.mubr.msk.bf16.mxu0 %vm162_vm1, %v6748_v11  ;;  %v1410_v19 = vadd.f32 %v5306_v24, %v1409_v9 }
 0x924   :  { %v1421_v14 = vadd.f32 %v5908_v10, %v5306_v24  ;;  %v1412_v15 = vpop.f32.mrb[43].mxu1  ;;  %5911 = vmatprep.subr.bf16.mxu0 %v6312_v49 }
 0x925   :  { %v1413_v52 = vadd.f32 %v5306_v24, %v1412_v15 }
 0x926   :  { %v1616_v29 = vpack.c.bf16 %v1421_v14, %v1418_v12 }
 0x927   :  { %v1499_v32 = vpack.c.bf16 %v1413_v52, %v1410_v19  ;;  %5912 = vmatpush3.bf16.msra.mxu0 %v6312_v49 }
 0x928   :  { %5923 = vmatprep.subr.bf16.mxu0 %v6563_v23  ;;  %v1621_v35 = vsel %vm462_vm3, %v1616_v29, 0 }
 0x929   :  { %v1504_v30 = vsel %vm462_vm3, %v1499_v32, 0 }
 0x92a   :  { %5914 = vmatmul.mubr.msk.bf16.vlgmr.msra.gmra.mrb[28].mxu0 %vm162_vm1, %v6752_v17  ;;  %5918 = vmatpush3.bf16.xpose.msra.mxu1 %v1504_v30 }
 0x92b   :  { %5929 = vmatprep.subr.bf16.mxu1 %v6563_v23  ;;  %5925 = vmatprep.mubr.msk.bf16.mxu0 %vm6564_vm2, %v6563_v23 }
 0x931   :  { %5920 = vmatmul.mubr.msk.bf16.vlgmr.msra.gmra.mrb[44].mxu1 %vm462_vm3, %v1498_v8 }
 0x932   :  { %5930 = vmatpush3.bf16.xpose.msra.mxu1 %v1621_v35  ;;  %5931 = vmatprep.mubr.msk.bf16.mxu1 %vm6564_vm2, %v6563_v23 }
 0x933   :  { %5947 = vmatprep.subr.bf16.mxu1 %v6313_v33 }
 0x939   :  { %5932 = vmatmul.mubr.msk.bf16.vlgmr.msra.gmra.mrb[48].mxu1 %vm462_vm3, %v1615_v7 }
 0x93a   :  { %5948 = vmatpush3.bf16.msra.mxu1 %v6313_v33  ;;  %5951 = vmatprep.mubr.msk.bf16.mxu1 %vm162_vm1, %v6748_v11 }
 0x93b   :  { %5949 = vmatprep.subr.bf16.mxu1 %v6314_v36 }
 0x93e   :  { %5950 = vmatpush3.bf16.msra.mxu1 %v6314_v36 }
 0x93f   :  { %5955 = vmatprep.subr.bf16.mxu1 %v6315_v37 }
 0x941   :  { %5952 = vmatmul.mubr.msk.bf16.vlgmr.msra.gmra.mrb[52].mxu1 %vm162_vm1, %v6752_v17 }
 0x942   :  { %5956 = vmatpush3.bf16.msra.mxu1 %v6315_v37  ;;  %5959 = vmatprep.mubr.msk.bf16.mxu1 %vm162_vm1, %v6748_v11 }
 0x943   :  { %5957 = vmatprep.subr.bf16.mxu1 %v6316_v39 }
 0x946   :  { %5958 = vmatpush3.bf16.msra.mxu1 %v6316_v39 }
 0x947   :  { %5971 = vmatprep.subr.bf16.mxu1 %v6563_v23 }
 0x949   :  { %5960 = vmatmul.mubr.msk.bf16.vlgmr.msra.gmra.mrb[56].mxu1 %vm162_vm1, %v6752_v17 }
 0x94a   :  { %5973 = vmatprep.mubr.msk.bf16.mxu1 %vm6564_vm2, %v6563_v23 }
 0x9fd   :  { %v5915_v41 = vpop.f32.mrb[28].mxu0 }
 0x9fe   :  { %v7016_v42 = vadd.f32 %v5915_v41, %v5316_v40  ;;  %v1483_v43 = vpop.f32.mrb[29].mxu0 }
 0x9ff   :  { %v5916_v44 = vpop.f32.mrb[30].mxu0  ;;  %v1484_v47 = vadd.f32 %v5316_v40, %v1483_v43 }
 0xa00   :  { %v7018_v45 = vadd.f32 %v5916_v44, %v5316_v40  ;;  %v1486_v46 = vpop.f32.mrb[31].mxu0 }
 0xa01   :  { %v1487_v48 = vadd.f32 %v5316_v40, %v1486_v46 }
 0xa02   :  { %v1687_v50 = vpack.c.bf16 %v7018_v45, %v7016_v42 }
 0xa03   :  { %v1570_v51 = vpack.c.bf16 %v1487_v48, %v1484_v47 }
 0xa04   :  { %v1540_v31 = vpop.f32.mrb[44].mxu1 }
 0xa05   :  { %v5921_v34 = vpop.f32.mrb[45].mxu1  ;;  %5924 = vmatpush3.bf16.msra.mxu0 %v1570_v51  ;;  %v1547_v38 = vsel %vm510_vm4, %v1540_v31, -inf }
 0xa06   :  { %1548 = vmax.xlane.f32.xlu0 %v1547_v38  ;;  %v1543_v53 = vpop.f32.mrb[46].mxu1  ;;  %5935 = vmatprep.subr.bf16.mxu0 %v6563_v23 }
 0xa07   :  { %v5922_v54 = vpop.f32.mrb[47].mxu1  ;;  %v1550_v55 = vsel %vm510_vm4, %v1543_v53, -inf }
 0xa08   :  { %1551 = vmax.xlane.f32.xlu1 %v1550_v55 }
 0xa0c   :  { %v1657_v57 = vpop.f32.mrb[48].mxu1 }
 0xa0d   :  { %v5933_v25 = vpop.f32.mrb[49].mxu1  ;;  %v1664_v26 = vsel %vm510_vm4, %v1657_v57, -inf }
 0xa0e   :  { %1665 = vmax.xlane.f32.xlu0 %v1664_v26  ;;  %v1660_v28 = vpop.f32.mrb[50].mxu1 }
 0xa0f   :  { %v5934_v58 = vpop.f32.mrb[51].mxu1  ;;  %v1667_v59 = vsel %vm510_vm4, %v1660_v28, -inf }
 0xa10   :  { %1668 = vmax.xlane.f32.xlu1 %v1667_v59 }
 0xa14   :  { %v5953_v60 = vpop.f32.mrb[52].mxu1 }
 0xa15   :  { %v1857_v20 = vpop.f32.mrb[53].mxu1  ;;  %v1866_v27 = vadd.f32 %v5953_v60, %v5333_v61 }
 0xa16   :  { %v5954_v22 = vpop.f32.mrb[54].mxu1  ;;  %v1858_v0 = vadd.f32 %v5333_v61, %v1857_v20 }
 0xa17   :  { %v1869_v62 = vadd.f32 %v5954_v22, %v5333_v61  ;;  %v1860_v63 = vpop.f32.mrb[55].mxu1 }
 0xa18   :  { %v1861_v1 = vadd.f32 %v5333_v61, %v1860_v63 }
 0xa19   :  { %v2137_v2 = vpack.c.bf16 %v1869_v62, %v1866_v27 }
 0xa1a   :  { %v2020_v3 = vpack.c.bf16 %v1861_v1, %v1858_v0 }
 0xa1c   :  { %v5961_v4 = vpop.f32.mrb[56].mxu1 }
 0xa1d   :  { %v1931_v6 = vpop.f32.mrb[57].mxu1  ;;  %v1940_v8 = vadd.f32 %v5961_v4, %v5343_v5 }
 0xa1e   :  { %v5962_v7 = vpop.f32.mrb[58].mxu1  ;;  %v1932_v24 = vadd.f32 %v5343_v5, %v1931_v6 }
 0xa1f   :  { %v1943_v49 = vadd.f32 %v5962_v7, %v5343_v5  ;;  %v1934_v56 = vpop.f32.mrb[59].mxu1 }
 0xa20   :  { %v1935_v9 = vadd.f32 %v5343_v5, %v1934_v56 }
 0xa21   :  { %v2138_v10 = vpack.c.bf16 %v1943_v49, %v1940_v8 }
 0xa22   :  { %v2021_v12 = vpack.c.bf16 %v1935_v9, %v1932_v24 }
 0xa23   :  { %v2143_v15 = vsel %vm462_vm3, %v2138_v10, 0 }
 0xa24   :  { %v2026_v14 = vsel %vm462_vm3, %v2021_v12, 0 }
 0xa25   :  { %5972 = vmatpush3.bf16.xpose.msra.mxu1 %v2026_v14 }
 0xa26   :  { %5983 = vmatprep.subr.bf16.mxu1 %v6563_v23 }
 0xa2c   :  { %5974 = vmatmul.mubr.msk.bf16.vlgmr.msra.gmra.mrb[60].mxu1 %vm462_vm3, %v2020_v3 }
 0xa2d   :  { %5984 = vmatpush3.bf16.xpose.msra.mxu1 %v2143_v15  ;;  %5985 = vmatprep.mubr.msk.bf16.mxu1 %vm6564_vm2, %v6563_v23 }
 0xa34   :  { %5986 = vmatmul.mubr.msk.bf16.vlgmr.msra.gmra.mrb[64].mxu1 %vm462_vm3, %v2137_v2 }
 0xa93   :  { %v1549_v19 = vpop.xlane.xlu0 %1548 }
 0xa94   :  { %v1553_v52 = vsub.f32 %v1540_v31, %v1549_v19 }
 0xa95   :  { %v1552_v29 = vpop.xlane.xlu1 %1551 }
 0xa96   :  { %v1555_v32 = vmul.f32 1.442695, %v1553_v52  ;;  %v1554_v30 = vsub.f32 %v1543_v53, %v1552_v29 }
 0xa98   :  { %6395 = vpow2.f32 %v1555_v32  ;;  %v1557_v33 = vmul.f32 1.442695, %v1554_v30  ;;  %v5325_v30 = vld [vmem:[%s7658_s11 + $0x8] sm:$0xf] }
 0xa9a   :  { %6397 = vpow2.f32 %v1557_v33 }
 0xa9b   :  { %v1666_v35 = vpop.xlane.xlu0 %1665 }
 0xa9c   :  { %v1670_v36 = vsub.f32 %v1657_v57, %v1666_v35  ;;  %v1743_v35 = vsel %vm1165_vm5, %v5325_v30, 0 }
 0xa9d   :  { %v1669_v37 = vpop.xlane.xlu1 %1668 }
 0xa9e   :  { %v1672_v39 = vmul.f32 1.442695, %v1670_v36  ;;  %v1671_v40 = vsub.f32 %v1660_v28, %v1669_v37  ;;  %v6317_v36 = vld [vmem:[%s7656_s9 + $0x30] sm:$0xff]  }
 0xaa0   :  { %6399 = vpow2.f32 %v1672_v39  ;;  %v1674_v41 = vmul.f32 1.442695, %v1671_v40 }
 0xaa2   :  { %v6396_v43 = vpop.eup %6395  ;;  %6401 = vpow2.f32 %v1674_v41 }
 0xaa3   :  { %v1559_v44 = vsel %vm510_vm4, %v6396_v43, 0.0 }
 0xaa4   :  { %v6398_v46 = vpop.eup %6397  ;;  %1560 = vadd.xlane.f32.xlu0 %v1559_v44 }
 0xaa5   :  { %v1562_v47 = vsel %vm510_vm4, %v6398_v46, 0.0 }
 0xaa6   :  { %1563 = vadd.xlane.f32.xlu1 %v1562_v47 }
 0xaaa   :  { %v6400_v48 = vpop.eup %6399 }
 0xaab   :  { %v1676_v51 = vsel %vm510_vm4, %v6400_v48, 0.0 }
 0xaac   :  { %v6402_v31 = vpop.eup %6401  ;;  %1677 = vadd.xlane.f32.xlu0 %v1676_v51 }
 0xaad   :  { %v1679_v34 = vsel %vm510_vm4, %v6402_v31, 0.0 }
 0xaae   :  { %1680 = vadd.xlane.f32.xlu1 %v1679_v34 }
 0xaff   :  { %v2062_v38 = vpop.f32.mrb[60].mxu1 }
 0xb00   :  { %v5975_v53 = vpop.f32.mrb[61].mxu1  ;;  %v2069_v54 = vsel %vm510_vm4, %v2062_v38, -inf }
 0xb01   :  { %2070 = vmax.xlane.f32.xlu0 %v2069_v54  ;;  %v2065_v55 = vpop.f32.mrb[62].mxu1  ;;  %v6318_v54 = vld [vmem:[%s7656_s9 + $0x38] sm:$0xff]  }
 0xb02   :  { %v5976_v57 = vpop.f32.mrb[63].mxu1  ;;  %v2072_v25 = vsel %vm510_vm4, %v2065_v55, -inf }
 0xb03   :  { %2073 = vmax.xlane.f32.xlu1 %v2072_v25 }
 0xb07   :  { %v2179_v26 = vpop.f32.mrb[64].mxu1 }
 0xb08   :  { %v5987_v28 = vpop.f32.mrb[65].mxu1  ;;  %v2186_v58 = vsel %vm510_vm4, %v2179_v26, -inf }
 0xb09   :  { %2187 = vmax.xlane.f32.xlu0 %v2186_v58  ;;  %v2182_v59 = vpop.f32.mrb[66].mxu1 }
 0xb0a   :  { %v5988_v60 = vpop.f32.mrb[67].mxu1  ;;  %v2189_v61 = vsel %vm510_vm4, %v2182_v59, -inf }
 0xb0b   :  { %2190 = vmax.xlane.f32.xlu1 %v2189_v61 }
 0xb31   :  { %v1561_v20 = vpop.xlane.xlu0 %1560 }
 0xb32   :  { %6403 = vrcp.f32 %v1561_v20 }
 0xb33   :  { %v1564_v22 = vpop.xlane.xlu1 %1563 }
 0xb34   :  { %6405 = vrcp.f32 %v1564_v22 }
 0xb39   :  { %v1678_v27 = vpop.xlane.xlu0 %1677 }
 0xb3a   :  { %6407 = vrcp.f32 %v1678_v27 }
 0xb3b   :  { %v1681_v62 = vpop.xlane.xlu1 %1680 }
 0xb3c   :  { %v6404_v63 = vpop.eup %6403  ;;  %6409 = vrcp.f32 %v1681_v62 }
 0xb3d   :  { %v1567_v1 = vmul.f32 %v6404_v63, %v6396_v43 }
 0xb3e   :  { %v6406_v0 = vpop.eup %6405 }
 0xb3f   :  { %v1568_v2 = vmul.f32 %v6406_v0, %v6398_v46 }
 0xb41   :  { %v1569_v3 = vpack.c.bf16 %v1568_v2, %v1567_v1 }
 0xb43   :  { %5926 = vmatmul.mubr.msk.bf16.vlgmr.msra.gmra.mrb[32].mxu0 %vm510_vm4, %v1569_v3 }
 0xb44   :  { %v6408_v4 = vpop.eup %6407  ;;  %5936 = vmatpush3.bf16.msra.mxu0 %v1687_v50  ;;  %5937 = vmatprep.mubr.msk.bf16.mxu0 %vm6564_vm2, %v6563_v23 }
 0xb45   :  { %v1684_v6 = vmul.f32 %v6408_v4, %v6400_v48  ;;  %6283 = vmatprep.subr.msk.bf16.mxu0 %vm1165_vm5, %v5325_v30 }
 0xb46   :  { %v6410_v5 = vpop.eup %6409 }
 0xb47   :  { %v1685_v7 = vmul.f32 %v6410_v5, %v6402_v31 }
 0xb49   :  { %v1686_v8 = vpack.c.bf16 %v1685_v7, %v1684_v6 }
 0xb4b   :  { %5938 = vmatmul.mubr.msk.bf16.vlgmr.msra.gmra.mrb[36].mxu0 %vm510_vm4, %v1686_v8 }
 0xb4c   :  { %5942 = vmatpush3.bf16.msra.mxu0 %v1743_v35 }
 0xb4d   :  { %5963 = vmatprep.subr.bf16.mxu0 %v6317_v36 }
 0xb8e   :  { %v2071_v49 = vpop.xlane.xlu0 %2070 }
 0xb8f   :  { %v2075_v56 = vsub.f32 %v2062_v38, %v2071_v49  ;;  %v5362_v49 = vld [vmem:[%s7658_s11 + $0xc] sm:$0xf] }
 0xb90   :  { %v2074_v24 = vpop.xlane.xlu1 %2073 }
 0xb91   :  { %v2077_v9 = vmul.f32 1.442695, %v2075_v56  ;;  %v2076_v10 = vsub.f32 %v2065_v55, %v2074_v24  ;;  %v2265_v56 = vsel %vm1165_vm5, %v5362_v49, 0 }
 0xb93   :  { %6411 = vpow2.f32 %v2077_v9  ;;  %v2079_v12 = vmul.f32 1.442695, %v2076_v10 }
 0xb95   :  { %6413 = vpow2.f32 %v2079_v12 }
 0xb96   :  { %v2188_v14 = vpop.xlane.xlu0 %2187 }
 0xb97   :  { %v2192_v42 = vsub.f32 %v2179_v26, %v2188_v14 }
 0xb98   :  { %v2191_v45 = vpop.xlane.xlu1 %2190 }
 0xb99   :  { %v2194_v50 = vmul.f32 1.442695, %v2192_v42  ;;  %v2193_v15 = vsub.f32 %v2182_v59, %v2191_v45 }
 0xb9b   :  { %6415 = vpow2.f32 %v2194_v50  ;;  %v2196_v19 = vmul.f32 1.442695, %v2193_v15 }
 0xb9d   :  { %v6412_v52 = vpop.eup %6411  ;;  %6417 = vpow2.f32 %v2196_v19 }
 0xb9e   :  { %v2081_v29 = vsel %vm510_vm4, %v6412_v52, 0.0 }
 0xb9f   :  { %v6414_v32 = vpop.eup %6413  ;;  %2082 = vadd.xlane.f32.xlu0 %v2081_v29  ;;  %v5365_v29 = vld [vmem:[%s7659_s12] ss:$0 sm:$0xff] }
 0xba0   :  { %v2084_v33 = vsel %vm510_vm4, %v6414_v32, 0.0 }
 0xba1   :  { %2085 = vadd.xlane.f32.xlu1 %v2084_v33 }
 0xba5   :  { %v6416_v37 = vpop.eup %6415 }
 0xba6   :  { %v2198_v39 = vsel %vm510_vm4, %v6416_v37, 0.0 }
 0xba7   :  { %v6418_v40 = vpop.eup %6417  ;;  %2199 = vadd.xlane.f32.xlu0 %v2198_v39 }
 0xba8   :  { %v2201_v41 = vsel %vm510_vm4, %v6418_v40, 0.0 }
 0xba9   :  { %2202 = vadd.xlane.f32.xlu1 %v2201_v41 }
 0xc16   :  { %v1608_v43 = vpop.f32.mrb[32].mxu0 }
 0xc17   :  { %v5927_v44 = vpop.f32.mrb[33].mxu0 }
 0xc18   :  { %v1611_v46 = vpop.f32.mrb[34].mxu0 }
 0xc19   :  { %v1732_v47 = vpack.c.bf16 %v1611_v46, %v1608_v43  ;;  %v5928_v48 = vpop.f32.mrb[35].mxu0 }
 0xc1b   :  { %5943 = vmatprep.mubr.msk.bf16.mxu0 %vm462_vm3, %v1732_v47 }
 0xc1e   :  { %v1725_v51 = vpop.f32.mrb[36].mxu0 }
 0xc1f   :  { %v5939_v31 = vpop.f32.mrb[37].mxu0 }
 0xc20   :  { %v1728_v34 = vpop.f32.mrb[38].mxu0 }
 0xc21   :  { %v1733_v38 = vpack.c.bf16 %v1728_v34, %v1725_v51  ;;  %v5940_v53 = vpop.f32.mrb[39].mxu0 }
 0xc23   :  { %5944 = vmatmul.mubr.msk.bf16.vlgmr.msra.gmra.mrb[24].mxu0 %vm462_vm3, %v1733_v38 }
 0xc24   :  { %5964 = vmatpush3.bf16.msra.mxu0 %v6317_v36  ;;  %5967 = vmatprep.mubr.msk.bf16.mxu0 %vm162_vm1, %v6748_v11  ;;  %v5353_v11 = vld [vmem:[%s7657_s10 + $0x3] ss:$0 sm:$0xff] }
 0xc25   :  { %5965 = vmatprep.subr.bf16.mxu0 %v6318_v54 }
 0xc28   :  { %5966 = vmatpush3.bf16.msra.mxu0 %v6318_v54 }
 0xc29   :  { %5977 = vmatprep.subr.bf16.mxu0 %v6563_v23 }
 0xc2b   :  { %5968 = vmatmul.mubr.msk.bf16.vlgmr.msra.gmra.mrb[40].mxu0 %vm162_vm1, %v6752_v17 }
 0xc2c   :  { %5979 = vmatprep.mubr.msk.bf16.mxu0 %vm6564_vm2, %v6563_v23  ;;  %v2083_v57 = vpop.xlane.xlu0 %2082 }
 0xc2e   :  { %v2086_v55 = vpop.xlane.xlu1 %2085 }
 0xc2f   :  { %6419 = vrcp.f32 %v2086_v55 }
 0xc30   :  { %6421 = vrcp.f32 %v2083_v57 }
 0xc34   :  { %v2200_v26 = vpop.xlane.xlu0 %2199 }
 0xc36   :  { %v2203_v25 = vpop.xlane.xlu1 %2202 }
 0xc37   :  { %6423 = vrcp.f32 %v2203_v25 }
 0xc38   :  { %6425 = vrcp.f32 %v2200_v26 }
 0xc39   :  { %v6420_v59 = vpop.eup %6419 }
 0xc3a   :  { %v6422_v22 = vpop.eup %6421  ;;  %v2090_v63 = vmul.f32 %v6420_v59, %v6414_v32 }
 0xc3b   :  { %v2089_v2 = vmul.f32 %v6422_v22, %v6412_v52  ;;  %v6320_v22 = vld [vmem:[%s7662_s15 + $0x8] sm:$0xff]  }
 0xc3d   :  { %v2091_v3 = vpack.c.bf16 %v2090_v63, %v2089_v2 }
 0xc41   :  { %v6424_v4 = vpop.eup %6423 }
 0xc42   :  { %v6426_v5 = vpop.eup %6425  ;;  %v2207_v6 = vmul.f32 %v6424_v4, %v6418_v40 }
 0xc43   :  { %v2206_v7 = vmul.f32 %v6426_v5, %v6416_v37 }
 0xc45   :  { %v2208_v8 = vpack.c.bf16 %v2207_v6, %v2206_v7 }
 0xcfe   :  { %v5969_v28 = vpop.f32.mrb[40].mxu0 }
 0xcff   :  { %v2005_v58 = vpop.f32.mrb[41].mxu0  ;;  %v2014_v17 = vadd.f32 %v5969_v28, %v5353_v11 }
 0xd00   :  { %v5970_v60 = vpop.f32.mrb[42].mxu0  ;;  %v2006_v27 = vadd.f32 %v5353_v11, %v2005_v58 }
 0xd01   :  { %v2017_v61 = vadd.f32 %v5970_v60, %v5353_v11  ;;  %v2008_v20 = vpop.f32.mrb[43].mxu0 }
 0xd02   :  { %v2009_v62 = vadd.f32 %v5353_v11, %v2008_v20  ;;  %v6319_v20 = vld [vmem:[%s7662_s15] sm:$0xff]  }
 0xd03   :  { %v2209_v0 = vpack.c.bf16 %v2017_v61, %v2014_v17  ;;  %6001 = vmatprep.subr.bf16.mxu1 %v6319_v20 }
 0xd04   :  { %v2092_v1 = vpack.c.bf16 %v2009_v62, %v2006_v27  ;;  %6002 = vmatpush3.bf16.msra.mxu1 %v6319_v20 }
 0xd05   :  { %6003 = vmatprep.subr.bf16.mxu1 %v6320_v22 }
 0xd06   :  { %5978 = vmatpush3.bf16.msra.mxu0 %v2092_v1 }
 0xd07   :  { %5989 = vmatprep.subr.bf16.mxu0 %v6563_v23 }
 0xd08   :  { %6004 = vmatpush3.bf16.msra.mxu1 %v6320_v22 }
 0xd09   :  { %5980 = vmatmul.mubr.msk.bf16.vlgmr.msra.gmra.mrb[44].mxu0 %vm510_vm4, %v2091_v3 }
 0xd0a   :  { %5990 = vmatpush3.bf16.msra.mxu0 %v2209_v0  ;;  %5991 = vmatprep.mubr.msk.bf16.mxu0 %vm6564_vm2, %v6563_v23 }
 0xd0b   :  { %6284 = vmatprep.subr.msk.bf16.mxu0 %vm1165_vm5, %v5362_v49 }
 0xd11   :  { %5992 = vmatmul.mubr.msk.bf16.vlgmr.msra.gmra.mrb[48].mxu0 %vm510_vm4, %v2208_v8 }
 0xd12   :  { %5996 = vmatpush3.bf16.msra.mxu0 %v2265_v56  ;;  %v5366_v56 = vld [vmem:[%s7660_s13] ss:$0 sm:$0xff] }
 0xddc   :  { %v2130_v24 = vpop.f32.mrb[44].mxu0 }
 0xddd   :  { %v5981_v9 = vpop.f32.mrb[45].mxu0 }
 0xdde   :  { %v2133_v10 = vpop.f32.mrb[46].mxu0 }
 0xddf   :  { %v2254_v12 = vpack.c.bf16 %v2133_v10, %v2130_v24  ;;  %v5982_v14 = vpop.f32.mrb[47].mxu0 }
 0xde1   :  { %5997 = vmatprep.mubr.msk.bf16.mxu0 %vm462_vm3, %v2254_v12 }
 0xde4   :  { %v2247_v42 = vpop.f32.mrb[48].mxu0 }
 0xde5   :  { %v5993_v45 = vpop.f32.mrb[49].mxu0 }
 0xde6   :  { %v2250_v50 = vpop.f32.mrb[50].mxu0 }
 0xde7   :  { %v2255_v15 = vpack.c.bf16 %v2250_v50, %v2247_v42  ;;  %v5994_v19 = vpop.f32.mrb[51].mxu0  ;;  %v5367_v42 = vld [vmem:[%s7661_s14] ss:$0 sm:$0xff] }
 0xde9   :  { %5998 = vmatmul.mubr.msk.bf16.vlgmr.msra.gmra.mrb[24].mxu0 %vm462_vm3, %v2255_v15 }
 0xebc   :  { %v5999_v52 = vpop.f32.mrb[24].mxu0 }
 0xebd   :  { %v2301_v32 = vpop.f32.mrb[25].mxu0  ;;  %v2322_v30 = vadd.f32 %v5999_v52, %v6706_v13 }
 0xebe   :  { %v2320_v33 = vadd.f32 %v2301_v32, %v6711_v16  ;;  %v6000_v35 = vpop.f32.mrb[26].mxu0 }
 0xebf   :  { %v2304_v36 = vpop.f32.mrb[27].mxu0  ;;  %v2323_v39 = vadd.f32 %v6000_v35, %v6713_v18  ;;  %v7103_v41 = vadd.f32 %v5365_v29, %v2322_v30 }
 0xec0   :  { %v7099_v37 = vadd.f32 %v5365_v29, %v2320_v33  ;;  %v2321_v40 = vadd.f32 %v2304_v36, %v6717_v21 }
 0xec1   :  { %v7109_v46 = vadd.f32 %v5365_v29, %v2323_v39  ;;  %v2343_v16 = vsel %vm162_vm1, %v7103_v41, 0.0 }
 0xec2   :  { %v7105_v43 = vadd.f32 %v5365_v29, %v2321_v40  ;;  %v2337_v44 = vsel %vm162_vm1, %v7099_v37, 0.0  ;;  %v6321_v40 = vld [vmem:[%s7664_s17] sm:$0xff]  }
 0xec3   :  { %2338 = vadd.xlane.f32.xlu0 %v2337_v44  ;;  %v2346_v18 = vsel %vm162_vm1, %v7109_v46, 0.0  ;;  %v6322_v44 = vld [vmem:[%s7664_s17 + $0x8] sm:$0xff]   ;;  %6009 = vmatprep.subr.bf16.mxu1 %v6321_v40 }
 0xec4   :  { %v2340_v13 = vsel %vm162_vm1, %v7105_v43, 0.0 }
 0xec5   :  { %2341 = vadd.xlane.f32.xlu1 %v2340_v13  ;;  %v6323_v13 = vld [vmem:[%s7664_s17 + $0x10] sm:$0xff]  }
 0xec7   :  { %2344 = vadd.xlane.f32.xlu0 %v2343_v16  ;;  %v6324_v16 = vld [vmem:[%s7664_s17 + $0x18] sm:$0xff]  }
 0xec9   :  { %2347 = vadd.xlane.f32.xlu1 %v2346_v18  ;;  %v5368_v18 = vld [vmem:[%s7663_s16] ss:$0 sm:$0xff] }
 0xf50   :  { %v2339_v21 = vpop.xlane.xlu0 %2338 }
 0xf51   :  { %v2349_v47 = vmul.f32 0.03125, %v2339_v21 }
 0xf52   :  { %v2342_v48 = vpop.xlane.xlu1 %2341 }
 0xf53   :  { %v2353_v51 = vsub.f32 %v7099_v37, %v2349_v47  ;;  %v2350_v31 = vmul.f32 0.03125, %v2342_v48 }
 0xf54   :  { %v2345_v34 = vpop.xlane.xlu0 %2344 }
 0xf55   :  { %v2354_v38 = vsub.f32 %v7105_v43, %v2350_v31  ;;  %v2351_v53 = vmul.f32 0.03125, %v2345_v34  ;;  %v2357_v54 = vmul.f32 %v2353_v51, %v2353_v51 }
 0xf56   :  { %v2348_v55 = vpop.xlane.xlu1 %2347 }
 0xf57   :  { %v2355_v57 = vsub.f32 %v7103_v41, %v2351_v53  ;;  %v2352_v25 = vmul.f32 0.03125, %v2348_v55  ;;  %v2361_v26 = vsel %vm162_vm1, %v2357_v54, 0.0  ;;  %v2358_v28 = vmul.f32 %v2354_v38, %v2354_v38 }
 0xf58   :  { %2362 = vadd.xlane.f32.xlu0 %v2361_v26 }
 0xf59   :  { %v2356_v11 = vsub.f32 %v7109_v46, %v2352_v25  ;;  %v2364_v58 = vsel %vm162_vm1, %v2358_v28, 0.0  ;;  %v2359_v59 = vmul.f32 %v2355_v57, %v2355_v57 }
 0xf5a   :  { %2365 = vadd.xlane.f32.xlu1 %v2364_v58 }
 0xf5b   :  { %v2367_v60 = vsel %vm162_vm1, %v2359_v59, 0.0  ;;  %v2360_v17 = vmul.f32 %v2356_v11, %v2356_v11 }
 0xf5c   :  { %2368 = vadd.xlane.f32.xlu0 %v2367_v60 }
 0xf5d   :  { %v2370_v61 = vsel %vm162_vm1, %v2360_v17, 0.0 }
 0xf5e   :  { %2371 = vadd.xlane.f32.xlu1 %v2370_v61 }
 0xfe5   :  { %v2363_v27 = vpop.xlane.xlu0 %2362 }
 0xfe6   :  { %v2373_v62 = vmul.f32 0.03125, %v2363_v27 }
 0xfe7   :  { %v2366_v63 = vpop.xlane.xlu1 %2365 }
 0xfe8   :  { %v2377_v0 = vadd.f32 1e-06, %v2373_v62  ;;  %v2374_v1 = vmul.f32 0.03125, %v2366_v63 }
 0xfe9   :  { %v2369_v2 = vpop.xlane.xlu0 %2368 }
 0xfea   :  { %6427 = vrsqrt.f32 %v2377_v0  ;;  %v2378_v3 = vadd.f32 1e-06, %v2374_v1  ;;  %v2375_v4 = vmul.f32 0.03125, %v2369_v2 }
 0xfeb   :  { %v2372_v5 = vpop.xlane.xlu1 %2371 }
 0xfec   :  { %6429 = vrsqrt.f32 %v2378_v3  ;;  %v2379_v6 = vadd.f32 1e-06, %v2375_v4  ;;  %v2376_v7 = vmul.f32 0.03125, %v2372_v5 }
 0xfee   :  { %6431 = vrsqrt.f32 %v2379_v6  ;;  %v2380_v8 = vadd.f32 1e-06, %v2376_v7 }
 0xff0   :  { %6433 = vrsqrt.f32 %v2380_v8 }
 0xff4   :  { %v6428_v49 = vpop.eup %6427 }
 0xff5   :  { %v2385_v24 = vmul.f32 %v6428_v49, %v2353_v51 }
 0xff6   :  { %v6430_v9 = vpop.eup %6429 }
 0xff7   :  { %v2386_v10 = vmul.f32 %v6430_v9, %v2354_v38  ;;  %v2395_v12 = vmul.f32 %v5366_v56, %v2385_v24 }
 0xff8   :  { %v6432_v14 = vpop.eup %6431 }
 0xff9   :  { %v2387_v45 = vmul.f32 %v6432_v14, %v2355_v57  ;;  %v2396_v50 = vmul.f32 %v5366_v56, %v2386_v10  ;;  %v2405_v29 = vadd.f32 %v5367_v42, %v2395_v12 }
 0xffa   :  { %v6434_v15 = vpop.eup %6433 }
 0xffb   :  { %v2397_v19 = vmul.f32 %v5366_v56, %v2387_v45  ;;  %v2388_v52 = vmul.f32 %v6434_v15, %v2356_v11  ;;  %v2406_v32 = vadd.f32 %v5367_v42, %v2396_v50 }
 0xffd   :  { %v2398_v30 = vmul.f32 %v5366_v56, %v2388_v52  ;;  %v2413_v33 = vpack.c.bf16 %v2406_v32, %v2405_v29  ;;  %v2407_v35 = vadd.f32 %v5367_v42, %v2397_v19  ;;  %v5379_v29 = vld [vmem:[%s7665_s18] ss:$0 sm:$0xff] }
 0xfff   :  { %6005 = vmatprep.mubr.msk.bf16.mxu1 %vm162_vm1, %v2413_v33  ;;  %v2408_v36 = vadd.f32 %v5367_v42, %v2398_v30 }
0x1001   :  { %v2414_v39 = vpack.c.bf16 %v2408_v36, %v2407_v35 }
0x1003   :  { %6006 = vmatmul.mubr.msk.bf16.vlgmr.msra.gmra.mrb[68].mxu1 %vm162_vm1, %v2414_v39 }
0x1004   :  { %6010 = vmatpush3.bf16.msra.mxu1 %v6321_v40 }
0x1005   :  { %6011 = vmatprep.subr.bf16.mxu1 %v6322_v44 }
0x1008   :  { %6012 = vmatpush3.bf16.msra.mxu1 %v6322_v44 }
0x1009   :  { %6013 = vmatprep.subr.bf16.mxu1 %v6323_v13 }
0x100c   :  { %6014 = vmatpush3.bf16.msra.mxu1 %v6323_v13 }
0x100d   :  { %6015 = vmatprep.subr.bf16.mxu1 %v6324_v16 }
0x1010   :  { %6016 = vmatpush3.bf16.msra.mxu1 %v6324_v16 }
0x10d6   :  { %v6007_v21 = vpop.f32.mrb[68].mxu1 }
0x10d7   :  { %v2483_v47 = vadd.f32 %v6007_v21, %v5368_v18  ;;  %v2474_v48 = vpop.f32.mrb[69].mxu1 }
0x10d8   :  { %v2475_v51 = vadd.f32 %v5368_v18, %v2474_v48  ;;  %v6008_v31 = vpop.f32.mrb[70].mxu1 }
0x10d9   :  { %v2495_v34 = vmul.f32 0.044715, %v2483_v47  ;;  %v2486_v38 = vadd.f32 %v6008_v31, %v5368_v18  ;;  %v2477_v53 = vpop.f32.mrb[71].mxu1  ;;  %v2491_v49 = vmul.f32 0.5, %v2483_v47 }
0x10da   :  { %v2493_v54 = vmul.f32 0.044715, %v2475_v51  ;;  %v2478_v55 = vadd.f32 %v5368_v18, %v2477_v53  ;;  %v2489_v9 = vmul.f32 0.5, %v2475_v51 }
0x10db   :  { %v2499_v57 = vmul.f32 %v2495_v34, %v2483_v47  ;;  %v2496_v25 = vmul.f32 0.044715, %v2486_v38  ;;  %v2492_v56 = vmul.f32 0.5, %v2486_v38 }
0x10dc   :  { %v2497_v26 = vmul.f32 %v2493_v54, %v2475_v51  ;;  %v2494_v28 = vmul.f32 0.044715, %v2478_v55  ;;  %v2490_v10 = vmul.f32 0.5, %v2478_v55 }
0x10dd   :  { %v2503_v11 = vmul.f32 %v2499_v57, %v2483_v47  ;;  %v2500_v58 = vmul.f32 %v2496_v25, %v2486_v38 }
0x10de   :  { %v2501_v59 = vmul.f32 %v2497_v26, %v2475_v51  ;;  %v2498_v60 = vmul.f32 %v2494_v28, %v2478_v55 }
0x10df   :  { %v2507_v17 = vadd.f32 %v2503_v11, %v2483_v47  ;;  %v2504_v61 = vmul.f32 %v2500_v58, %v2486_v38 }
0x10e0   :  { %v2505_v20 = vadd.f32 %v2501_v59, %v2475_v51  ;;  %v2502_v22 = vmul.f32 %v2498_v60, %v2478_v55 }
0x10e1   :  { %v2511_v27 = vmul.f32 0.7978846, %v2507_v17  ;;  %v2508_v62 = vadd.f32 %v2504_v61, %v2486_v38 }
0x10e2   :  { %v2509_v63 = vmul.f32 0.7978846, %v2505_v20  ;;  %v2506_v0 = vadd.f32 %v2502_v22, %v2478_v55  ;;  %v6325_v20 = vld [vmem:[%s7684_s23 + $0x40] sm:$0xff]  }
0x10e3   :  { %6435 = vtanh.f32 %v2511_v27  ;;  %v2512_v1 = vmul.f32 0.7978846, %v2508_v62  ;;  %v6326_v22 = vld [vmem:[%s7656_s9 + $0x40] sm:$0xff]   ;;  %6021 = vmatprep.subr.bf16.mxu0 %v6325_v20  ;;  %v6327_v27 = vld [vmem:[%s7684_s23 + $0x48] sm:$0xff]  }
0x10e4   :  { %6437 = vtanh.f32 %v2509_v63  ;;  %v2510_v2 = vmul.f32 0.7978846, %v2506_v0  ;;  %6037 = vmatprep.subr.bf16.mxu1 %v6326_v22  ;;  %6022 = vmatpush3.bf16.msra.mxu0 %v6325_v20  ;;  %v6328_v62 = vld [vmem:[%s7656_s9 + $0x48] sm:$0xff]   ;;  %v6329_v63 = vld [vmem:[%s7654_s7 + $0x40] sm:$0xff]  }
0x10e5   :  { %6439 = vtanh.f32 %v2512_v1  ;;  %6023 = vmatprep.subr.bf16.mxu0 %v6327_v27 }
0x10e6   :  { %6441 = vtanh.f32 %v2510_v2 }
0x10e8   :  { %6024 = vmatpush3.bf16.msra.mxu0 %v6327_v27  ;;  %v5399_v27 = vld [vmem:[%s7655_s8 + $0x4] ss:$0 sm:$0xff] }
0x10e9   :  { %6029 = vmatprep.subr.bf16.mxu0 %v6329_v63 }
0x10ed   :  { %v6436_v3 = vpop.eup %6435 }
0x10ee   :  { %v6438_v4 = vpop.eup %6437  ;;  %v2519_v5 = vadd.f32 1.0, %v6436_v3 }
0x10ef   :  { %v6440_v6 = vpop.eup %6439  ;;  %v2517_v7 = vadd.f32 1.0, %v6438_v4 }
0x10f0   :  { %v6442_v8 = vpop.eup %6441  ;;  %v2520_v24 = vadd.f32 1.0, %v6440_v6  ;;  %v2523_v14 = vmul.f32 %v2519_v5, %v2491_v49 }
0x10f1   :  { %v2518_v12 = vadd.f32 1.0, %v6442_v8  ;;  %v2521_v45 = vmul.f32 %v2517_v7, %v2489_v9 }
0x10f2   :  { %v2524_v42 = vmul.f32 %v2520_v24, %v2492_v56 }
0x10f3   :  { %v2522_v50 = vmul.f32 %v2518_v12, %v2490_v10  ;;  %v5382_v10 = vld [vmem:[%s7685_s26 + $0x1] ss:$0 sm:$0xff] }
0x10f4   :  { %v2534_v15 = vpack.c.bf16 %v2524_v42, %v2523_v14 }
0x10f5   :  { %v2533_v19 = vpack.c.bf16 %v2522_v50, %v2521_v45 }
0x10f7   :  { %6017 = vmatprep.mubr.msk.bf16.mxu1 %vm2559_vm6, %v2533_v19 }
0x10f8   :  { %6018 = vmatmul.mubr.msk.bf16.vlgmr.msra.gmra.mrb[72].mxu1 %vm2559_vm6, %v2534_v15  ;;  %v5383_v15 = vld [vmem:[%s7686_s4 + $0x1] ss:$0 sm:$0xff] }
0x10f9   :  { %6038 = vmatpush3.bf16.msra.mxu1 %v6326_v22 }
0x10fa   :  { %6039 = vmatprep.subr.bf16.mxu1 %v6328_v62 }
0x10fd   :  { %6040 = vmatpush3.bf16.msra.mxu1 %v6328_v62 }
0x10fe   :  { %6051 = vmatprep.subr.bf16.mxu1 %v6563_v23 }
0x11cb   :  { %v6019_v52 = vpop.f32.mrb[72].mxu1 }
0x11cc   :  { %v2600_v32 = vpop.f32.mrb[73].mxu1  ;;  %v2617_v30 = vadd.f32 %v6019_v52, %v7103_v41 }
0x11cd   :  { %v2615_v33 = vadd.f32 %v2600_v32, %v7099_v37  ;;  %v6020_v35 = vpop.f32.mrb[74].mxu1 }
0x11ce   :  { %v2603_v36 = vpop.f32.mrb[75].mxu1  ;;  %v2618_v40 = vadd.f32 %v6020_v35, %v7109_v46  ;;  %v7165_v13 = vadd.f32 %v5379_v29, %v2617_v30 }
0x11cf   :  { %v7161_v39 = vadd.f32 %v5379_v29, %v2615_v33  ;;  %v2616_v44 = vadd.f32 %v2603_v36, %v7105_v43 }
0x11d0   :  { %v7171_v21 = vadd.f32 %v5379_v29, %v2618_v40  ;;  %v2640_v41 = vsel %vm162_vm1, %v7165_v13, 0.0 }
0x11d1   :  { %v7167_v16 = vadd.f32 %v5379_v29, %v2616_v44  ;;  %v2634_v18 = vsel %vm162_vm1, %v7161_v39, 0.0 }
0x11d2   :  { %2635 = vadd.xlane.f32.xlu0 %v2634_v18  ;;  %v2643_v43 = vsel %vm162_vm1, %v7171_v21, 0.0 }
0x11d3   :  { %v2637_v37 = vsel %vm162_vm1, %v7167_v16, 0.0 }
0x11d4   :  { %2638 = vadd.xlane.f32.xlu1 %v2637_v37 }
0x11d6   :  { %2641 = vadd.xlane.f32.xlu0 %v2640_v41  ;;  %v6330_v41 = vld [vmem:[%s7654_s7 + $0x48] sm:$0xff]  }
0x11d8   :  { %2644 = vadd.xlane.f32.xlu1 %v2643_v43  ;;  %v5409_v43 = vld [vmem:[%s7657_s10 + $0x4] ss:$0 sm:$0xff] }
0x125f   :  { %v2636_v46 = vpop.xlane.xlu0 %2635 }
0x1260   :  { %v2646_v47 = vmul.f32 0.03125, %v2636_v46 }
0x1261   :  { %v2639_v48 = vpop.xlane.xlu1 %2638 }
0x1262   :  { %v2650_v51 = vsub.f32 %v7161_v39, %v2646_v47  ;;  %v2647_v31 = vmul.f32 0.03125, %v2639_v48  ;;  %v5389_v47 = vld [vmem:[%s7653_s6 + $0x4] ss:$0 sm:$0xff] }
0x1263   :  { %v2642_v34 = vpop.xlane.xlu0 %2641 }
0x1264   :  { %v2651_v38 = vsub.f32 %v7167_v16, %v2647_v31  ;;  %v2648_v53 = vmul.f32 0.03125, %v2642_v34  ;;  %v2654_v54 = vmul.f32 %v2650_v51, %v2650_v51 }
0x1265   :  { %v2645_v55 = vpop.xlane.xlu1 %2644 }
0x1266   :  { %v2652_v57 = vsub.f32 %v7165_v13, %v2648_v53  ;;  %v2649_v25 = vmul.f32 0.03125, %v2645_v55  ;;  %v2658_v26 = vsel %vm162_vm1, %v2654_v54, 0.0  ;;  %v2655_v28 = vmul.f32 %v2651_v38, %v2651_v38 }
0x1267   :  { %2659 = vadd.xlane.f32.xlu0 %v2658_v26 }
0x1268   :  { %v2653_v11 = vsub.f32 %v7171_v21, %v2649_v25  ;;  %v2661_v58 = vsel %vm162_vm1, %v2655_v28, 0.0  ;;  %v2656_v59 = vmul.f32 %v2652_v57, %v2652_v57 }
0x1269   :  { %2662 = vadd.xlane.f32.xlu1 %v2661_v58 }
0x126a   :  { %v2664_v60 = vsel %vm162_vm1, %v2656_v59, 0.0  ;;  %v2657_v17 = vmul.f32 %v2653_v11, %v2653_v11 }
0x126b   :  { %2665 = vadd.xlane.f32.xlu0 %v2664_v60 }
0x126c   :  { %v2667_v61 = vsel %vm162_vm1, %v2657_v17, 0.0 }
0x126d   :  { %2668 = vadd.xlane.f32.xlu1 %v2667_v61 }
0x12f4   :  { %v2660_v0 = vpop.xlane.xlu0 %2659 }
0x12f5   :  { %v2670_v1 = vmul.f32 0.03125, %v2660_v0 }
0x12f6   :  { %v2663_v2 = vpop.xlane.xlu1 %2662 }
0x12f7   :  { %v2674_v3 = vadd.f32 1e-06, %v2670_v1  ;;  %v2671_v4 = vmul.f32 0.03125, %v2663_v2 }
0x12f8   :  { %v2666_v5 = vpop.xlane.xlu0 %2665 }
0x12f9   :  { %6443 = vrsqrt.f32 %v2674_v3  ;;  %v2675_v6 = vadd.f32 1e-06, %v2671_v4  ;;  %v2672_v7 = vmul.f32 0.03125, %v2666_v5 }
0x12fa   :  { %v2669_v8 = vpop.xlane.xlu1 %2668 }
0x12fb   :  { %6445 = vrsqrt.f32 %v2675_v6  ;;  %v2676_v49 = vadd.f32 1e-06, %v2672_v7  ;;  %v2673_v56 = vmul.f32 0.03125, %v2669_v8  ;;  %v6331_v8 = vld [vmem:[%s7684_s23 + $0x50] sm:$0xff]  }
0x12fd   :  { %6447 = vrsqrt.f32 %v2676_v49  ;;  %v2677_v24 = vadd.f32 1e-06, %v2673_v56  ;;  %v6332_v56 = vld [vmem:[%s7684_s23 + $0x58] sm:$0xff]  }
0x12ff   :  { %6449 = vrsqrt.f32 %v2677_v24  ;;  %v6333_v24 = vld [vmem:[%s7656_s9 + $0x50] sm:$0xff]  }
0x1303   :  { %v6444_v9 = vpop.eup %6443 }
0x1304   :  { %v2682_v12 = vmul.f32 %v6444_v9, %v2650_v51  ;;  %v6334_v9 = vld [vmem:[%s7656_s9 + $0x58] sm:$0xff]  }
0x1305   :  { %v6446_v14 = vpop.eup %6445 }
0x1306   :  { %v2692_v42 = vmul.f32 %v5382_v10, %v2682_v12  ;;  %v2683_v45 = vmul.f32 %v6446_v14, %v2651_v38 }
0x1307   :  { %v6448_v50 = vpop.eup %6447 }
0x1308   :  { %v2693_v19 = vmul.f32 %v5382_v10, %v2683_v45  ;;  %v2684_v52 = vmul.f32 %v6448_v50, %v2652_v57  ;;  %v2702_v32 = vadd.f32 %v5383_v15, %v2692_v42 }
0x1309   :  { %v6450_v29 = vpop.eup %6449 }
0x130a   :  { %v2703_v30 = vadd.f32 %v5383_v15, %v2693_v19  ;;  %v2694_v33 = vmul.f32 %v5382_v10, %v2684_v52  ;;  %v2685_v35 = vmul.f32 %v6450_v29, %v2653_v11 }
0x130c   :  { %v7209_v36 = vpack.c.bf16 %v2703_v30, %v2702_v32  ;;  %v2695_v40 = vmul.f32 %v5382_v10, %v2685_v35  ;;  %v2704_v44 = vadd.f32 %v5383_v15, %v2694_v33  ;;  %v5424_v35 = vld [vmem:[%s7653_s6 + $0x5] ss:$0 sm:$0xff] }
0x130e   :  { %v2705_v18 = vadd.f32 %v5383_v15, %v2695_v40  ;;  %6025 = vmatprep.mubr.msk.bf16.mxu0 %vm162_vm1, %v7209_v36  ;;  %6041 = vmatprep.mubr.msk.bf16.mxu1 %vm162_vm1, %v7209_v36 }
0x1310   :  { %v7215_v37 = vpack.c.bf16 %v2705_v18, %v2704_v44 }
0x1312   :  { %6026 = vmatmul.mubr.msk.bf16.vlgmr.msra.gmra.mrb[52].mxu0 %vm162_vm1, %v7215_v37  ;;  %6042 = vmatmul.mubr.msk.bf16.vlgmr.msra.gmra.mrb[76].mxu1 %vm162_vm1, %v7215_v37 }
0x1313   :  { %6030 = vmatpush3.bf16.msra.mxu0 %v6329_v63  ;;  %6033 = vmatprep.mubr.msk.bf16.mxu0 %vm162_vm1, %v7209_v36 }
0x1314   :  { %6031 = vmatprep.subr.bf16.mxu0 %v6330_v41  ;;  %6053 = vmatprep.mubr.msk.bf16.mxu1 %vm6564_vm2, %v6563_v23 }
0x1317   :  { %6032 = vmatpush3.bf16.msra.mxu0 %v6330_v41 }
0x1318   :  { %6045 = vmatprep.subr.bf16.mxu0 %v6563_v23 }
0x131a   :  { %6034 = vmatmul.mubr.msk.bf16.vlgmr.msra.gmra.mrb[56].mxu0 %vm162_vm1, %v7215_v37 }
0x131b   :  { %6047 = vmatprep.mubr.msk.bf16.mxu0 %vm6564_vm2, %v6563_v23 }
0x13e5   :  { %v6027_v46 = vpop.f32.mrb[52].mxu0  ;;  %v6043_v48 = vpop.f32.mrb[76].mxu1 }
0x13e6   :  { %v7239_v51 = vadd.f32 %v6043_v48, %v5409_v43  ;;  %v2773_v31 = vpop.f32.mrb[53].mxu0  ;;  %v2921_v34 = vpop.f32.mrb[77].mxu1  ;;  %v2782_v54 = vadd.f32 %v6027_v46, %v5389_v47 }
0x13e7   :  { %v6028_v38 = vpop.f32.mrb[54].mxu0  ;;  %v6044_v53 = vpop.f32.mrb[78].mxu1  ;;  %v2774_v28 = vadd.f32 %v5389_v47, %v2773_v31  ;;  %v2922_v11 = vadd.f32 %v5409_v43, %v2921_v34  ;;  %v5444_v34 = vld [vmem:[%s7657_s10 + $0x5] ss:$0 sm:$0xff] }
0x13e8   :  { %v2785_v55 = vadd.f32 %v6028_v38, %v5389_v47  ;;  %v7241_v57 = vadd.f32 %v6044_v53, %v5409_v43  ;;  %v2776_v25 = vpop.f32.mrb[55].mxu0  ;;  %v2924_v26 = vpop.f32.mrb[79].mxu1 }
0x13e9   :  { %v2777_v58 = vadd.f32 %v5389_v47, %v2776_v25  ;;  %v2925_v59 = vadd.f32 %v5409_v43, %v2924_v26 }
0x13ea   :  { %v3053_v60 = vpack.c.bf16 %v2785_v55, %v2782_v54  ;;  %v3125_v17 = vpack.c.bf16 %v7241_v57, %v7239_v51 }
0x13eb   :  { %v2936_v61 = vpack.c.bf16 %v2777_v58, %v2774_v28  ;;  %v3008_v20 = vpack.c.bf16 %v2925_v59, %v2922_v11 }
0x13ed   :  { %v6035_v22 = vpop.f32.mrb[56].mxu0  ;;  %6052 = vmatpush3.bf16.msra.mxu1 %v3008_v20 }
0x13ee   :  { %v2847_v62 = vpop.f32.mrb[57].mxu0  ;;  %6063 = vmatprep.subr.bf16.mxu1 %v6563_v23  ;;  %v2856_v0 = vadd.f32 %v6035_v22, %v5399_v27 }
0x13ef   :  { %v6036_v63 = vpop.f32.mrb[58].mxu0  ;;  %v2848_v3 = vadd.f32 %v5399_v27, %v2847_v62 }
0x13f0   :  { %v2859_v1 = vadd.f32 %v6036_v63, %v5399_v27  ;;  %v2850_v2 = vpop.f32.mrb[59].mxu0 }
0x13f1   :  { %v2851_v4 = vadd.f32 %v5399_v27, %v2850_v2 }
0x13f2   :  { %v3054_v5 = vpack.c.bf16 %v2859_v1, %v2856_v0 }
0x13f3   :  { %v2937_v6 = vpack.c.bf16 %v2851_v4, %v2848_v3 }
0x13f4   :  { %v3059_v49 = vsel %vm462_vm3, %v3054_v5, 0 }
0x13f5   :  { %v2942_v7 = vsel %vm462_vm3, %v2937_v6, 0 }
0x13f6   :  { %6046 = vmatpush3.bf16.xpose.msra.mxu0 %v2942_v7 }
0x13f7   :  { %6057 = vmatprep.subr.bf16.mxu0 %v6563_v23 }
0x13fd   :  { %6048 = vmatmul.mubr.msk.bf16.vlgmr.msra.gmra.mrb[60].mxu0 %vm462_vm3, %v2936_v61 }
0x13fe   :  { %6058 = vmatpush3.bf16.xpose.msra.mxu0 %v3059_v49  ;;  %6059 = vmatprep.mubr.msk.bf16.mxu0 %vm6564_vm2, %v6563_v23 }
0x13ff   :  { %6069 = vmatprep.subr.bf16.mxu0 %v6331_v8 }
0x1405   :  { %6060 = vmatmul.mubr.msk.bf16.vlgmr.msra.gmra.mrb[64].mxu0 %vm462_vm3, %v3053_v60 }
0x1406   :  { %6070 = vmatpush3.bf16.msra.mxu0 %v6331_v8  ;;  %6073 = vmatprep.mubr.msk.bf16.mxu0 %vm162_vm1, %v7209_v36 }
0x1407   :  { %6071 = vmatprep.subr.bf16.mxu0 %v6332_v56 }
0x140a   :  { %6072 = vmatpush3.bf16.msra.mxu0 %v6332_v56 }
0x140b   :  { %6085 = vmatprep.subr.bf16.mxu0 %v6333_v24 }
0x140d   :  { %6074 = vmatmul.mubr.msk.bf16.vlgmr.msra.gmra.mrb[68].mxu0 %vm162_vm1, %v7215_v37 }
0x140e   :  { %6086 = vmatpush3.bf16.msra.mxu0 %v6333_v24  ;;  %6089 = vmatprep.mubr.msk.bf16.mxu0 %vm162_vm1, %v7209_v36 }
0x140f   :  { %6087 = vmatprep.subr.bf16.mxu0 %v6334_v9 }
0x1412   :  { %6088 = vmatpush3.bf16.msra.mxu0 %v6334_v9 }
0x1413   :  { %6099 = vmatprep.subr.bf16.mxu0 %v6563_v23 }
0x1415   :  { %6090 = vmatmul.mubr.msk.bf16.vlgmr.msra.gmra.mrb[72].mxu0 %vm162_vm1, %v7215_v37 }
0x1416   :  { %6101 = vmatprep.mubr.msk.bf16.mxu0 %vm6564_vm2, %v6563_v23 }
0x14d0   :  { %v2978_v10 = vpop.f32.mrb[60].mxu0 }
0x14d1   :  { %v6049_v12 = vpop.f32.mrb[61].mxu0  ;;  %v2985_v14 = vsel %vm510_vm4, %v2978_v10, -inf }
0x14d2   :  { %2986 = vmax.xlane.f32.xlu0 %v2985_v14  ;;  %v2981_v42 = vpop.f32.mrb[62].mxu0 }
0x14d3   :  { %v6050_v45 = vpop.f32.mrb[63].mxu0  ;;  %v2988_v50 = vsel %vm510_vm4, %v2981_v42, -inf }
0x14d4   :  { %2989 = vmax.xlane.f32.xlu1 %v2988_v50 }
0x14d8   :  { %v3095_v15 = vpop.f32.mrb[64].mxu0 }
0x14d9   :  { %v6061_v19 = vpop.f32.mrb[65].mxu0  ;;  %v3102_v52 = vsel %vm510_vm4, %v3095_v15, -inf }
0x14da   :  { %3103 = vmax.xlane.f32.xlu0 %v3102_v52  ;;  %v3098_v29 = vpop.f32.mrb[66].mxu0 }
0x14db   :  { %v6062_v32 = vpop.f32.mrb[67].mxu0  ;;  %v3105_v30 = vsel %vm510_vm4, %v3098_v29, -inf }
0x14dc   :  { %3106 = vmax.xlane.f32.xlu1 %v3105_v30 }
0x14e0   :  { %v6075_v33 = vpop.f32.mrb[68].mxu0 }
0x14e1   :  { %v3233_v40 = vpop.f32.mrb[69].mxu0  ;;  %v7286_v18 = vadd.f32 %v6075_v33, %v5424_v35 }
0x14e2   :  { %v6076_v44 = vpop.f32.mrb[70].mxu0  ;;  %v7290_v46 = vadd.f32 %v5424_v35, %v3233_v40 }
0x14e3   :  { %v7288_v41 = vadd.f32 %v6076_v44, %v5424_v35  ;;  %v3236_v43 = vpop.f32.mrb[71].mxu0  ;;  %v6336_v44 = vld [vmem:[%s7654_s7 + $0x58] sm:$0xff]  }
0x14e4   :  { %v7292_v47 = vadd.f32 %v5424_v35, %v3236_v43 }
0x14e5   :  { %v3513_v48 = vpack.c.bf16 %v7288_v41, %v7286_v18 }
0x14e6   :  { %v3396_v31 = vpack.c.bf16 %v7292_v47, %v7290_v46 }
0x14e8   :  { %v6091_v38 = vpop.f32.mrb[72].mxu0 }
0x14e9   :  { %v7301_v53 = vadd.f32 %v6091_v38, %v5444_v34  ;;  %v3381_v54 = vpop.f32.mrb[73].mxu0 }
0x14ea   :  { %v6092_v55 = vpop.f32.mrb[74].mxu0  ;;  %v3382_v28 = vadd.f32 %v5444_v34, %v3381_v54 }
0x14eb   :  { %v7303_v25 = vadd.f32 %v6092_v55, %v5444_v34  ;;  %v3384_v26 = vpop.f32.mrb[75].mxu0 }
0x14ec   :  { %v3385_v11 = vadd.f32 %v5444_v34, %v3384_v26 }
0x14ed   :  { %v3585_v58 = vpack.c.bf16 %v7303_v25, %v7301_v53  ;;  %v6339_v53 = vld [vmem:[%s7654_s7 + $0x60] sm:$0xff]   ;;  %v6340_v25 = vld [vmem:[%s7654_s7 + $0x68] sm:$0xff]  }
0x14ee   :  { %v3468_v59 = vpack.c.bf16 %v3385_v11, %v3382_v28 }
0x14f0   :  { %6100 = vmatpush3.bf16.msra.mxu0 %v3468_v59  ;;  %v5434_v59 = vld [vmem:[%s7655_s8 + $0x5] ss:$0 sm:$0xff] }
0x14f1   :  { %6111 = vmatprep.subr.bf16.mxu0 %v6563_v23 }
0x155f   :  { %v2987_v60 = vpop.xlane.xlu0 %2986 }
0x1560   :  { %v2991_v61 = vsub.f32 %v2978_v10, %v2987_v60 }
0x1561   :  { %v2990_v20 = vpop.xlane.xlu1 %2989 }
0x1562   :  { %v2993_v22 = vmul.f32 1.442695, %v2991_v61  ;;  %v2992_v27 = vsub.f32 %v2981_v42, %v2990_v20 }
0x1564   :  { %6451 = vpow2.f32 %v2993_v22  ;;  %v2995_v62 = vmul.f32 1.442695, %v2992_v27 }
0x1566   :  { %6453 = vpow2.f32 %v2995_v62 }
0x1567   :  { %v3104_v63 = vpop.xlane.xlu0 %3103 }
0x1568   :  { %v3108_v0 = vsub.f32 %v3095_v15, %v3104_v63 }
0x1569   :  { %v3107_v1 = vpop.xlane.xlu1 %3106 }
0x156a   :  { %v3110_v2 = vmul.f32 1.442695, %v3108_v0  ;;  %v3109_v3 = vsub.f32 %v3098_v29, %v3107_v1  ;;  %v6335_v29 = vld [vmem:[%s7654_s7 + $0x50] sm:$0xff]  }
0x156c   :  { %6455 = vpow2.f32 %v3110_v2  ;;  %v3112_v4 = vmul.f32 1.442695, %v3109_v3 }
0x156e   :  { %v6452_v5 = vpop.eup %6451  ;;  %6457 = vpow2.f32 %v3112_v4 }
0x156f   :  { %v2997_v6 = vsel %vm510_vm4, %v6452_v5, 0.0 }
0x1570   :  { %v6454_v7 = vpop.eup %6453  ;;  %2998 = vadd.xlane.f32.xlu0 %v2997_v6 }
0x1571   :  { %v3000_v8 = vsel %vm510_vm4, %v6454_v7, 0.0 }
0x1572   :  { %3001 = vadd.xlane.f32.xlu1 %v3000_v8 }
0x1576   :  { %v6456_v49 = vpop.eup %6455 }
0x1577   :  { %v3114_v56 = vsel %vm510_vm4, %v6456_v49, 0.0 }
0x1578   :  { %v6458_v24 = vpop.eup %6457  ;;  %3115 = vadd.xlane.f32.xlu0 %v3114_v56 }
0x1579   :  { %v3117_v9 = vsel %vm510_vm4, %v6458_v24, 0.0 }
0x157a   :  { %3118 = vadd.xlane.f32.xlu1 %v3117_v9 }
0x15fd   :  { %v2999_v10 = vpop.xlane.xlu0 %2998 }
0x15fe   :  { %6459 = vrcp.f32 %v2999_v10 }
0x15ff   :  { %v3002_v12 = vpop.xlane.xlu1 %3001 }
0x1600   :  { %6461 = vrcp.f32 %v3002_v12 }
0x1605   :  { %v3116_v14 = vpop.xlane.xlu0 %3115 }
0x1606   :  { %6463 = vrcp.f32 %v3116_v14 }
0x1607   :  { %v3119_v42 = vpop.xlane.xlu1 %3118 }
0x1608   :  { %v6460_v45 = vpop.eup %6459  ;;  %6465 = vrcp.f32 %v3119_v42 }
0x1609   :  { %v3005_v15 = vmul.f32 %v6460_v45, %v6452_v5 }
0x160a   :  { %v6462_v50 = vpop.eup %6461 }
0x160b   :  { %v3006_v19 = vmul.f32 %v6462_v50, %v6454_v7 }
0x160d   :  { %v3007_v52 = vpack.c.bf16 %v3006_v19, %v3005_v15 }
0x160f   :  { %6054 = vmatmul.mubr.msk.bf16.vlgmr.msra.gmra.mrb[80].mxu1 %vm510_vm4, %v3007_v52 }
0x1610   :  { %v6464_v32 = vpop.eup %6463  ;;  %6064 = vmatpush3.bf16.msra.mxu1 %v3125_v17  ;;  %6065 = vmatprep.mubr.msk.bf16.mxu1 %vm6564_vm2, %v6563_v23 }
0x1611   :  { %6077 = vmatprep.subr.bf16.mxu1 %v6335_v29  ;;  %v3122_v33 = vmul.f32 %v6464_v32, %v6456_v49 }
0x1612   :  { %v6466_v30 = vpop.eup %6465 }
0x1613   :  { %v3123_v35 = vmul.f32 %v6466_v30, %v6458_v24 }
0x1615   :  { %v3124_v40 = vpack.c.bf16 %v3123_v35, %v3122_v33 }
0x1617   :  { %6066 = vmatmul.mubr.msk.bf16.vlgmr.msra.gmra.mrb[84].mxu1 %vm510_vm4, %v3124_v40 }
0x1618   :  { %6078 = vmatpush3.bf16.msra.mxu1 %v6335_v29  ;;  %6081 = vmatprep.mubr.msk.bf16.mxu1 %vm162_vm1, %v7209_v36 }
0x1619   :  { %6079 = vmatprep.subr.bf16.mxu1 %v6336_v44 }
0x161c   :  { %6080 = vmatpush3.bf16.msra.mxu1 %v6336_v44 }
0x161d   :  { %6093 = vmatprep.subr.bf16.mxu1 %v6563_v23 }
0x161f   :  { %6082 = vmatmul.mubr.msk.bf16.vlgmr.msra.gmra.mrb[88].mxu1 %vm162_vm1, %v7215_v37 }
0x1620   :  { %6095 = vmatprep.mubr.msk.bf16.mxu1 %vm6564_vm2, %v6563_v23 }
0x16e2   :  { %v7332_v51 = vpop.f32.mrb[80].mxu1 }
0x16e3   :  { %v6055_v57 = vpop.f32.mrb[81].mxu1 }
0x16e4   :  { %v7334_v17 = vpop.f32.mrb[82].mxu1 }
0x16e5   :  { %v3170_v43 = vpack.c.bf16 %v7334_v17, %v7332_v51  ;;  %v6056_v34 = vpop.f32.mrb[83].mxu1  ;;  %v6342_v51 = vld [vmem:[%s7656_s9 + $0x68] sm:$0xff]  }
0x16ea   :  { %v7338_v38 = vpop.f32.mrb[84].mxu1 }
0x16eb   :  { %v6067_v54 = vpop.f32.mrb[85].mxu1 }
0x16ec   :  { %v7340_v55 = vpop.f32.mrb[86].mxu1 }
0x16ed   :  { %v3171_v26 = vpack.c.bf16 %v7340_v55, %v7338_v38  ;;  %v6068_v28 = vpop.f32.mrb[87].mxu1  ;;  %v6343_v55 = vld [vmem:[%s7684_s23 + $0x70] sm:$0xff]  }
0x16f2   :  { %v6083_v11 = vpop.f32.mrb[88].mxu1 }
0x16f3   :  { %v3307_v60 = vpop.f32.mrb[89].mxu1  ;;  %v3316_v20 = vadd.f32 %v6083_v11, %v5434_v59 }
0x16f4   :  { %v6084_v61 = vpop.f32.mrb[90].mxu1  ;;  %v3308_v62 = vadd.f32 %v5434_v59, %v3307_v60 }
0x16f5   :  { %v3319_v22 = vadd.f32 %v6084_v61, %v5434_v59  ;;  %v3310_v27 = vpop.f32.mrb[91].mxu1 }
0x16f6   :  { %v3311_v63 = vadd.f32 %v5434_v59, %v3310_v27  ;;  %v6337_v27 = vld [vmem:[%s7684_s23 + $0x60] sm:$0xff]  }
0x16f7   :  { %v3514_v0 = vpack.c.bf16 %v3319_v22, %v3316_v20 }
0x16f8   :  { %v3397_v1 = vpack.c.bf16 %v3311_v63, %v3308_v62 }
0x16f9   :  { %v3519_v3 = vsel %vm462_vm3, %v3514_v0, 0 }
0x16fa   :  { %v3402_v2 = vsel %vm462_vm3, %v3397_v1, 0 }
0x16fb   :  { %6094 = vmatpush3.bf16.xpose.msra.mxu1 %v3402_v2 }
0x16fc   :  { %6105 = vmatprep.subr.bf16.mxu1 %v6563_v23 }
0x1702   :  { %6096 = vmatmul.mubr.msk.bf16.vlgmr.msra.gmra.mrb[92].mxu1 %vm462_vm3, %v3396_v31 }
0x1703   :  { %6106 = vmatpush3.bf16.xpose.msra.mxu1 %v3519_v3  ;;  %6107 = vmatprep.mubr.msk.bf16.mxu1 %vm6564_vm2, %v6563_v23  ;;  %v6338_v3 = vld [vmem:[%s7684_s23 + $0x68] sm:$0xff]  }
0x170a   :  { %6108 = vmatmul.mubr.msk.bf16.vlgmr.msra.gmra.mrb[96].mxu1 %vm462_vm3, %v3513_v48 }
0x17d5   :  { %v3438_v4 = vpop.f32.mrb[92].mxu1 }
0x17d6   :  { %v6097_v5 = vpop.f32.mrb[93].mxu1  ;;  %v3445_v6 = vsel %vm510_vm4, %v3438_v4, -inf }
0x17d7   :  { %3446 = vmax.xlane.f32.xlu0 %v3445_v6  ;;  %v3441_v7 = vpop.f32.mrb[94].mxu1  ;;  %v5418_v5 = vld [vmem:[%s7658_s11 + $0x10] sm:$0xf] }
0x17d8   :  { %v6098_v46 = vpop.f32.mrb[95].mxu1  ;;  %v3448_v47 = vsel %vm510_vm4, %v3441_v7, -inf }
0x17d9   :  { %3449 = vmax.xlane.f32.xlu1 %v3448_v47 }
0x17dd   :  { %v3555_v31 = vpop.f32.mrb[96].mxu1 }
0x17de   :  { %v6109_v8 = vpop.f32.mrb[97].mxu1  ;;  %v3562_v49 = vsel %vm510_vm4, %v3555_v31, -inf }
0x17df   :  { %3563 = vmax.xlane.f32.xlu0 %v3562_v49  ;;  %v3558_v56 = vpop.f32.mrb[98].mxu1 }
0x17e0   :  { %v6110_v24 = vpop.f32.mrb[99].mxu1  ;;  %v3565_v18 = vsel %vm510_vm4, %v3558_v56, -inf }
0x17e1   :  { %3566 = vmax.xlane.f32.xlu1 %v3565_v18 }
0x1864   :  { %v3447_v41 = vpop.xlane.xlu0 %3446 }
0x1865   :  { %v3451_v48 = vsub.f32 %v3438_v4, %v3447_v41  ;;  %v3699_v41 = vsel %vm1165_vm5, %v5418_v5, 0 }
0x1866   :  { %v3450_v9 = vpop.xlane.xlu1 %3449 }
0x1867   :  { %v3453_v10 = vmul.f32 1.442695, %v3451_v48  ;;  %v3452_v12 = vsub.f32 %v3441_v7, %v3450_v9  ;;  %v6341_v48 = vld [vmem:[%s7656_s9 + $0x60] sm:$0xff]  }
0x1869   :  { %6467 = vpow2.f32 %v3453_v10  ;;  %v3455_v14 = vmul.f32 1.442695, %v3452_v12  ;;  %v5463_v10 = vld [vmem:[%s7653_s6 + $0x6] ss:$0 sm:$0xff] }
0x186b   :  { %6469 = vpow2.f32 %v3455_v14 }
0x186c   :  { %v3564_v42 = vpop.xlane.xlu0 %3563 }
0x186d   :  { %v3568_v45 = vsub.f32 %v3555_v31, %v3564_v42 }
0x186e   :  { %v3567_v50 = vpop.xlane.xlu1 %3566 }
0x186f   :  { %v3570_v15 = vmul.f32 1.442695, %v3568_v45  ;;  %v3569_v19 = vsub.f32 %v3558_v56, %v3567_v50 }
0x1871   :  { %6471 = vpow2.f32 %v3570_v15  ;;  %v3572_v52 = vmul.f32 1.442695, %v3569_v19 }
0x1873   :  { %v6468_v29 = vpop.eup %6467  ;;  %6473 = vpow2.f32 %v3572_v52 }
0x1874   :  { %v3457_v32 = vsel %vm510_vm4, %v6468_v29, 0.0 }
0x1875   :  { %v6470_v30 = vpop.eup %6469  ;;  %3458 = vadd.xlane.f32.xlu0 %v3457_v32 }
0x1876   :  { %v3460_v33 = vsel %vm510_vm4, %v6470_v30, 0.0 }
0x1877   :  { %3461 = vadd.xlane.f32.xlu1 %v3460_v33 }
0x187b   :  { %v6472_v35 = vpop.eup %6471 }
0x187c   :  { %v3574_v40 = vsel %vm510_vm4, %v6472_v35, 0.0 }
0x187d   :  { %v6474_v44 = vpop.eup %6473  ;;  %3575 = vadd.xlane.f32.xlu0 %v3574_v40 }
0x187e   :  { %v3577_v57 = vsel %vm510_vm4, %v6474_v44, 0.0 }
0x187f   :  { %3578 = vadd.xlane.f32.xlu1 %v3577_v57 }
0x1902   :  { %v3459_v34 = vpop.xlane.xlu0 %3458 }
0x1903   :  { %6475 = vrcp.f32 %v3459_v34 }
0x1904   :  { %v3462_v54 = vpop.xlane.xlu1 %3461 }
0x1905   :  { %6477 = vrcp.f32 %v3462_v54 }
0x190a   :  { %v3576_v28 = vpop.xlane.xlu0 %3575 }
0x190b   :  { %6479 = vrcp.f32 %v3576_v28  ;;  %v6344_v28 = vld [vmem:[%s7684_s23 + $0x78] sm:$0xff]  }
0x190c   :  { %v3579_v11 = vpop.xlane.xlu1 %3578 }
0x190d   :  { %v6476_v59 = vpop.eup %6475  ;;  %6481 = vrcp.f32 %v3579_v11  ;;  %v6345_v11 = vld [vmem:[%s7654_s7 + $0x70] sm:$0xff]  }
0x190e   :  { %v3465_v61 = vmul.f32 %v6476_v59, %v6468_v29  ;;  %v6346_v59 = vld [vmem:[%s7654_s7 + $0x78] sm:$0xff]  }
0x190f   :  { %v6478_v60 = vpop.eup %6477 }
0x1910   :  { %v3466_v20 = vmul.f32 %v6478_v60, %v6470_v30  ;;  %v5483_v60 = vld [vmem:[%s7657_s10 + $0x6] ss:$0 sm:$0xff] }
0x1912   :  { %v3467_v22 = vpack.c.bf16 %v3466_v20, %v3465_v61 }
0x1914   :  { %6102 = vmatmul.mubr.msk.bf16.vlgmr.msra.gmra.mrb[76].mxu0 %vm510_vm4, %v3467_v22 }
0x1915   :  { %v6480_v62 = vpop.eup %6479  ;;  %6112 = vmatpush3.bf16.msra.mxu0 %v3585_v58  ;;  %6113 = vmatprep.mubr.msk.bf16.mxu0 %vm6564_vm2, %v6563_v23  ;;  %v5453_v58 = vld [vmem:[%s7658_s11 + $0x14] sm:$0xf] }
0x1916   :  { %6129 = vmatprep.subr.bf16.mxu0 %v6337_v27  ;;  %v3582_v0 = vmul.f32 %v6480_v62, %v6472_v35  ;;  %6285 = vmatprep.subr.msk.bf16.mxu1 %vm1165_vm5, %v5453_v58  ;;  %v3641_v4 = vsel %vm1165_vm5, %v5453_v58, 0 }
0x1917   :  { %v6482_v63 = vpop.eup %6481  ;;  %6118 = vmatpush3.bf16.msra.mxu1 %v3641_v4 }
0x1918   :  { %v3583_v1 = vmul.f32 %v6482_v63, %v6474_v44  ;;  %6286 = vmatprep.subr.msk.bf16.mxu1 %vm1165_vm5, %v5418_v5 }
0x191a   :  { %v3584_v2 = vpack.c.bf16 %v3583_v1, %v3582_v0 }
0x191c   :  { %6114 = vmatmul.mubr.msk.bf16.vlgmr.msra.gmra.mrb[80].mxu0 %vm510_vm4, %v3584_v2 }
0x191d   :  { %6130 = vmatpush3.bf16.msra.mxu0 %v6337_v27  ;;  %6133 = vmatprep.mubr.msk.bf16.mxu0 %vm162_vm1, %v7209_v36 }
0x191e   :  { %6131 = vmatprep.subr.bf16.mxu0 %v6338_v3 }
0x1921   :  { %6132 = vmatpush3.bf16.msra.mxu0 %v6338_v3 }
0x1922   :  { %6137 = vmatprep.subr.bf16.mxu0 %v6339_v53 }
0x1924   :  { %6134 = vmatmul.mubr.msk.bf16.vlgmr.msra.gmra.mrb[84].mxu0 %vm162_vm1, %v7215_v37 }
0x1925   :  { %6138 = vmatpush3.bf16.msra.mxu0 %v6339_v53  ;;  %6141 = vmatprep.mubr.msk.bf16.mxu0 %vm162_vm1, %v7209_v36 }
0x1926   :  { %6139 = vmatprep.subr.bf16.mxu0 %v6340_v25 }
0x1929   :  { %6140 = vmatpush3.bf16.msra.mxu0 %v6340_v25 }
0x192a   :  { %6153 = vmatprep.subr.bf16.mxu0 %v6563_v23 }
0x192c   :  { %6142 = vmatmul.mubr.msk.bf16.vlgmr.msra.gmra.mrb[88].mxu0 %vm162_vm1, %v7215_v37 }
0x192d   :  { %6155 = vmatprep.mubr.msk.bf16.mxu0 %vm6564_vm2, %v6563_v23 }
0x19e7   :  { %v3506_v6 = vpop.f32.mrb[76].mxu0 }
0x19e8   :  { %v6103_v7 = vpop.f32.mrb[77].mxu0 }
0x19e9   :  { %v3509_v46 = vpop.f32.mrb[78].mxu0 }
0x19ea   :  { %v3630_v47 = vpack.c.bf16 %v3509_v46, %v3506_v6  ;;  %v6104_v31 = vpop.f32.mrb[79].mxu0 }
0x19ec   :  { %6119 = vmatprep.mubr.msk.bf16.mxu1 %vm462_vm3, %v3630_v47 }
0x19ef   :  { %v3623_v8 = vpop.f32.mrb[80].mxu0 }
0x19f0   :  { %v6115_v49 = vpop.f32.mrb[81].mxu0 }
0x19f1   :  { %v3626_v56 = vpop.f32.mrb[82].mxu0 }
0x19f2   :  { %v3631_v24 = vpack.c.bf16 %v3626_v56, %v3623_v8  ;;  %v6116_v18 = vpop.f32.mrb[83].mxu0 }
0x19f4   :  { %6120 = vmatmul.mubr.msk.bf16.vlgmr.msra.gmra.mrb[100].mxu1 %vm462_vm3, %v3631_v24  ;;  %v5500_v24 = vld [vmem:[%s7653_s6 + $0x7] ss:$0 sm:$0xff] }
0x19f5   :  { %6125 = vmatprep.mubr.msk.bf16.mxu1 %vm462_vm3, %v3170_v43  ;;  %6124 = vmatpush3.bf16.msra.mxu1 %v3699_v41  ;;  %v5473_v43 = vld [vmem:[%s7655_s8 + $0x6] ss:$0 sm:$0xff] }
0x19f6   :  { %6145 = vmatprep.subr.bf16.mxu1 %v6341_v48 }
0x19f7   :  { %v6135_v9 = vpop.f32.mrb[84].mxu0 }
0x19f8   :  { %v3809_v12 = vpop.f32.mrb[85].mxu0  ;;  %v3818_v42 = vadd.f32 %v6135_v9, %v5463_v10 }
0x19f9   :  { %v6136_v14 = vpop.f32.mrb[86].mxu0  ;;  %v3810_v15 = vadd.f32 %v5463_v10, %v3809_v12 }
0x19fa   :  { %v3821_v45 = vadd.f32 %v6136_v14, %v5463_v10  ;;  %v3812_v50 = vpop.f32.mrb[87].mxu0 }
0x19fb   :  { %v3813_v19 = vadd.f32 %v5463_v10, %v3812_v50 }
0x19fc   :  { %v4089_v52 = vpack.c.bf16 %v3821_v45, %v3818_v42 }
0x19fd   :  { %v3972_v29 = vpack.c.bf16 %v3813_v19, %v3810_v15  ;;  %v5510_v15 = vld [vmem:[%s7655_s8 + $0x7] ss:$0 sm:$0xff] }
0x19ff   :  { %v6143_v17 = vpop.f32.mrb[88].mxu0 }
0x1a00   :  { %6126 = vmatmul.mubr.msk.bf16.vlgmr.msra.gmra.mrb[100].mxu1 %vm462_vm3, %v3171_v26  ;;  %v3883_v32 = vpop.f32.mrb[89].mxu0  ;;  %v3892_v33 = vadd.f32 %v6143_v17, %v5473_v43 }
0x1a01   :  { %v6144_v30 = vpop.f32.mrb[90].mxu0  ;;  %6146 = vmatpush3.bf16.msra.mxu1 %v6341_v48  ;;  %6149 = vmatprep.mubr.msk.bf16.mxu1 %vm162_vm1, %v7209_v36  ;;  %v3884_v44 = vadd.f32 %v5473_v43, %v3883_v32 }
0x1a02   :  { %v3895_v35 = vadd.f32 %v6144_v30, %v5473_v43  ;;  %v3886_v40 = vpop.f32.mrb[91].mxu0  ;;  %6147 = vmatprep.subr.bf16.mxu1 %v6342_v51 }
0x1a03   :  { %v3887_v57 = vadd.f32 %v5473_v43, %v3886_v40 }
0x1a04   :  { %v4090_v34 = vpack.c.bf16 %v3895_v35, %v3892_v33 }
0x1a05   :  { %v3973_v54 = vpack.c.bf16 %v3887_v57, %v3884_v44  ;;  %6148 = vmatpush3.bf16.msra.mxu1 %v6342_v51 }
0x1a06   :  { %6159 = vmatprep.subr.bf16.mxu1 %v6563_v23  ;;  %v4095_v26 = vsel %vm462_vm3, %v4090_v34, 0 }
0x1a07   :  { %v3978_v38 = vsel %vm462_vm3, %v3973_v54, 0 }
0x1a08   :  { %6150 = vmatmul.mubr.msk.bf16.vlgmr.msra.gmra.mrb[104].mxu1 %vm162_vm1, %v7215_v37  ;;  %6154 = vmatpush3.bf16.xpose.msra.mxu0 %v3978_v38 }
0x1a09   :  { %6165 = vmatprep.subr.bf16.mxu0 %v6563_v23  ;;  %6161 = vmatprep.mubr.msk.bf16.mxu1 %vm6564_vm2, %v6563_v23 }
0x1a0f   :  { %6156 = vmatmul.mubr.msk.bf16.vlgmr.msra.gmra.mrb[92].mxu0 %vm462_vm3, %v3972_v29 }
0x1a10   :  { %6166 = vmatpush3.bf16.xpose.msra.mxu0 %v4095_v26  ;;  %6167 = vmatprep.mubr.msk.bf16.mxu0 %vm6564_vm2, %v6563_v23 }
0x1a11   :  { %6183 = vmatprep.subr.bf16.mxu0 %v6343_v55 }
0x1a17   :  { %6168 = vmatmul.mubr.msk.bf16.vlgmr.msra.gmra.mrb[96].mxu0 %vm462_vm3, %v4089_v52 }
0x1a18   :  { %6184 = vmatpush3.bf16.msra.mxu0 %v6343_v55  ;;  %6187 = vmatprep.mubr.msk.bf16.mxu0 %vm162_vm1, %v7209_v36 }
0x1a19   :  { %6185 = vmatprep.subr.bf16.mxu0 %v6344_v28 }
0x1a1c   :  { %6186 = vmatpush3.bf16.msra.mxu0 %v6344_v28 }
0x1a1d   :  { %6191 = vmatprep.subr.bf16.mxu0 %v6345_v11 }
0x1a1f   :  { %6188 = vmatmul.mubr.msk.bf16.vlgmr.msra.gmra.mrb[100].mxu0 %vm162_vm1, %v7215_v37 }
0x1a20   :  { %6192 = vmatpush3.bf16.msra.mxu0 %v6345_v11  ;;  %6195 = vmatprep.mubr.msk.bf16.mxu0 %vm162_vm1, %v7209_v36 }
0x1a21   :  { %6193 = vmatprep.subr.bf16.mxu0 %v6346_v59 }
0x1a24   :  { %6194 = vmatpush3.bf16.msra.mxu0 %v6346_v59 }
0x1a25   :  { %6207 = vmatprep.subr.bf16.mxu0 %v6563_v23 }
0x1a27   :  { %6196 = vmatmul.mubr.msk.bf16.vlgmr.msra.gmra.mrb[104].mxu0 %vm162_vm1, %v7215_v37 }
0x1a28   :  { %6209 = vmatprep.mubr.msk.bf16.mxu0 %vm6564_vm2, %v6563_v23 }
0x1adb   :  { %v6151_v61 = vpop.f32.mrb[104].mxu1 }
0x1adc   :  { %v7470_v20 = vadd.f32 %v6151_v61, %v5483_v60  ;;  %v3957_v22 = vpop.f32.mrb[105].mxu1 }
0x1add   :  { %v6152_v27 = vpop.f32.mrb[106].mxu1  ;;  %v3958_v0 = vadd.f32 %v5483_v60, %v3957_v22 }
0x1ade   :  { %v7472_v62 = vadd.f32 %v6152_v27, %v5483_v60  ;;  %v3960_v63 = vpop.f32.mrb[107].mxu1 }
0x1adf   :  { %v3961_v1 = vadd.f32 %v5483_v60, %v3960_v63 }
0x1ae0   :  { %v4161_v2 = vpack.c.bf16 %v7472_v62, %v7470_v20 }
0x1ae1   :  { %v4044_v3 = vpack.c.bf16 %v3961_v1, %v3958_v0 }
0x1ae2   :  { %v4014_v53 = vpop.f32.mrb[92].mxu0 }
0x1ae3   :  { %v6157_v25 = vpop.f32.mrb[93].mxu0  ;;  %6160 = vmatpush3.bf16.msra.mxu1 %v4044_v3  ;;  %v4021_v58 = vsel %vm510_vm4, %v4014_v53, -inf }
0x1ae4   :  { %4022 = vmax.xlane.f32.xlu0 %v4021_v58  ;;  %v4017_v4 = vpop.f32.mrb[94].mxu0  ;;  %6171 = vmatprep.subr.bf16.mxu1 %v6563_v23 }
0x1ae5   :  { %v6158_v5 = vpop.f32.mrb[95].mxu0  ;;  %v4024_v6 = vsel %vm510_vm4, %v4017_v4, -inf }
0x1ae6   :  { %4025 = vmax.xlane.f32.xlu1 %v4024_v6 }
0x1aea   :  { %v4131_v7 = vpop.f32.mrb[96].mxu0 }
0x1aeb   :  { %v6169_v46 = vpop.f32.mrb[97].mxu0  ;;  %v4138_v47 = vsel %vm510_vm4, %v4131_v7, -inf }
0x1aec   :  { %4139 = vmax.xlane.f32.xlu0 %v4138_v47  ;;  %v4134_v31 = vpop.f32.mrb[98].mxu0 }
0x1aed   :  { %v6170_v8 = vpop.f32.mrb[99].mxu0  ;;  %v4141_v49 = vsel %vm510_vm4, %v4134_v31, -inf }
0x1aee   :  { %4142 = vmax.xlane.f32.xlu1 %v4141_v49 }
0x1af2   :  { %v6189_v56 = vpop.f32.mrb[100].mxu0 }
0x1af3   :  { %v4331_v18 = vpop.f32.mrb[101].mxu0  ;;  %v4340_v48 = vadd.f32 %v6189_v56, %v5500_v24 }
0x1af4   :  { %v6190_v41 = vpop.f32.mrb[102].mxu0  ;;  %v4332_v12 = vadd.f32 %v5500_v24, %v4331_v18 }
0x1af5   :  { %v4343_v9 = vadd.f32 %v6190_v41, %v5500_v24  ;;  %v4334_v10 = vpop.f32.mrb[103].mxu0 }
0x1af6   :  { %v4335_v14 = vadd.f32 %v5500_v24, %v4334_v10 }
0x1af7   :  { %v4611_v42 = vpack.c.bf16 %v4343_v9, %v4340_v48 }
0x1af8   :  { %v4494_v45 = vpack.c.bf16 %v4335_v14, %v4332_v12 }
0x1afa   :  { %v6197_v50 = vpop.f32.mrb[104].mxu0 }
0x1afb   :  { %v4405_v19 = vpop.f32.mrb[105].mxu0  ;;  %v4414_v29 = vadd.f32 %v6197_v50, %v5510_v15 }
0x1afc   :  { %v6198_v52 = vpop.f32.mrb[106].mxu0  ;;  %v4406_v43 = vadd.f32 %v5510_v15, %v4405_v19 }
0x1afd   :  { %v4417_v51 = vadd.f32 %v6198_v52, %v5510_v15  ;;  %v4408_v17 = vpop.f32.mrb[107].mxu0 }
0x1afe   :  { %v4409_v32 = vadd.f32 %v5510_v15, %v4408_v17 }
0x1aff   :  { %v4612_v30 = vpack.c.bf16 %v4417_v51, %v4414_v29 }
0x1b00   :  { %v4495_v33 = vpack.c.bf16 %v4409_v32, %v4406_v43 }
0x1b01   :  { %v4617_v40 = vsel %vm462_vm3, %v4612_v30, 0 }
0x1b02   :  { %v4500_v35 = vsel %vm462_vm3, %v4495_v33, 0 }
0x1b03   :  { %6208 = vmatpush3.bf16.xpose.msra.mxu0 %v4500_v35 }
0x1b04   :  { %6219 = vmatprep.subr.bf16.mxu0 %v6563_v23 }
0x1b0a   :  { %6210 = vmatmul.mubr.msk.bf16.vlgmr.msra.gmra.mrb[108].mxu0 %vm462_vm3, %v4494_v45 }
0x1b0b   :  { %6220 = vmatpush3.bf16.xpose.msra.mxu0 %v4617_v40  ;;  %6221 = vmatprep.mubr.msk.bf16.mxu0 %vm6564_vm2, %v6563_v23 }
0x1b12   :  { %6222 = vmatmul.mubr.msk.bf16.vlgmr.msra.gmra.mrb[112].mxu0 %vm462_vm3, %v4611_v42 }
0x1b71   :  { %v4023_v44 = vpop.xlane.xlu0 %4022 }
0x1b72   :  { %v4027_v57 = vsub.f32 %v4014_v53, %v4023_v44 }
0x1b73   :  { %v4026_v34 = vpop.xlane.xlu1 %4025 }
0x1b74   :  { %v4029_v54 = vmul.f32 1.442695, %v4027_v57  ;;  %v4028_v38 = vsub.f32 %v4017_v4, %v4026_v34 }
0x1b76   :  { %6483 = vpow2.f32 %v4029_v54  ;;  %v4031_v55 = vmul.f32 1.442695, %v4028_v38  ;;  %v5492_v38 = vld [vmem:[%s7658_s11 + $0x18] sm:$0xf] }
0x1b78   :  { %6485 = vpow2.f32 %v4031_v55 }
0x1b79   :  { %v4140_v26 = vpop.xlane.xlu0 %4139 }
0x1b7a   :  { %v4144_v28 = vsub.f32 %v4131_v7, %v4140_v26  ;;  %v4217_v26 = vsel %vm1165_vm5, %v5492_v38, 0 }
0x1b7b   :  { %v4143_v11 = vpop.xlane.xlu1 %4142 }
0x1b7c   :  { %v4146_v59 = vmul.f32 1.442695, %v4144_v28  ;;  %v4145_v60 = vsub.f32 %v4134_v31, %v4143_v11  ;;  %v6347_v28 = vld [vmem:[%s7656_s9 + $0x70] sm:$0xff]  }
0x1b7e   :  { %6487 = vpow2.f32 %v4146_v59  ;;  %v4148_v61 = vmul.f32 1.442695, %v4145_v60 }
0x1b80   :  { %v6484_v22 = vpop.eup %6483  ;;  %6489 = vpow2.f32 %v4148_v61 }
0x1b81   :  { %v4033_v27 = vsel %vm510_vm4, %v6484_v22, 0.0 }
0x1b82   :  { %v6486_v63 = vpop.eup %6485  ;;  %4034 = vadd.xlane.f32.xlu0 %v4033_v27 }
0x1b83   :  { %v4036_v0 = vsel %vm510_vm4, %v6486_v63, 0.0 }
0x1b84   :  { %4037 = vadd.xlane.f32.xlu1 %v4036_v0 }
0x1b88   :  { %v6488_v1 = vpop.eup %6487 }
0x1b89   :  { %v4150_v3 = vsel %vm510_vm4, %v6488_v1, 0.0 }
0x1b8a   :  { %v6490_v53 = vpop.eup %6489  ;;  %4151 = vadd.xlane.f32.xlu0 %v4150_v3 }
0x1b8b   :  { %v4153_v25 = vsel %vm510_vm4, %v6490_v53, 0.0 }
0x1b8c   :  { %4154 = vadd.xlane.f32.xlu1 %v4153_v25 }
0x1bdd   :  { %v4536_v58 = vpop.f32.mrb[108].mxu0 }
0x1bde   :  { %v6211_v4 = vpop.f32.mrb[109].mxu0  ;;  %v4543_v5 = vsel %vm510_vm4, %v4536_v58, -inf }
0x1bdf   :  { %4544 = vmax.xlane.f32.xlu0 %v4543_v5  ;;  %v4539_v6 = vpop.f32.mrb[110].mxu0  ;;  %v6348_v5 = vld [vmem:[%s7656_s9 + $0x78] sm:$0xff]  }
0x1be0   :  { %v6212_v7 = vpop.f32.mrb[111].mxu0  ;;  %v4546_v46 = vsel %vm510_vm4, %v4539_v6, -inf }
0x1be1   :  { %4547 = vmax.xlane.f32.xlu1 %v4546_v46 }
0x1be5   :  { %v4653_v47 = vpop.f32.mrb[112].mxu0 }
0x1be6   :  { %v6223_v31 = vpop.f32.mrb[113].mxu0  ;;  %v4660_v8 = vsel %vm510_vm4, %v4653_v47, -inf }
0x1be7   :  { %4661 = vmax.xlane.f32.xlu0 %v4660_v8  ;;  %v4656_v49 = vpop.f32.mrb[114].mxu0 }
0x1be8   :  { %v6224_v56 = vpop.f32.mrb[115].mxu0  ;;  %v4663_v24 = vsel %vm510_vm4, %v4656_v49, -inf }
0x1be9   :  { %4664 = vmax.xlane.f32.xlu1 %v4663_v24 }
0x1c0f   :  { %v4035_v18 = vpop.xlane.xlu0 %4034 }
0x1c10   :  { %6491 = vrcp.f32 %v4035_v18 }
0x1c11   :  { %v4038_v41 = vpop.xlane.xlu1 %4037 }
0x1c12   :  { %6493 = vrcp.f32 %v4038_v41 }
0x1c17   :  { %v4152_v48 = vpop.xlane.xlu0 %4151 }
0x1c18   :  { %6495 = vrcp.f32 %v4152_v48 }
0x1c19   :  { %v4155_v9 = vpop.xlane.xlu1 %4154 }
0x1c1a   :  { %v6492_v10 = vpop.eup %6491  ;;  %6497 = vrcp.f32 %v4155_v9 }
0x1c1b   :  { %v4041_v14 = vmul.f32 %v6492_v10, %v6484_v22 }
0x1c1c   :  { %v6494_v12 = vpop.eup %6493 }
0x1c1d   :  { %v4042_v42 = vmul.f32 %v6494_v12, %v6486_v63 }
0x1c1f   :  { %v4043_v45 = vpack.c.bf16 %v4042_v42, %v4041_v14 }
0x1c21   :  { %6162 = vmatmul.mubr.msk.bf16.vlgmr.msra.gmra.mrb[108].mxu1 %vm510_vm4, %v4043_v45 }
0x1c22   :  { %v6496_v50 = vpop.eup %6495  ;;  %6172 = vmatpush3.bf16.msra.mxu1 %v4161_v2  ;;  %6173 = vmatprep.mubr.msk.bf16.mxu1 %vm6564_vm2, %v6563_v23 }
0x1c23   :  { %v4158_v19 = vmul.f32 %v6496_v50, %v6488_v1  ;;  %6287 = vmatprep.subr.msk.bf16.mxu1 %vm1165_vm5, %v5492_v38 }
0x1c24   :  { %v6498_v15 = vpop.eup %6497 }
0x1c25   :  { %v4159_v52 = vmul.f32 %v6498_v15, %v6490_v53 }
0x1c27   :  { %v4160_v29 = vpack.c.bf16 %v4159_v52, %v4158_v19 }
0x1c29   :  { %6174 = vmatmul.mubr.msk.bf16.vlgmr.msra.gmra.mrb[112].mxu1 %vm510_vm4, %v4160_v29 }
0x1c2a   :  { %6178 = vmatpush3.bf16.msra.mxu1 %v4217_v26 }
0x1c2b   :  { %6199 = vmatprep.subr.bf16.mxu1 %v6347_v28 }
0x1c6c   :  { %v4545_v51 = vpop.xlane.xlu0 %4544 }
0x1c6d   :  { %v4549_v17 = vsub.f32 %v4536_v58, %v4545_v51  ;;  %v5529_v51 = vld [vmem:[%s7658_s11 + $0x1c] sm:$0xf] }
0x1c6e   :  { %v4548_v43 = vpop.xlane.xlu1 %4547 }
0x1c6f   :  { %v4551_v32 = vmul.f32 1.442695, %v4549_v17  ;;  %v4550_v30 = vsub.f32 %v4539_v6, %v4548_v43  ;;  %v4739_v17 = vsel %vm1165_vm5, %v5529_v51, 0 }
0x1c71   :  { %6499 = vpow2.f32 %v4551_v32  ;;  %v4553_v33 = vmul.f32 1.442695, %v4550_v30 }
0x1c73   :  { %6501 = vpow2.f32 %v4553_v33 }
0x1c74   :  { %v4662_v35 = vpop.xlane.xlu0 %4661 }
0x1c75   :  { %v4666_v20 = vsub.f32 %v4653_v47, %v4662_v35 }
0x1c76   :  { %v4665_v62 = vpop.xlane.xlu1 %4664 }
0x1c77   :  { %v4668_v2 = vmul.f32 1.442695, %v4666_v20  ;;  %v4667_v40 = vsub.f32 %v4656_v49, %v4665_v62 }
0x1c79   :  { %6503 = vpow2.f32 %v4668_v2  ;;  %v4670_v44 = vmul.f32 1.442695, %v4667_v40 }
0x1c7b   :  { %v6500_v57 = vpop.eup %6499  ;;  %6505 = vpow2.f32 %v4670_v44 }
0x1c7c   :  { %v4555_v34 = vsel %vm510_vm4, %v6500_v57, 0.0 }
0x1c7d   :  { %v6502_v54 = vpop.eup %6501  ;;  %4556 = vadd.xlane.f32.xlu0 %v4555_v34 }
0x1c7e   :  { %v4558_v55 = vsel %vm510_vm4, %v6502_v54, 0.0 }
0x1c7f   :  { %4559 = vadd.xlane.f32.xlu1 %v4558_v55 }
0x1c83   :  { %v6504_v11 = vpop.eup %6503 }
0x1c84   :  { %v4672_v59 = vsel %vm510_vm4, %v6504_v11, 0.0 }
0x1c85   :  { %v6506_v60 = vpop.eup %6505  ;;  %4673 = vadd.xlane.f32.xlu0 %v4672_v59 }
0x1c86   :  { %v4675_v61 = vsel %vm510_vm4, %v6506_v60, 0.0 }
0x1c87   :  { %4676 = vadd.xlane.f32.xlu1 %v4675_v61 }
0x1cf4   :  { %v4082_v22 = vpop.f32.mrb[108].mxu1 }
0x1cf5   :  { %v6163_v27 = vpop.f32.mrb[109].mxu1 }
0x1cf6   :  { %v4085_v63 = vpop.f32.mrb[110].mxu1 }
0x1cf7   :  { %v4206_v0 = vpack.c.bf16 %v4085_v63, %v4082_v22  ;;  %v6164_v1 = vpop.f32.mrb[111].mxu1 }
0x1cf9   :  { %6179 = vmatprep.mubr.msk.bf16.mxu1 %vm462_vm3, %v4206_v0 }
0x1cfc   :  { %v4199_v3 = vpop.f32.mrb[112].mxu1 }
0x1cfd   :  { %v6175_v53 = vpop.f32.mrb[113].mxu1 }
0x1cfe   :  { %v4202_v25 = vpop.f32.mrb[114].mxu1 }
0x1cff   :  { %v4207_v58 = vpack.c.bf16 %v4202_v25, %v4199_v3  ;;  %v6176_v4 = vpop.f32.mrb[115].mxu1 }
0x1d01   :  { %6180 = vmatmul.mubr.msk.bf16.vlgmr.msra.gmra.mrb[100].mxu1 %vm462_vm3, %v4207_v58 }
0x1d02   :  { %6200 = vmatpush3.bf16.msra.mxu1 %v6347_v28  ;;  %6203 = vmatprep.mubr.msk.bf16.mxu1 %vm162_vm1, %v7209_v36  ;;  %v5520_v36 = vld [vmem:[%s7657_s10 + $0x7] ss:$0 sm:$0xff] }
0x1d03   :  { %6201 = vmatprep.subr.bf16.mxu1 %v6348_v5 }
0x1d06   :  { %6202 = vmatpush3.bf16.msra.mxu1 %v6348_v5 }
0x1d07   :  { %6213 = vmatprep.subr.bf16.mxu1 %v6563_v23 }
0x1d09   :  { %6204 = vmatmul.mubr.msk.bf16.vlgmr.msra.gmra.mrb[116].mxu1 %vm162_vm1, %v7215_v37 }
0x1d0a   :  { %6215 = vmatprep.mubr.msk.bf16.mxu1 %vm6564_vm2, %v6563_v23  ;;  %v4557_v7 = vpop.xlane.xlu0 %4556 }
0x1d0c   :  { %v4560_v6 = vpop.xlane.xlu1 %4559 }
0x1d0d   :  { %6507 = vrcp.f32 %v4560_v6 }
0x1d0e   :  { %6509 = vrcp.f32 %v4557_v7 }
0x1d12   :  { %v4674_v47 = vpop.xlane.xlu0 %4673 }
0x1d14   :  { %v4677_v46 = vpop.xlane.xlu1 %4676 }
0x1d15   :  { %6511 = vrcp.f32 %v4677_v46 }
0x1d16   :  { %6513 = vrcp.f32 %v4674_v47 }
0x1d17   :  { %v6508_v49 = vpop.eup %6507 }
0x1d18   :  { %v6510_v41 = vpop.eup %6509  ;;  %v4564_v10 = vmul.f32 %v6508_v49, %v6502_v54 }
0x1d19   :  { %v4563_v42 = vmul.f32 %v6510_v41, %v6500_v57  ;;  %v5533_v57 = vld [vmem:[%s7659_s12 + $0x1] ss:$0 sm:$0xff] }
0x1d1b   :  { %v4565_v45 = vpack.c.bf16 %v4564_v10, %v4563_v42 }
0x1d1f   :  { %v6512_v50 = vpop.eup %6511 }
0x1d20   :  { %v6514_v15 = vpop.eup %6513  ;;  %v4681_v19 = vmul.f32 %v6512_v50, %v6506_v60 }
0x1d21   :  { %v4680_v52 = vmul.f32 %v6514_v15, %v6504_v11 }
0x1d23   :  { %v4682_v29 = vpack.c.bf16 %v4681_v19, %v4680_v52 }
0x1ddc   :  { %v6205_v31 = vpop.f32.mrb[116].mxu1 }
0x1ddd   :  { %v4479_v8 = vpop.f32.mrb[117].mxu1  ;;  %v4488_v37 = vadd.f32 %v6205_v31, %v5520_v36 }
0x1dde   :  { %v6206_v56 = vpop.f32.mrb[118].mxu1  ;;  %v4480_v48 = vadd.f32 %v5520_v36, %v4479_v8 }
0x1ddf   :  { %v4491_v24 = vadd.f32 %v6206_v56, %v5520_v36  ;;  %v4482_v18 = vpop.f32.mrb[119].mxu1 }
0x1de0   :  { %v4483_v9 = vadd.f32 %v5520_v36, %v4482_v18  ;;  %v6350_v18 = vld [vmem:[%s7662_s15 + $0x18] sm:$0xff]  }
0x1de1   :  { %v4683_v12 = vpack.c.bf16 %v4491_v24, %v4488_v37  ;;  %v6349_v24 = vld [vmem:[%s7662_s15 + $0x10] sm:$0xff]  }
0x1de2   :  { %v4566_v14 = vpack.c.bf16 %v4483_v9, %v4480_v48  ;;  %6237 = vmatprep.subr.bf16.mxu0 %v6349_v24 }
0x1de3   :  { %6238 = vmatpush3.bf16.msra.mxu0 %v6349_v24 }
0x1de4   :  { %6214 = vmatpush3.bf16.msra.mxu1 %v4566_v14  ;;  %6239 = vmatprep.subr.bf16.mxu0 %v6350_v18 }
0x1de5   :  { %6225 = vmatprep.subr.bf16.mxu1 %v6563_v23 }
0x1de7   :  { %6216 = vmatmul.mubr.msk.bf16.vlgmr.msra.gmra.mrb[120].mxu1 %vm510_vm4, %v4565_v45  ;;  %6240 = vmatpush3.bf16.msra.mxu0 %v6350_v18 }
0x1de8   :  { %6226 = vmatpush3.bf16.msra.mxu1 %v4683_v12  ;;  %6227 = vmatprep.mubr.msk.bf16.mxu1 %vm6564_vm2, %v6563_v23 }
0x1de9   :  { %6288 = vmatprep.subr.msk.bf16.mxu1 %vm1165_vm5, %v5529_v51  ;;  %v5536_v51 = vld [vmem:[%s7660_s13 + $0x1] ss:$0 sm:$0xff] }
0x1def   :  { %6228 = vmatmul.mubr.msk.bf16.vlgmr.msra.gmra.mrb[124].mxu1 %vm510_vm4, %v4682_v29 }
0x1df0   :  { %6232 = vmatpush3.bf16.msra.mxu1 %v4739_v17 }
0x1eba   :  { %v4604_v43 = vpop.f32.mrb[120].mxu1 }
0x1ebb   :  { %v6217_v32 = vpop.f32.mrb[121].mxu1 }
0x1ebc   :  { %v4607_v30 = vpop.f32.mrb[122].mxu1 }
0x1ebd   :  { %v4728_v33 = vpack.c.bf16 %v4607_v30, %v4604_v43  ;;  %v6218_v35 = vpop.f32.mrb[123].mxu1 }
0x1ebe   :  { %v5537_v35 = vld [vmem:[%s7661_s14 + $0x1] ss:$0 sm:$0xff] }
0x1ebf   :  { %6233 = vmatprep.mubr.msk.bf16.mxu1 %vm462_vm3, %v4728_v33 }
0x1ec2   :  { %v4721_v23 = vpop.f32.mrb[124].mxu1 }
0x1ec3   :  { %v6229_v20 = vpop.f32.mrb[125].mxu1 }
0x1ec4   :  { %v4724_v62 = vpop.f32.mrb[126].mxu1 }
0x1ec5   :  { %v4729_v2 = vpack.c.bf16 %v4724_v62, %v4721_v23  ;;  %v6230_v40 = vpop.f32.mrb[127].mxu1 }
0x1ec7   :  { %6234 = vmatmul.mubr.msk.bf16.vlgmr.msra.gmra.mrb[100].mxu1 %vm462_vm3, %v4729_v2 }
0x1f9a   :  { %v6235_v44 = vpop.f32.mrb[100].mxu1 }
0x1f9b   :  { %v4775_v34 = vpop.f32.mrb[101].mxu1  ;;  %v4796_v54 = vadd.f32 %v6235_v44, %v7165_v13 }
0x1f9c   :  { %v4794_v38 = vadd.f32 %v4775_v34, %v7161_v39  ;;  %v6236_v55 = vpop.f32.mrb[102].mxu1 }
0x1f9d   :  { %v4778_v26 = vpop.f32.mrb[103].mxu1  ;;  %v4797_v11 = vadd.f32 %v6236_v55, %v7171_v21  ;;  %v7557_v60 = vadd.f32 %v5533_v57, %v4796_v54 }
0x1f9e   :  { %v7553_v28 = vadd.f32 %v5533_v57, %v4794_v38  ;;  %v4795_v59 = vadd.f32 %v4778_v26, %v7167_v16 }
0x1f9f   :  { %v7563_v27 = vadd.f32 %v5533_v57, %v4797_v11  ;;  %v4820_v13 = vsel %vm162_vm1, %v7557_v60, 0.0  ;;  %v6351_v11 = vld [vmem:[%s7664_s17 + $0x20] sm:$0xff]  }
0x1fa0   :  { %v7559_v61 = vadd.f32 %v5533_v57, %v4795_v59  ;;  %v4814_v22 = vsel %vm162_vm1, %v7553_v28, 0.0  ;;  %v6352_v59 = vld [vmem:[%s7664_s17 + $0x28] sm:$0xff]   ;;  %6245 = vmatprep.subr.bf16.mxu0 %v6351_v11 }
0x1fa1   :  { %4815 = vadd.xlane.f32.xlu0 %v4814_v22  ;;  %v4823_v16 = vsel %vm162_vm1, %v7563_v27, 0.0  ;;  %v6353_v22 = vld [vmem:[%s7664_s17 + $0x30] sm:$0xff]  }
0x1fa2   :  { %v4817_v39 = vsel %vm162_vm1, %v7559_v61, 0.0 }
0x1fa3   :  { %4818 = vadd.xlane.f32.xlu1 %v4817_v39  ;;  %v6354_v39 = vld [vmem:[%s7664_s17 + $0x38] sm:$0xff]  }
0x1fa5   :  { %4821 = vadd.xlane.f32.xlu0 %v4820_v13  ;;  %v5543_v13 = vld [vmem:[%s7663_s16 + $0x1] ss:$0 sm:$0xff] }
0x1fa7   :  { %4824 = vadd.xlane.f32.xlu1 %v4823_v16 }
0x202e   :  { %v4816_v21 = vpop.xlane.xlu0 %4815 }
0x202f   :  { %v4826_v63 = vmul.f32 0.03125, %v4816_v21 }
0x2030   :  { %v4819_v0 = vpop.xlane.xlu1 %4818 }
0x2031   :  { %v4830_v1 = vsub.f32 %v7553_v28, %v4826_v63  ;;  %v4827_v3 = vmul.f32 0.03125, %v4819_v0 }
0x2032   :  { %v4822_v53 = vpop.xlane.xlu0 %4821 }
0x2033   :  { %v4831_v25 = vsub.f32 %v7559_v61, %v4827_v3  ;;  %v4828_v58 = vmul.f32 0.03125, %v4822_v53  ;;  %v4834_v4 = vmul.f32 %v4830_v1, %v4830_v1 }
0x2034   :  { %v4825_v5 = vpop.xlane.xlu1 %4824 }
0x2035   :  { %v4832_v6 = vsub.f32 %v7557_v60, %v4828_v58  ;;  %v4829_v7 = vmul.f32 0.03125, %v4825_v5  ;;  %v4838_v46 = vsel %vm162_vm1, %v4834_v4, 0.0  ;;  %v4835_v47 = vmul.f32 %v4831_v25, %v4831_v25 }
0x2036   :  { %4839 = vadd.xlane.f32.xlu0 %v4838_v46 }
0x2037   :  { %v4833_v31 = vsub.f32 %v7563_v27, %v4829_v7  ;;  %v4841_v36 = vsel %vm162_vm1, %v4835_v47, 0.0  ;;  %v4836_v8 = vmul.f32 %v4832_v6, %v4832_v6 }
0x2038   :  { %4842 = vadd.xlane.f32.xlu1 %v4841_v36 }
0x2039   :  { %v4844_v49 = vsel %vm162_vm1, %v4836_v8, 0.0  ;;  %v4837_v56 = vmul.f32 %v4833_v31, %v4833_v31 }
0x203a   :  { %4845 = vadd.xlane.f32.xlu0 %v4844_v49 }
0x203b   :  { %v4847_v37 = vsel %vm162_vm1, %v4837_v56, 0.0 }
0x203c   :  { %4848 = vadd.xlane.f32.xlu1 %v4847_v37 }
0x20c3   :  { %v4840_v41 = vpop.xlane.xlu0 %4839 }
0x20c4   :  { %v4850_v48 = vmul.f32 0.03125, %v4840_v41 }
0x20c5   :  { %v4843_v9 = vpop.xlane.xlu1 %4842 }
0x20c6   :  { %v4854_v10 = vadd.f32 1e-06, %v4850_v48  ;;  %v4851_v12 = vmul.f32 0.03125, %v4843_v9 }
0x20c7   :  { %v4846_v14 = vpop.xlane.xlu0 %4845 }
0x20c8   :  { %6515 = vrsqrt.f32 %v4854_v10  ;;  %v4855_v42 = vadd.f32 1e-06, %v4851_v12  ;;  %v4852_v45 = vmul.f32 0.03125, %v4846_v14 }
0x20c9   :  { %v4849_v50 = vpop.xlane.xlu1 %4848 }
0x20ca   :  { %6517 = vrsqrt.f32 %v4855_v42  ;;  %v4856_v15 = vadd.f32 1e-06, %v4852_v45  ;;  %v4853_v19 = vmul.f32 0.03125, %v4849_v50 }
0x20cc   :  { %6519 = vrsqrt.f32 %v4856_v15  ;;  %v4857_v52 = vadd.f32 1e-06, %v4853_v19 }
0x20ce   :  { %6521 = vrsqrt.f32 %v4857_v52 }
0x20d2   :  { %v6516_v29 = vpop.eup %6515 }
0x20d3   :  { %v4862_v17 = vmul.f32 %v6516_v29, %v4830_v1 }
0x20d4   :  { %v6518_v43 = vpop.eup %6517 }
0x20d5   :  { %v4863_v32 = vmul.f32 %v6518_v43, %v4831_v25  ;;  %v4872_v30 = vmul.f32 %v5536_v51, %v4862_v17 }
0x20d6   :  { %v6520_v33 = vpop.eup %6519 }
0x20d7   :  { %v4864_v23 = vmul.f32 %v6520_v33, %v4832_v6  ;;  %v4873_v20 = vmul.f32 %v5536_v51, %v4863_v32  ;;  %v4882_v44 = vadd.f32 %v5537_v35, %v4872_v30 }
0x20d8   :  { %v6522_v62 = vpop.eup %6521 }
0x20d9   :  { %v4874_v2 = vmul.f32 %v5536_v51, %v4864_v23  ;;  %v4865_v40 = vmul.f32 %v6522_v62, %v4833_v31  ;;  %v4883_v57 = vadd.f32 %v5537_v35, %v4873_v20 }
0x20db   :  { %v4875_v34 = vmul.f32 %v5536_v51, %v4865_v40  ;;  %v4891_v54 = vpack.c.bf16 %v4883_v57, %v4882_v44  ;;  %v4884_v38 = vadd.f32 %v5537_v35, %v4874_v2  ;;  %v5563_v40 = vld [vmem:[%s7665_s18 + $0x1] ss:$0 sm:$0xff] }
0x20dd   :  { %6241 = vmatprep.mubr.msk.bf16.mxu0 %vm162_vm1, %v4891_v54  ;;  %v4885_v55 = vadd.f32 %v5537_v35, %v4875_v34 }
0x20df   :  { %v4892_v26 = vpack.c.bf16 %v4885_v55, %v4884_v38 }
0x20e1   :  { %6242 = vmatmul.mubr.msk.bf16.vlgmr.msra.gmra.mrb[116].mxu0 %vm162_vm1, %v4892_v26 }
0x20e2   :  { %6246 = vmatpush3.bf16.msra.mxu0 %v6351_v11 }
0x20e3   :  { %6247 = vmatprep.subr.bf16.mxu0 %v6352_v59 }
0x20e6   :  { %6248 = vmatpush3.bf16.msra.mxu0 %v6352_v59 }
0x20e7   :  { %6249 = vmatprep.subr.bf16.mxu0 %v6353_v22 }
0x20ea   :  { %6250 = vmatpush3.bf16.msra.mxu0 %v6353_v22 }
0x20eb   :  { %6251 = vmatprep.subr.bf16.mxu0 %v6354_v39 }
0x20ee   :  { %6252 = vmatpush3.bf16.msra.mxu0 %v6354_v39 }
0x21b4   :  { %v6243_v16 = vpop.f32.mrb[116].mxu0 }
0x21b5   :  { %v4962_v21 = vadd.f32 %v6243_v16, %v5543_v13  ;;  %v4953_v63 = vpop.f32.mrb[117].mxu0 }
0x21b6   :  { %v4954_v0 = vadd.f32 %v5543_v13, %v4953_v63  ;;  %v6244_v1 = vpop.f32.mrb[118].mxu0 }
0x21b7   :  { %v4974_v3 = vmul.f32 0.044715, %v4962_v21  ;;  %v4965_v53 = vadd.f32 %v6244_v1, %v5543_v13  ;;  %v4956_v25 = vpop.f32.mrb[119].mxu0  ;;  %v4970_v52 = vmul.f32 0.5, %v4962_v21 }
0x21b8   :  { %v4972_v58 = vmul.f32 0.044715, %v4954_v0  ;;  %v4957_v4 = vadd.f32 %v5543_v13, %v4956_v25  ;;  %v4968_v17 = vmul.f32 0.5, %v4954_v0 }
0x21b9   :  { %v4978_v5 = vmul.f32 %v4974_v3, %v4962_v21  ;;  %v4975_v6 = vmul.f32 0.044715, %v4965_v53  ;;  %v4971_v29 = vmul.f32 0.5, %v4965_v53 }
0x21ba   :  { %v4976_v7 = vmul.f32 %v4972_v58, %v4954_v0  ;;  %v4973_v46 = vmul.f32 0.044715, %v4957_v4  ;;  %v4969_v43 = vmul.f32 0.5, %v4957_v4 }
0x21bb   :  { %v4982_v47 = vmul.f32 %v4978_v5, %v4962_v21  ;;  %v4979_v31 = vmul.f32 %v4975_v6, %v4965_v53 }
0x21bc   :  { %v4980_v36 = vmul.f32 %v4976_v7, %v4954_v0  ;;  %v4977_v8 = vmul.f32 %v4973_v46, %v4957_v4 }
0x21bd   :  { %v4986_v49 = vadd.f32 %v4982_v47, %v4962_v21  ;;  %v4983_v56 = vmul.f32 %v4979_v31, %v4965_v53 }
0x21be   :  { %v4984_v37 = vadd.f32 %v4980_v36, %v4954_v0  ;;  %v4981_v24 = vmul.f32 %v4977_v8, %v4957_v4 }
0x21bf   :  { %v4990_v18 = vmul.f32 0.7978846, %v4986_v49  ;;  %v4987_v41 = vadd.f32 %v4983_v56, %v4965_v53 }
0x21c0   :  { %v4988_v48 = vmul.f32 0.7978846, %v4984_v37  ;;  %v4985_v9 = vadd.f32 %v4981_v24, %v4957_v4 }
0x21c1   :  { %6523 = vtanh.f32 %v4990_v18  ;;  %v4991_v10 = vmul.f32 0.7978846, %v4987_v41 }
0x21c2   :  { %6525 = vtanh.f32 %v4988_v48  ;;  %v4989_v12 = vmul.f32 0.7978846, %v4985_v9 }
0x21c3   :  { %6527 = vtanh.f32 %v4991_v10 }
0x21c4   :  { %6529 = vtanh.f32 %v4989_v12 }
0x21cb   :  { %v6524_v14 = vpop.eup %6523 }
0x21cc   :  { %v6526_v42 = vpop.eup %6525  ;;  %v4998_v45 = vadd.f32 1.0, %v6524_v14 }
0x21cd   :  { %v6528_v50 = vpop.eup %6527  ;;  %v4996_v15 = vadd.f32 1.0, %v6526_v42 }
0x21ce   :  { %v6530_v19 = vpop.eup %6529  ;;  %v4999_v51 = vadd.f32 1.0, %v6528_v50  ;;  %v5002_v30 = vmul.f32 %v4998_v45, %v4970_v52 }
0x21cf   :  { %v4997_v32 = vadd.f32 1.0, %v6530_v19  ;;  %v5000_v35 = vmul.f32 %v4996_v15, %v4968_v17  ;;  %v5564_v15 = vld [vmem:[%s7666_s19] ss:$0 sm:$0xff]  ;;  %s6565_s19 = smov [#allocation2]  }
0x21d0   :  { %v5003_v33 = vmul.f32 %v4999_v51, %v4971_v29  ;;  %v5565_v29 = vld [vmem:[%s7667_s20] ss:$0 sm:$0xff]  ;;  %s5218_s20 = sshll.u32 %s6565_s19, 4  ;;  %s5219_s20 = int_to_ptr.vmem [resolvable:$true] %s5218_s20 }
0x21d1   :  { %v5001_v23 = vmul.f32 %v4997_v32, %v4969_v43  ;;  %s6539_s10 = scalar_lea.vmem %s5219_s20, 32  ;;  %p6544_p1 = scmp.lt.s32.totalorder %s5219_s20, %s5219_s20 }
0x21d2   :  { %v5014_v20 = vpack.c.bf16 %v5003_v33, %v5002_v30  ;;  %p6540_p0 = scmp.ne.s32.totalorder %s5219_s20, %s6539_s10  ;;  %p6545_p2 = scmp.lt.s32.totalorder %s6539_s10, %s6539_s10 }
0x21d3   :  { %v5013_v62 = vpack.c.bf16 %v5001_v23, %v5000_v35 }
0x21d4   :  { %p6546_p3 = por %p6545_p2, %p6544_p1 }
0x21d5   :  { %6253 = vmatprep.mubr.msk.bf16.mxu0 %vm2559_vm6, %v5013_v62 }
0x21d6   :  { %6254 = vmatmul.mubr.msk.bf16.vlgmr.msra.gmra.mrb[120].mxu0 %vm2559_vm6, %v5014_v20  ;;  %p6547_p4 = pnand %p6546_p3, %p6540_p0 }
0x22a9   :  { %v6255_v2 = vpop.f32.mrb[120].mxu0 }
0x22aa   :  { %v5079_v44 = vpop.f32.mrb[121].mxu0  ;;  %v5096_v57 = vadd.f32 %v6255_v2, %v7557_v60 }
0x22ab   :  { %v5094_v34 = vadd.f32 %v5079_v44, %v7553_v28  ;;  %v6256_v54 = vpop.f32.mrb[122].mxu0 }
0x22ac   :  { %v5082_v38 = vpop.f32.mrb[123].mxu0  ;;  %v5097_v55 = vadd.f32 %v6256_v54, %v7563_v27  ;;  %v5108_v59 = vadd.f32 %v5563_v40, %v5096_v57 }
0x22ad   :  { %v5095_v26 = vadd.f32 %v5082_v38, %v7559_v61  ;;  %v5106_v11 = vadd.f32 %v5563_v40, %v5094_v34 }
0x22ae   :  { %v5109_v13 = vadd.f32 %v5563_v40, %v5097_v55  ;;  %v5118_v60 = vsel %vm162_vm1, %v5108_v59, 0.0 }
0x22af   :  { %v5112_v22 = vsel %vm162_vm1, %v5106_v11, 0.0  ;;  %v5107_v39 = vadd.f32 %v5563_v40, %v5095_v26 }
0x22b0   :  { %5113 = vadd.xlane.f32.xlu0 %v5112_v22  ;;  %v5121_v28 = vsel %vm162_vm1, %v5109_v13, 0.0 }
0x22b1   :  { %v5115_v16 = vsel %vm162_vm1, %v5107_v39, 0.0 }
0x22b2   :  { %5116 = vadd.xlane.f32.xlu1 %v5115_v16 }
0x22b4   :  { %5119 = vadd.xlane.f32.xlu0 %v5118_v60 }
0x22b6   :  { %5122 = vadd.xlane.f32.xlu1 %v5121_v28 }
0x233d   :  { %v5114_v21 = vpop.xlane.xlu0 %5113 }
0x233e   :  { %v5124_v27 = vmul.f32 0.03125, %v5114_v21 }
0x233f   :  { %v5117_v63 = vpop.xlane.xlu1 %5116 }
0x2340   :  { %v5128_v61 = vsub.f32 %v5106_v11, %v5124_v27  ;;  %v5125_v0 = vmul.f32 0.03125, %v5117_v63 }
0x2341   :  { %v5120_v1 = vpop.xlane.xlu0 %5119 }
0x2342   :  { %v5129_v3 = vsub.f32 %v5107_v39, %v5125_v0  ;;  %v5126_v53 = vmul.f32 0.03125, %v5120_v1  ;;  %v5132_v25 = vmul.f32 %v5128_v61, %v5128_v61 }
0x2343   :  { %v5123_v58 = vpop.xlane.xlu1 %5122 }
0x2344   :  { %v5130_v4 = vsub.f32 %v5108_v59, %v5126_v53  ;;  %v5127_v5 = vmul.f32 0.03125, %v5123_v58  ;;  %v5136_v6 = vsel %vm162_vm1, %v5132_v25, 0.0  ;;  %v5133_v7 = vmul.f32 %v5129_v3, %v5129_v3 }
0x2345   :  { %5137 = vadd.xlane.f32.xlu0 %v5136_v6 }
0x2346   :  { %v5131_v46 = vsub.f32 %v5109_v13, %v5127_v5  ;;  %v5139_v47 = vsel %vm162_vm1, %v5133_v7, 0.0  ;;  %v5134_v31 = vmul.f32 %v5130_v4, %v5130_v4 }
0x2347   :  { %5140 = vadd.xlane.f32.xlu1 %v5139_v47 }
0x2348   :  { %v5142_v36 = vsel %vm162_vm1, %v5134_v31, 0.0  ;;  %v5135_v8 = vmul.f32 %v5131_v46, %v5131_v46 }
0x2349   :  { %5143 = vadd.xlane.f32.xlu0 %v5142_v36 }
0x234a   :  { %v5145_v49 = vsel %vm162_vm1, %v5135_v8, 0.0 }
0x234b   :  { %5146 = vadd.xlane.f32.xlu1 %v5145_v49 }
0x23d2   :  { %v5138_v56 = vpop.xlane.xlu0 %5137 }
0x23d3   :  { %v5148_v37 = vmul.f32 0.03125, %v5138_v56 }
0x23d4   :  { %v5141_v24 = vpop.xlane.xlu1 %5140 }
0x23d5   :  { %v5152_v18 = vadd.f32 1e-06, %v5148_v37  ;;  %v5149_v41 = vmul.f32 0.03125, %v5141_v24 }
0x23d6   :  { %v5144_v48 = vpop.xlane.xlu0 %5143 }
0x23d7   :  { %6531 = vrsqrt.f32 %v5152_v18  ;;  %v5153_v9 = vadd.f32 1e-06, %v5149_v41  ;;  %v5150_v10 = vmul.f32 0.03125, %v5144_v48 }
0x23d8   :  { %v5147_v12 = vpop.xlane.xlu1 %5146 }
0x23d9   :  { %6533 = vrsqrt.f32 %v5153_v9  ;;  %v5154_v14 = vadd.f32 1e-06, %v5150_v10  ;;  %v5151_v42 = vmul.f32 0.03125, %v5147_v12 }
0x23db   :  { %6535 = vrsqrt.f32 %v5154_v14  ;;  %v5155_v45 = vadd.f32 1e-06, %v5151_v42 }
0x23dd   :  { %6537 = vrsqrt.f32 %v5155_v45 }
0x23e1   :  { %v6532_v50 = vpop.eup %6531 }
0x23e2   :  { %v5160_v19 = vmul.f32 %v6532_v50, %v5128_v61 }
0x23e3   :  { %v6534_v52 = vpop.eup %6533 }
0x23e4   :  { %v5170_v51 = vmul.f32 %v5564_v15, %v5160_v19  ;;  %v5161_v17 = vmul.f32 %v6534_v52, %v5129_v3 }
0x23e5   :  { %v6536_v43 = vpop.eup %6535 }
0x23e6   :  { %v5180_v32 = vadd.f32 %v5565_v29, %v5170_v51  ;;  %v5171_v30 = vmul.f32 %v5564_v15, %v5161_v17  ;;  %v5162_v33 = vmul.f32 %v6536_v43, %v5130_v4 }
0x23e7   :  { %v6538_v35 = vpop.eup %6537 }
0x23e8   :  { %v5181_v23 = vadd.f32 %v5565_v29, %v5171_v30  ;;  %v5172_v20 = vmul.f32 %v5564_v15, %v5162_v33  ;;  %v5163_v62 = vmul.f32 %v6538_v35, %v5131_v46  ;;  %v5184_v44 = vsel %vm162_vm1, %v5180_v32, 0.0 }
0x23ea   :  { %v5182_v2 = vadd.f32 %v5565_v29, %v5172_v20  ;;  %v5173_v40 = vmul.f32 %v5564_v15, %v5163_v62  ;;  %v5185_v57 = vsel %vm162_vm1, %v5181_v23, 0.0 }
0x23eb   :  { %v5186_v34 = vadd.f32 %v5185_v57, %v5184_v44 }
0x23ec   :  { %v5183_v54 = vadd.f32 %v5565_v29, %v5173_v40  ;;  %v5193_v55 = vsel %vm162_vm1, %v5182_v2, 0.0 }
0x23ed   :  { %v5187_v38 = vrot.slane %v5186_v34, 4 }
0x23ee   :  { %v5194_v26 = vsel %vm162_vm1, %v5183_v54, 0.0 }
0x23ef   :  { %v5188_v11 = vadd.f32 %v5187_v38, %v5186_v34  ;;  %v5195_v59 = vadd.f32 %v5194_v26, %v5193_v55 }
0x23f1   :  { %v5189_v22 = vrot.slane %v5188_v11, 2  ;;  %v5196_v39 = vrot.slane %v5195_v59, 4 }
0x23f3   :  { %v5190_v13 = vadd.f32 %v5189_v22, %v5188_v11  ;;  %v5197_v16 = vadd.f32 %v5196_v39, %v5195_v59 }
0x23f5   :  { %v5191_v60 = vrot.slane %v5190_v13, 1  ;;  %v5198_v28 = vrot.slane %v5197_v16, 2 }
0x23f7   :  { %v5199_v21 = vadd.f32 %v5198_v28, %v5197_v16  ;;  %v5192_v27 = vadd.f32 %v5191_v60, %v5190_v13 }
0x23f9   :  { %v5200_v63 = vrot.slane %v5199_v21, 1  ;;  %v5203_v0 = vmul.f32 0.0625, %v5192_v27 }
0x23fb   :  { %v5201_v61 = vadd.f32 %v5200_v63, %v5199_v21 }
0x23fd   :  { %v5204_v1 = vmul.f32 0.0625, %v5201_v61 }
0x23ff   :  { %v5208_v3 = vsel %vm5207_vm7, %v5204_v1, %v5203_v0 }
0x2400   :  { %5211 = vst.msk [vmem:[#allocation2] sm:$0x3] %vm5210_vm8, %v5208_v3 }
0x2401   :  { %6550 = shalt.err (!%p6547_p4)
}
0x2402   :  { %s6551_s27 = scalar_lea.hbm %s7668_s21, 32 }
0x2403   :  { %p6552_p5 = scmp.ne.s32.totalorder %s7668_s21, %s6551_s27  ;;  %p6555_p6 = scmp.lt.u32.totalorder %s6551_s27, %s7668_s21 }
0x2405   :  { %p6557_p7 = pnand %p6555_p6, %p6552_p5 }
0x2407   :  { %6560 = shalt.err (!%p6557_p7)
}
0x2408   :  { %5221 = dma.vmem_to_hbm [thread:$0]  %s5219_s20, 32, %s7668_s21, [#allocation3]  }
0x2409   :  { %6561 = dma.done.wait [#allocation3], 32  }
0x240a   :  { %6562 = vsyncadd [#allocation3], 4294967264 }
0x240b   :  { %5225 = vsyncpa [#allocation3], 1 }

</bundles_post_ra>
